<compile_context>
chip_gen: v5e
topology: v5e:2x2
jax: 0.10.0
libtpu: 0.0.40
codegen_flags: <defaults>
</compile_context>

<pallas_src>
import functools

import numpy as np

import jax
import jax.numpy as jnp
from jax import lax
from jax.experimental import pallas as pl
from jax.experimental.pallas import tpu as pltpu


def _radius_search_kernel(start_ref, span_ref,              # scalar prefetch (SMEM)
                          qp_ref, qq_ref, qb_ref,            # per-q-tile inputs
                          tri_ref, spT_ref, ss_ref, sb_ref,  # prefix matrix + per-s-tile inputs
                          out_ref,                           # (tq, kpad) i32, resident over j
                          cnt_ref,                           # (tq, 1) i32 scratch
                          *, radius2, k, shadow):
    i = pl.program_id(0)      # q-tile index ("parallel")
    j = pl.program_id(1)      # offset inside this q-tile's s-window ("arbitrary")

    @pl.when(j == 0)
    def _init():
        cnt_ref[...] = jnp.zeros_like(cnt_ref)
        out_ref[...] = jnp.full_like(out_ref, shadow)

    # Only `span_ref[i]` steps of the window carry real work; trailing steps
    # (window shorter than max_span) do nothing and re-use the clamped s block.
    active = j < span_ref[i]
    # Early exit: every row of this q-tile already has k neighbors.
    not_full = jnp.min(cnt_ref[...].astype(jnp.float32)) < float(k)

    @pl.when(jnp.logical_and(active, not_full))
    def _compute():
        q = qp_ref[...]                                   # (tq, 8) f32
        sT = spT_ref[...]                                 # (8, ts) f32 (pre-transposed)
        tq = q.shape[0]
        ts = sT.shape[1]

        # Pairwise squared distances: |q|^2 + |s|^2 - 2 q.s (MXU, K=8).
        qs = lax.dot_general(q, sT, (((1,), (0,)), ((), ())),
                             preferred_element_type=jnp.float32)     # (tq, ts)
        d2 = qq_ref[...] + ss_ref[...] - 2.0 * qs

        mask = jnp.logical_and(d2 < radius2, qb_ref[...] == sb_ref[...])

        # Inclusive per-row prefix count on the MXU: 0/1 mask (bf16) against a
        # constant (ts, ts) upper-triangular ones matrix, f32 accumulation
        # (exact for counts <= ts).  Replaces the roll-based XLU scan.
        maskb = mask.astype(jnp.float32).astype(jnp.bfloat16)
        incl_f = jnp.dot(maskb, tri_ref[...],
                         preferred_element_type=jnp.float32)          # (tq, ts)
        incl = incl_f.astype(jnp.int32)
        mask_i = mask.astype(jnp.int32)

        cnt = cnt_ref[...]                                             # (tq, 1) i32
        rank = cnt + incl - mask_i                                     # exclusive global rank
        tile_total = incl[:, ts - 1:ts]                                # (tq, 1) i32

        col = lax.broadcasted_iota(jnp.int32, (tq, ts), 1)
        # global support index + 1 (so 0 means "nothing selected with this rank")
        s_idx1 = col + ((start_ref[i] + j) * ts + 1)

        # Scalar bounds on the ranks this tile can produce -> skip dead jj's.
        cnt_f = cnt.astype(jnp.float32)
        lo = jnp.min(cnt_f).astype(jnp.int32)
        hi = jnp.max(cnt_f + incl_f[:, ts - 1:ts]).astype(jnp.int32)

        out_col = lax.broadcasted_iota(jnp.int32, out_ref.shape, 1)

        def jj_body(jj, carry):
            @pl.when(jnp.logical_and(jj >= lo, jj < hi))
            def _write():
                sel = jnp.logical_and(mask, rank == jj)
                # at most one selected entry per row has rank == jj
                val = jnp.sum(jnp.where(sel, s_idx1, 0), axis=-1, keepdims=True)
                out_ref[...] = jnp.where(
                    jnp.logical_and(out_col == jj, val > 0), val - 1, out_ref[...])
            return carry

        lax.fori_loop(0, k, jj_body, 0, unroll=True)

        # carry the running per-row neighbor count to the next s-tile
        cnt_ref[...] = cnt + tile_total


def _round_up(x, m):
    return ((x + m - 1) // m) * m


def radius_search(q_points, s_points, q_lengths, s_lengths, radius,
                  max_neighbor, *, q_tile=256, s_tile=512):
    q_points = jnp.asarray(q_points, jnp.float32)
    s_points = jnp.asarray(s_points, jnp.float32)
    # Lengths drive the (static) grid shape, so they must be host-concrete.
    ql = np.asarray(jax.device_get(q_lengths), np.int64)
    sl = np.asarray(jax.device_get(s_lengths), np.int64)

    nq, dim = q_points.shape
    ns = s_points.shape[0]
    nb = int(ql.shape[0])
    k = int(max_neighbor)
    dp = 8                                   # pad xyz -> 8 lanes for the MXU contraction
    kpad = _round_up(max(k, 1), 128)         # lane-dense output, sliced back to k below
    assert dim <= dp
    assert int(ql.sum()) == nq and int(sl.sum()) == ns

    # v5e: the (ts, ts) prefix matmul is ~4-5x costlier on the 4x128^2 MXU;
    # cap the s-tile there (perf-only, any multiple of 128 is correct).
    try:
        kind = jax.devices()[0].device_kind.lower()
        if "v5 lite" in kind or "v5e" in kind:
            s_tile = min(int(s_tile), 256)
    except Exception:
        pass

    tq = _round_up(max(8, min(int(q_tile), _round_up(nq, 8))), 8)
    ts = _round_up(max(128, min(int(s_tile), _round_up(ns, 128))), 128)
    nq_pad = _round_up(nq, tq)
    ns_pad = _round_up(ns, ts)
    n_qt = nq_pad // tq
    n_st = ns_pad // ts

    # ---- host-side batch bookkeeping --------------------------------------
    qb_np = np.full((nq_pad,), nb, np.int32)          # pad id: never matches
    qb_np[:nq] = np.repeat(np.arange(nb, dtype=np.int32), ql)
    sb_np = np.full((ns_pad,), nb + 1, np.int32)      # distinct pad id on s side
    sb_np[:ns] = np.repeat(np.arange(nb, dtype=np.int32), sl)

    q_lo = qb_np.reshape(n_qt, tq).min(axis=1)
    q_hi = qb_np.reshape(n_qt, tq).max(axis=1)
    s_lo = sb_np.reshape(n_st, ts).min(axis=1)
    s_hi = sb_np.reshape(n_st, ts).max(axis=1)

    # Contiguous window of s-tiles whose batch range overlaps each q-tile
    # (batches are contiguous segments, so the overlapping tiles are contiguous).
    s_start = (s_hi[None, :] < q_lo[:, None]).sum(axis=1).astype(np.int32)   # (n_qt,)
    s_end = (s_lo[None, :] <= q_hi[:, None]).sum(axis=1).astype(np.int32)    # (n_qt,)
    span = np.maximum(s_end - s_start, 0).astype(np.int32)
    max_span = int(max(int(span.max()) if span.size else 0, 1))

    # ---- device-side operands ----------------------------------------------
    qp = jnp.zeros((nq_pad, dp), jnp.float32).at[:nq, :dim].set(q_points)
    qq = jnp.sum(qp * qp, axis=-1, keepdims=True)                      # (nq_pad, 1)
    spT = jnp.zeros((dp, ns_pad), jnp.float32).at[:dim, :ns].set(s_points.T)
    ss = jnp.sum(spT * spT, axis=0, keepdims=True)                     # (1, ns_pad)
    qb = jnp.asarray(qb_np).reshape(nq_pad, 1)
    sb = jnp.asarray(sb_np).reshape(1, ns_pad)

    # Constant upper-triangular ones (tri[r, c] = 1 iff r <= c) for the
    # MXU prefix count; constant block index => DMA'd once, stays resident.
    r = np.arange(ts)
    tri = jnp.asarray(r[:, None] <= r[None, :], jnp.bfloat16)          # (ts, ts)

    kernel = functools.partial(_radius_search_kernel,
                               radius2=float(radius) ** 2,
                               k=k,
                               shadow=int(ns))

    def s_map(i, j, start_ref, span_ref):
        # Clamp dead window steps to the last valid s-tile so they re-use the
        # already-resident block (no extra DMA).
        jj = jnp.minimum(j, jnp.maximum(span_ref[i] - 1, 0))
        return (0, jnp.minimum(start_ref[i] + jj, n_st - 1))

    out = pl.pallas_call(
        kernel,
        out_shape=jax.ShapeDtypeStruct((nq_pad, kpad), jnp.int32),
        grid_spec=pltpu.PrefetchScalarGridSpec(
            num_scalar_prefetch=2,
            grid=(n_qt, max_span),
            in_specs=[
                pl.BlockSpec((tq, dp), lambda i, j, st, sp: (i, 0)),    # qp
                pl.BlockSpec((tq, 1), lambda i, j, st, sp: (i, 0)),     # qq
                pl.BlockSpec((tq, 1), lambda i, j, st, sp: (i, 0)),     # qb
                pl.BlockSpec((ts, ts), lambda i, j, st, sp: (0, 0)),    # tri (resident)
                pl.BlockSpec((dp, ts), s_map),                          # spT
                pl.BlockSpec((1, ts), s_map),                           # ss
                pl.BlockSpec((1, ts), s_map),                           # sb
            ],
            out_specs=pl.BlockSpec((tq, kpad), lambda i, j, st, sp: (i, 0)),
            scratch_shapes=[pltpu.VMEM((tq, 1), jnp.int32)],
        ),
        compiler_params=pltpu.CompilerParams(
            dimension_semantics=("parallel", "arbitrary"),
            vmem_limit_bytes=32 * 1024 * 1024,
        ),
    )(jnp.asarray(s_start), jnp.asarray(span),
      qp, qq, qb, tri, spT, ss, sb)

    return out[:nq, :k]


class RadiusSearch:
    """JAX/Pallas counterpart of the PyTorch RadiusSearch module."""

    def __init__(self, radius, max_neighbor):
        self.radius = radius
        self.max_neighbor = max_neighbor

    def __call__(self, q_points, s_points, q_lengths, s_lengths):
        return radius_search(q_points, s_points, q_lengths, s_lengths,
                             self.radius, self.max_neighbor)

    def __repr__(self):
        return 'RadiusSearch(radius={:.3f}, k={})'.format(
            self.radius, self.max_neighbor)


def _reference(qp, sp, ql, sl, radius, k):
    qp = np.asarray(qp, np.float32)
    sp = np.asarray(sp, np.float32)
    ql = np.asarray(ql)
    sl = np.asarray(sl)
    nq, ns = qp.shape[0], sp.shape[0]
    qb = np.repeat(np.arange(len(ql)), ql)
    sb = np.repeat(np.arange(len(sl)), sl)
    d2 = ((qp[:, None, :] - sp[None, :, :]) ** 2).sum(-1)
    mask = (d2 < radius * radius) & (qb[:, None] == sb[None, :])
    out = np.full((nq, k), ns, dtype=np.int32)
    for i in range(nq):
        idx = np.nonzero(mask[i])[0][:k]
        out[i, :idx.size] = idx
    return out


if __name__ == "__main__":
    key = jax.random.PRNGKey(0)
    k1, k2, k3, k4 = jax.random.split(key, 4)

    def run_case(q_lens, s_lens, radius, k, kq, ks):
        nq = int(np.sum(q_lens))
        ns = int(np.sum(s_lens))
        q_points = jax.random.uniform(kq, (nq, 3), jnp.float32)
        s_points = jax.random.uniform(ks, (ns, 3), jnp.float32)
        module = RadiusSearch(radius, k)
        out = jax.block_until_ready(
            module(q_points, s_points,
                   jnp.asarray(q_lens, jnp.int32),
                   jnp.asarray(s_lens, jnp.int32)))
        assert out.shape == (nq, k)
        assert out.dtype == jnp.int32
        assert int(jnp.min(out)) >= 0 and int(jnp.max(out)) <= ns
        ref = _reference(q_points, s_points, q_lens, s_lens, radius, k)
        match = float(np.mean(np.asarray(out) == ref))
        # tiny slack for f32 boundary effects of |q|^2+|s|^2-2q.s vs direct diffs
        assert match >= 0.97, f"mismatch rate too high: {match}"

    # small single-tile case
    run_case([24, 40], [48, 32], 0.3, 8, k1, k2)
    # multi-tile case: 3 q-tiles, windows spanning up to 2 s-tiles
    # (exercises the data-dependent window, cross-tile count carry, early exit)
    run_case([200, 150, 250], [250, 180, 270], 0.2, 8, k3, k4)

    print("KERNEL_OK")
</pallas_src>

<mosaic_0001>
module attributes {stable_mosaic.version = 11 : i64} {
  func.func @_radius_search_kernel(%arg0: i32, %arg1: i32, %arg2: memref<1xi32, #tpu.memory_space<smem>>, %arg3: memref<1xi32, #tpu.memory_space<smem>>, %arg4: memref<64x8xf32, #tpu.memory_space<vmem>>, %arg5: memref<64x1xf32, #tpu.memory_space<vmem>>, %arg6: memref<64x1xi32, #tpu.memory_space<vmem>>, %arg7: memref<128x128xbf16, #tpu.memory_space<vmem>>, %arg8: memref<8x128xf32, #tpu.memory_space<vmem>>, %arg9: memref<1x128xf32, #tpu.memory_space<vmem>>, %arg10: memref<1x128xi32, #tpu.memory_space<vmem>>, %arg11: memref<64x128xi32, #tpu.memory_space<vmem>>, %arg12: memref<64x1xi32, #tpu.memory_space<vmem>>) attributes {dimension_semantics = [#tpu.dimension_semantics<parallel>, #tpu.dimension_semantics<arbitrary>], iteration_bounds = array<i64: 1, 1>, scalar_prefetch = 2 : i64, scratch_operands = 1 : i64, tpu.core_type = #tpu.core_type<tc>, window_params = [{transform_indices = @transform_0, window_bounds = array<i64: 64, 8>}, {transform_indices = @transform_1, window_bounds = array<i64: 64, 1>}, {transform_indices = @transform_2, window_bounds = array<i64: 64, 1>}, {pipeline_mode = #tpu.pipeline_mode<synchronous>, transform_indices = @transform_3, window_bounds = array<i64: 128, 128>}, {transform_indices = @transform_4, window_bounds = array<i64: 8, 128>}, {transform_indices = @transform_5, window_bounds = array<i64: 1, 128>}, {transform_indices = @transform_6, window_bounds = array<i64: 1, 128>}, {transform_indices = @transform_7, window_bounds = array<i64: 64, 128>}]} {
    %c0_i32 = arith.constant 0 : i32
    %0 = arith.cmpi eq, %arg1, %c0_i32 : i32
    %1 = arith.extui %0 : i1 to i32
    %c0_i32_0 = arith.constant 0 : i32
    %2 = arith.cmpi ne, %1, %c0_i32_0 : i32
    scf.if %2 {
      %c0_i32_4 = arith.constant 0 : i32
      %16 = vector.broadcast %c0_i32_4 : i32 to vector<64x1xi32>
      %c0_5 = arith.constant 0 : index
      %c0_6 = arith.constant 0 : index
      %17 = vector.load %arg12[%c0_5, %c0_6] : memref<64x1xi32, #tpu.memory_space<vmem>>, vector<64x1xi32>
      tpu.vector_store %arg12[%c0_5, %c0_6], %16 {strides = array<i32>} : memref<64x1xi32, #tpu.memory_space<vmem>>, vector<64x1xi32>,
      %c80_i32 = arith.constant 80 : i32
      %18 = vector.broadcast %c80_i32 : i32 to vector<64x128xi32>
      %c0_7 = arith.constant 0 : index
      %c0_8 = arith.constant 0 : index
      %19 = vector.load %arg11[%c0_7, %c0_8] : memref<64x128xi32, #tpu.memory_space<vmem>>, vector<64x128xi32>
      tpu.vector_store %arg11[%c0_7, %c0_8], %18 {strides = array<i32>} : memref<64x128xi32, #tpu.memory_space<vmem>>, vector<64x128xi32>,
    } else {
    }
    %3 = arith.index_cast %arg0 : i32 to index
    %4 = memref.load %arg3[%3] : memref<1xi32, #tpu.memory_space<smem>>
    %5 = arith.cmpi slt, %arg1, %4 : i32
    %c0 = arith.constant 0 : index
    %c0_1 = arith.constant 0 : index
    %6 = vector.load %arg12[%c0, %c0_1] : memref<64x1xi32, #tpu.memory_space<vmem>>, vector<64x1xi32>
    %7 = arith.sitofp %6 : vector<64x1xi32> to vector<64x1xf32>
    %8 = vector.shape_cast %7 : vector<64x1xf32> to vector<1x64x1xf32>
    %cst = arith.constant dense<0x7F800000> : vector<1xf32>
    %9 = vector.multi_reduction <minimumf>, %8, %cst [1, 2] : vector<1x64x1xf32> to vector<1xf32>
    %10 = vector.shape_cast %9 : vector<1xf32> to vector<1x1x1xf32>
    %11 = vector.extract %10[0, 0, 0] : f32 from vector<1x1x1xf32>
    %cst_2 = arith.constant 8.000000e+00 : f32
    %12 = arith.cmpf olt, %11, %cst_2 : f32
    %13 = arith.andi %5, %12 : i1
    %14 = arith.extui %13 : i1 to i32
    %c0_i32_3 = arith.constant 0 : i32
    %15 = arith.cmpi ne, %14, %c0_i32_3 : i32
    scf.if %15 {
      %c0_4 = arith.constant 0 : index
      %c0_5 = arith.constant 0 : index
      %16 = vector.load %arg4[%c0_4, %c0_5] : memref<64x8xf32, #tpu.memory_space<vmem>>, vector<64x8xf32>
      %c0_6 = arith.constant 0 : index
      %c0_7 = arith.constant 0 : index
      %17 = vector.load %arg8[%c0_6, %c0_7] : memref<8x128xf32, #tpu.memory_space<vmem>>, vector<8x128xf32>
      %cst_8 = arith.constant dense<0.000000e+00> : vector<64x128xf32>
      %18 = tpu.matmul %16, %17, %cst_8 {dimension_numbers = #tpu.dot_dimension_numbers<[1], [0], [0], [1], [0, 0, 1, 1], [], []>} : vector<64x8xf32>, vector<8x128xf32>, vector<64x128xf32> -> vector<64x128xf32>
      %c0_9 = arith.constant 0 : index
      %c0_10 = arith.constant 0 : index
      %19 = vector.load %arg5[%c0_9, %c0_10] : memref<64x1xf32, #tpu.memory_space<vmem>>, vector<64x1xf32>
      %c0_11 = arith.constant 0 : index
      %c0_12 = arith.constant 0 : index
      %20 = vector.load %arg9[%c0_11, %c0_12] : memref<1x128xf32, #tpu.memory_space<vmem>>, vector<1x128xf32>
      %21 = vector.broadcast %19 : vector<64x1xf32> to vector<64x128xf32>
      %22 = vector.broadcast %20 : vector<1x128xf32> to vector<64x128xf32>
      %23 = arith.addf %21, %22 : vector<64x128xf32>
      %cst_13 = arith.constant 2.000000e+00 : f32
      %24 = vector.broadcast %cst_13 : f32 to vector<64x128xf32>
      %25 = arith.mulf %24, %18 : vector<64x128xf32>
      %26 = arith.subf %23, %25 : vector<64x128xf32>
      %cst_14 = arith.constant 9.000000e-02 : f32
      %27 = vector.broadcast %cst_14 : f32 to vector<64x128xf32>
      %28 = arith.cmpf olt, %26, %27 : vector<64x128xf32>
      %c0_15 = arith.constant 0 : index
      %c0_16 = arith.constant 0 : index
      %29 = vector.load %arg6[%c0_15, %c0_16] : memref<64x1xi32, #tpu.memory_space<vmem>>, vector<64x1xi32>
      %c0_17 = arith.constant 0 : index
      %c0_18 = arith.constant 0 : index
      %30 = vector.load %arg10[%c0_17, %c0_18] : memref<1x128xi32, #tpu.memory_space<vmem>>, vector<1x128xi32>
      %31 = vector.broadcast %29 : vector<64x1xi32> to vector<64x128xi32>
      %32 = vector.broadcast %30 : vector<1x128xi32> to vector<64x128xi32>
      %33 = arith.cmpi eq, %31, %32 : vector<64x128xi32>
      %34 = arith.andi %28, %33 : vector<64x128xi1>
      %35 = arith.extui %34 : vector<64x128xi1> to vector<64x128xi32>
      %36 = arith.sitofp %35 : vector<64x128xi32> to vector<64x128xf32>
      %37 = arith.truncf %36 : vector<64x128xf32> to vector<64x128xbf16>
      %c0_19 = arith.constant 0 : index
      %c0_20 = arith.constant 0 : index
      %38 = vector.load %arg7[%c0_19, %c0_20] : memref<128x128xbf16, #tpu.memory_space<vmem>>, vector<128x128xbf16>
      %cst_21 = arith.constant dense<0.000000e+00> : vector<64x128xf32>
      %39 = tpu.matmul %37, %38, %cst_21 {dimension_numbers = #tpu.dot_dimension_numbers<[1], [0], [0], [1], [0, 0, 1, 1], [], []>} : vector<64x128xbf16>, vector<128x128xbf16>, vector<64x128xf32> -> vector<64x128xf32>
      %40 = arith.fptosi %39 : vector<64x128xf32> to vector<64x128xi32>
      %41 = arith.extui %34 : vector<64x128xi1> to vector<64x128xi32>
      %c0_22 = arith.constant 0 : index
      %c0_23 = arith.constant 0 : index
      %42 = vector.load %arg12[%c0_22, %c0_23] : memref<64x1xi32, #tpu.memory_space<vmem>>, vector<64x1xi32>
      %43 = vector.broadcast %42 : vector<64x1xi32> to vector<64x128xi32>
      %44 = arith.addi %43, %40 : vector<64x128xi32>
      %45 = arith.subi %44, %41 : vector<64x128xi32>
      %46 = vector.extract_strided_slice %40 {offsets = [0, 127], sizes = [64, 1], strides = [1, 1]} : vector<64x128xi32> to vector<64x1xi32>
      %47 = tpu.iota {dimensions = array<i32: 1>} : vector<64x128xi32>
      %48 = arith.index_cast %arg0 : i32 to index
      %49 = memref.load %arg2[%48] : memref<1xi32, #tpu.memory_space<smem>>
      %50 = arith.addi %49, %arg1 : i32
      %c128_i32 = arith.constant 128 : i32
      %51 = arith.muli %50, %c128_i32 : i32
      %c1_i32 = arith.constant 1 : i32
      %52 = arith.addi %51, %c1_i32 : i32
      %53 = vector.broadcast %52 : i32 to vector<64x128xi32>
      %54 = arith.addi %47, %53 : vector<64x128xi32>
      %55 = arith.sitofp %42 : vector<64x1xi32> to vector<64x1xf32>
      %56 = vector.shape_cast %55 : vector<64x1xf32> to vector<1x64x1xf32>
      %cst_24 = arith.constant dense<0x7F800000> : vector<1xf32>
      %57 = vector.multi_reduction <minimumf>, %56, %cst_24 [1, 2] : vector<1x64x1xf32> to vector<1xf32>
      %58 = vector.shape_cast %57 : vector<1xf32> to vector<1x1x1xf32>
      %59 = vector.extract %58[0, 0, 0] : f32 from vector<1x1x1xf32>
      %60 = arith.fptosi %59 : f32 to i32
      %61 = vector.extract_strided_slice %39 {offsets = [0, 127], sizes = [64, 1], strides = [1, 1]} : vector<64x128xf32> to vector<64x1xf32>
      %62 = arith.addf %55, %61 : vector<64x1xf32>
      %63 = vector.shape_cast %62 : vector<64x1xf32> to vector<1x64x1xf32>
      %cst_25 = arith.constant dense<0xFF800000> : vector<1xf32>
      %64 = vector.multi_reduction <maximumf>, %63, %cst_25 [1, 2] : vector<1x64x1xf32> to vector<1xf32>
      %65 = vector.shape_cast %64 : vector<1xf32> to vector<1x1x1xf32>
      %66 = vector.extract %65[0, 0, 0] : f32 from vector<1x1x1xf32>
      %67 = arith.fptosi %66 : f32 to i32
      %68 = tpu.iota {dimensions = array<i32: 1>} : vector<64x128xi32>
      %c0_i32_26 = arith.constant 0 : i32
      %69 = arith.cmpi sge, %c0_i32_26, %60 : i32
      %70 = arith.cmpi slt, %c0_i32_26, %67 : i32
      %71 = arith.andi %69, %70 : i1
      %72 = arith.extui %71 : i1 to i32
      %c0_i32_27 = arith.constant 0 : i32
      %73 = arith.cmpi ne, %72, %c0_i32_27 : i32
      scf.if %73 {
        %111 = vector.broadcast %c0_i32_26 : i32 to vector<64x128xi32>
        %112 = arith.cmpi eq, %45, %111 : vector<64x128xi32>
        %113 = arith.andi %34, %112 : vector<64x128xi1>
        %c0_i32_38 = arith.constant 0 : i32
        %114 = vector.broadcast %c0_i32_38 : i32 to vector<64x128xi32>
        %115 = arith.select %113, %54, %114 : vector<64x128xi1>, vector<64x128xi32>
        %cst_39 = arith.constant dense<0> : vector<64xi32>
        %116 = vector.multi_reduction <add>, %115, %cst_39 [1] : vector<64x128xi32> to vector<64xi32>
        %117 = vector.shape_cast %116 : vector<64xi32> to vector<64x1xi32>
        %118 = vector.broadcast %c0_i32_26 : i32 to vector<64x128xi32>
        %119 = arith.cmpi eq, %68, %118 : vector<64x128xi32>
        %c0_i32_40 = arith.constant 0 : i32
        %120 = vector.broadcast %c0_i32_40 : i32 to vector<64x1xi32>
        %121 = arith.cmpi sgt, %117, %120 : vector<64x1xi32>
        %122 = vector.broadcast %121 : vector<64x1xi1> to vector<64x128xi1>
        %123 = arith.andi %119, %122 : vector<64x128xi1>
        %c1_i32_41 = arith.constant 1 : i32
        %124 = vector.broadcast %c1_i32_41 : i32 to vector<64x1xi32>
        %125 = arith.subi %117, %124 : vector<64x1xi32>
        %c0_42 = arith.constant 0 : index
        %c0_43 = arith.constant 0 : index
        %126 = vector.load %arg11[%c0_42, %c0_43] : memref<64x128xi32, #tpu.memory_space<vmem>>, vector<64x128xi32>
        %127 = vector.shape_cast %125 : vector<64x1xi32> to vector<64x1xi32>
        %128 = vector.broadcast %127 : vector<64x1xi32> to vector<64x128xi32>
        %129 = arith.select %123, %128, %126 : vector<64x128xi1>, vector<64x128xi32>
        %c0_44 = arith.constant 0 : index
        %c0_45 = arith.constant 0 : index
        %130 = vector.load %arg11[%c0_44, %c0_45] : memref<64x128xi32, #tpu.memory_space<vmem>>, vector<64x128xi32>
        tpu.vector_store %arg11[%c0_44, %c0_45], %129 {strides = array<i32>} : memref<64x128xi32, #tpu.memory_space<vmem>>, vector<64x128xi32>,
      } else {
      }
      %c1_i32_28 = arith.constant 1 : i32
      %74 = arith.cmpi sge, %c1_i32_28, %60 : i32
      %75 = arith.cmpi slt, %c1_i32_28, %67 : i32
      %76 = arith.andi %74, %75 : i1
      %77 = arith.extui %76 : i1 to i32
      %c0_i32_29 = arith.constant 0 : i32
      %78 = arith.cmpi ne, %77, %c0_i32_29 : i32
      scf.if %78 {
        %111 = vector.broadcast %c1_i32_28 : i32 to vector<64x128xi32>
        %112 = arith.cmpi eq, %45, %111 : vector<64x128xi32>
        %113 = arith.andi %34, %112 : vector<64x128xi1>
        %c0_i32_38 = arith.constant 0 : i32
        %114 = vector.broadcast %c0_i32_38 : i32 to vector<64x128xi32>
        %115 = arith.select %113, %54, %114 : vector<64x128xi1>, vector<64x128xi32>
        %cst_39 = arith.constant dense<0> : vector<64xi32>
        %116 = vector.multi_reduction <add>, %115, %cst_39 [1] : vector<64x128xi32> to vector<64xi32>
        %117 = vector.shape_cast %116 : vector<64xi32> to vector<64x1xi32>
        %118 = vector.broadcast %c1_i32_28 : i32 to vector<64x128xi32>
        %119 = arith.cmpi eq, %68, %118 : vector<64x128xi32>
        %c0_i32_40 = arith.constant 0 : i32
        %120 = vector.broadcast %c0_i32_40 : i32 to vector<64x1xi32>
        %121 = arith.cmpi sgt, %117, %120 : vector<64x1xi32>
        %122 = vector.broadcast %121 : vector<64x1xi1> to vector<64x128xi1>
        %123 = arith.andi %119, %122 : vector<64x128xi1>
        %c1_i32_41 = arith.constant 1 : i32
        %124 = vector.broadcast %c1_i32_41 : i32 to vector<64x1xi32>
        %125 = arith.subi %117, %124 : vector<64x1xi32>
        %c0_42 = arith.constant 0 : index
        %c0_43 = arith.constant 0 : index
        %126 = vector.load %arg11[%c0_42, %c0_43] : memref<64x128xi32, #tpu.memory_space<vmem>>, vector<64x128xi32>
        %127 = vector.shape_cast %125 : vector<64x1xi32> to vector<64x1xi32>
        %128 = vector.broadcast %127 : vector<64x1xi32> to vector<64x128xi32>
        %129 = arith.select %123, %128, %126 : vector<64x128xi1>, vector<64x128xi32>
        %c0_44 = arith.constant 0 : index
        %c0_45 = arith.constant 0 : index
        %130 = vector.load %arg11[%c0_44, %c0_45] : memref<64x128xi32, #tpu.memory_space<vmem>>, vector<64x128xi32>
        tpu.vector_store %arg11[%c0_44, %c0_45], %129 {strides = array<i32>} : memref<64x128xi32, #tpu.memory_space<vmem>>, vector<64x128xi32>,
      } else {
      }
      %c2_i32 = arith.constant 2 : i32
      %79 = arith.cmpi sge, %c2_i32, %60 : i32
      %80 = arith.cmpi slt, %c2_i32, %67 : i32
      %81 = arith.andi %79, %80 : i1
      %82 = arith.extui %81 : i1 to i32
      %c0_i32_30 = arith.constant 0 : i32
      %83 = arith.cmpi ne, %82, %c0_i32_30 : i32
      scf.if %83 {
        %111 = vector.broadcast %c2_i32 : i32 to vector<64x128xi32>
        %112 = arith.cmpi eq, %45, %111 : vector<64x128xi32>
        %113 = arith.andi %34, %112 : vector<64x128xi1>
        %c0_i32_38 = arith.constant 0 : i32
        %114 = vector.broadcast %c0_i32_38 : i32 to vector<64x128xi32>
        %115 = arith.select %113, %54, %114 : vector<64x128xi1>, vector<64x128xi32>
        %cst_39 = arith.constant dense<0> : vector<64xi32>
        %116 = vector.multi_reduction <add>, %115, %cst_39 [1] : vector<64x128xi32> to vector<64xi32>
        %117 = vector.shape_cast %116 : vector<64xi32> to vector<64x1xi32>
        %118 = vector.broadcast %c2_i32 : i32 to vector<64x128xi32>
        %119 = arith.cmpi eq, %68, %118 : vector<64x128xi32>
        %c0_i32_40 = arith.constant 0 : i32
        %120 = vector.broadcast %c0_i32_40 : i32 to vector<64x1xi32>
        %121 = arith.cmpi sgt, %117, %120 : vector<64x1xi32>
        %122 = vector.broadcast %121 : vector<64x1xi1> to vector<64x128xi1>
        %123 = arith.andi %119, %122 : vector<64x128xi1>
        %c1_i32_41 = arith.constant 1 : i32
        %124 = vector.broadcast %c1_i32_41 : i32 to vector<64x1xi32>
        %125 = arith.subi %117, %124 : vector<64x1xi32>
        %c0_42 = arith.constant 0 : index
        %c0_43 = arith.constant 0 : index
        %126 = vector.load %arg11[%c0_42, %c0_43] : memref<64x128xi32, #tpu.memory_space<vmem>>, vector<64x128xi32>
        %127 = vector.shape_cast %125 : vector<64x1xi32> to vector<64x1xi32>
        %128 = vector.broadcast %127 : vector<64x1xi32> to vector<64x128xi32>
        %129 = arith.select %123, %128, %126 : vector<64x128xi1>, vector<64x128xi32>
        %c0_44 = arith.constant 0 : index
        %c0_45 = arith.constant 0 : index
        %130 = vector.load %arg11[%c0_44, %c0_45] : memref<64x128xi32, #tpu.memory_space<vmem>>, vector<64x128xi32>
        tpu.vector_store %arg11[%c0_44, %c0_45], %129 {strides = array<i32>} : memref<64x128xi32, #tpu.memory_space<vmem>>, vector<64x128xi32>,
      } else {
      }
      %c3_i32 = arith.constant 3 : i32
      %84 = arith.cmpi sge, %c3_i32, %60 : i32
      %85 = arith.cmpi slt, %c3_i32, %67 : i32
      %86 = arith.andi %84, %85 : i1
      %87 = arith.extui %86 : i1 to i32
      %c0_i32_31 = arith.constant 0 : i32
      %88 = arith.cmpi ne, %87, %c0_i32_31 : i32
      scf.if %88 {
        %111 = vector.broadcast %c3_i32 : i32 to vector<64x128xi32>
        %112 = arith.cmpi eq, %45, %111 : vector<64x128xi32>
        %113 = arith.andi %34, %112 : vector<64x128xi1>
        %c0_i32_38 = arith.constant 0 : i32
        %114 = vector.broadcast %c0_i32_38 : i32 to vector<64x128xi32>
        %115 = arith.select %113, %54, %114 : vector<64x128xi1>, vector<64x128xi32>
        %cst_39 = arith.constant dense<0> : vector<64xi32>
        %116 = vector.multi_reduction <add>, %115, %cst_39 [1] : vector<64x128xi32> to vector<64xi32>
        %117 = vector.shape_cast %116 : vector<64xi32> to vector<64x1xi32>
        %118 = vector.broadcast %c3_i32 : i32 to vector<64x128xi32>
        %119 = arith.cmpi eq, %68, %118 : vector<64x128xi32>
        %c0_i32_40 = arith.constant 0 : i32
        %120 = vector.broadcast %c0_i32_40 : i32 to vector<64x1xi32>
        %121 = arith.cmpi sgt, %117, %120 : vector<64x1xi32>
        %122 = vector.broadcast %121 : vector<64x1xi1> to vector<64x128xi1>
        %123 = arith.andi %119, %122 : vector<64x128xi1>
        %c1_i32_41 = arith.constant 1 : i32
        %124 = vector.broadcast %c1_i32_41 : i32 to vector<64x1xi32>
        %125 = arith.subi %117, %124 : vector<64x1xi32>
        %c0_42 = arith.constant 0 : index
        %c0_43 = arith.constant 0 : index
        %126 = vector.load %arg11[%c0_42, %c0_43] : memref<64x128xi32, #tpu.memory_space<vmem>>, vector<64x128xi32>
        %127 = vector.shape_cast %125 : vector<64x1xi32> to vector<64x1xi32>
        %128 = vector.broadcast %127 : vector<64x1xi32> to vector<64x128xi32>
        %129 = arith.select %123, %128, %126 : vector<64x128xi1>, vector<64x128xi32>
        %c0_44 = arith.constant 0 : index
        %c0_45 = arith.constant 0 : index
        %130 = vector.load %arg11[%c0_44, %c0_45] : memref<64x128xi32, #tpu.memory_space<vmem>>, vector<64x128xi32>
        tpu.vector_store %arg11[%c0_44, %c0_45], %129 {strides = array<i32>} : memref<64x128xi32, #tpu.memory_space<vmem>>, vector<64x128xi32>,
      } else {
      }
      %c4_i32 = arith.constant 4 : i32
      %89 = arith.cmpi sge, %c4_i32, %60 : i32
      %90 = arith.cmpi slt, %c4_i32, %67 : i32
      %91 = arith.andi %89, %90 : i1
      %92 = arith.extui %91 : i1 to i32
      %c0_i32_32 = arith.constant 0 : i32
      %93 = arith.cmpi ne, %92, %c0_i32_32 : i32
      scf.if %93 {
        %111 = vector.broadcast %c4_i32 : i32 to vector<64x128xi32>
        %112 = arith.cmpi eq, %45, %111 : vector<64x128xi32>
        %113 = arith.andi %34, %112 : vector<64x128xi1>
        %c0_i32_38 = arith.constant 0 : i32
        %114 = vector.broadcast %c0_i32_38 : i32 to vector<64x128xi32>
        %115 = arith.select %113, %54, %114 : vector<64x128xi1>, vector<64x128xi32>
        %cst_39 = arith.constant dense<0> : vector<64xi32>
        %116 = vector.multi_reduction <add>, %115, %cst_39 [1] : vector<64x128xi32> to vector<64xi32>
        %117 = vector.shape_cast %116 : vector<64xi32> to vector<64x1xi32>
        %118 = vector.broadcast %c4_i32 : i32 to vector<64x128xi32>
        %119 = arith.cmpi eq, %68, %118 : vector<64x128xi32>
        %c0_i32_40 = arith.constant 0 : i32
        %120 = vector.broadcast %c0_i32_40 : i32 to vector<64x1xi32>
        %121 = arith.cmpi sgt, %117, %120 : vector<64x1xi32>
        %122 = vector.broadcast %121 : vector<64x1xi1> to vector<64x128xi1>
        %123 = arith.andi %119, %122 : vector<64x128xi1>
        %c1_i32_41 = arith.constant 1 : i32
        %124 = vector.broadcast %c1_i32_41 : i32 to vector<64x1xi32>
        %125 = arith.subi %117, %124 : vector<64x1xi32>
        %c0_42 = arith.constant 0 : index
        %c0_43 = arith.constant 0 : index
        %126 = vector.load %arg11[%c0_42, %c0_43] : memref<64x128xi32, #tpu.memory_space<vmem>>, vector<64x128xi32>
        %127 = vector.shape_cast %125 : vector<64x1xi32> to vector<64x1xi32>
        %128 = vector.broadcast %127 : vector<64x1xi32> to vector<64x128xi32>
        %129 = arith.select %123, %128, %126 : vector<64x128xi1>, vector<64x128xi32>
        %c0_44 = arith.constant 0 : index
        %c0_45 = arith.constant 0 : index
        %130 = vector.load %arg11[%c0_44, %c0_45] : memref<64x128xi32, #tpu.memory_space<vmem>>, vector<64x128xi32>
        tpu.vector_store %arg11[%c0_44, %c0_45], %129 {strides = array<i32>} : memref<64x128xi32, #tpu.memory_space<vmem>>, vector<64x128xi32>,
      } else {
      }
      %c5_i32 = arith.constant 5 : i32
      %94 = arith.cmpi sge, %c5_i32, %60 : i32
      %95 = arith.cmpi slt, %c5_i32, %67 : i32
      %96 = arith.andi %94, %95 : i1
      %97 = arith.extui %96 : i1 to i32
      %c0_i32_33 = arith.constant 0 : i32
      %98 = arith.cmpi ne, %97, %c0_i32_33 : i32
      scf.if %98 {
        %111 = vector.broadcast %c5_i32 : i32 to vector<64x128xi32>
        %112 = arith.cmpi eq, %45, %111 : vector<64x128xi32>
        %113 = arith.andi %34, %112 : vector<64x128xi1>
        %c0_i32_38 = arith.constant 0 : i32
        %114 = vector.broadcast %c0_i32_38 : i32 to vector<64x128xi32>
        %115 = arith.select %113, %54, %114 : vector<64x128xi1>, vector<64x128xi32>
        %cst_39 = arith.constant dense<0> : vector<64xi32>
        %116 = vector.multi_reduction <add>, %115, %cst_39 [1] : vector<64x128xi32> to vector<64xi32>
        %117 = vector.shape_cast %116 : vector<64xi32> to vector<64x1xi32>
        %118 = vector.broadcast %c5_i32 : i32 to vector<64x128xi32>
        %119 = arith.cmpi eq, %68, %118 : vector<64x128xi32>
        %c0_i32_40 = arith.constant 0 : i32
        %120 = vector.broadcast %c0_i32_40 : i32 to vector<64x1xi32>
        %121 = arith.cmpi sgt, %117, %120 : vector<64x1xi32>
        %122 = vector.broadcast %121 : vector<64x1xi1> to vector<64x128xi1>
        %123 = arith.andi %119, %122 : vector<64x128xi1>
        %c1_i32_41 = arith.constant 1 : i32
        %124 = vector.broadcast %c1_i32_41 : i32 to vector<64x1xi32>
        %125 = arith.subi %117, %124 : vector<64x1xi32>
        %c0_42 = arith.constant 0 : index
        %c0_43 = arith.constant 0 : index
        %126 = vector.load %arg11[%c0_42, %c0_43] : memref<64x128xi32, #tpu.memory_space<vmem>>, vector<64x128xi32>
        %127 = vector.shape_cast %125 : vector<64x1xi32> to vector<64x1xi32>
        %128 = vector.broadcast %127 : vector<64x1xi32> to vector<64x128xi32>
        %129 = arith.select %123, %128, %126 : vector<64x128xi1>, vector<64x128xi32>
        %c0_44 = arith.constant 0 : index
        %c0_45 = arith.constant 0 : index
        %130 = vector.load %arg11[%c0_44, %c0_45] : memref<64x128xi32, #tpu.memory_space<vmem>>, vector<64x128xi32>
        tpu.vector_store %arg11[%c0_44, %c0_45], %129 {strides = array<i32>} : memref<64x128xi32, #tpu.memory_space<vmem>>, vector<64x128xi32>,
      } else {
      }
      %c6_i32 = arith.constant 6 : i32
      %99 = arith.cmpi sge, %c6_i32, %60 : i32
      %100 = arith.cmpi slt, %c6_i32, %67 : i32
      %101 = arith.andi %99, %100 : i1
      %102 = arith.extui %101 : i1 to i32
      %c0_i32_34 = arith.constant 0 : i32
      %103 = arith.cmpi ne, %102, %c0_i32_34 : i32
      scf.if %103 {
        %111 = vector.broadcast %c6_i32 : i32 to vector<64x128xi32>
        %112 = arith.cmpi eq, %45, %111 : vector<64x128xi32>
        %113 = arith.andi %34, %112 : vector<64x128xi1>
        %c0_i32_38 = arith.constant 0 : i32
        %114 = vector.broadcast %c0_i32_38 : i32 to vector<64x128xi32>
        %115 = arith.select %113, %54, %114 : vector<64x128xi1>, vector<64x128xi32>
        %cst_39 = arith.constant dense<0> : vector<64xi32>
        %116 = vector.multi_reduction <add>, %115, %cst_39 [1] : vector<64x128xi32> to vector<64xi32>
        %117 = vector.shape_cast %116 : vector<64xi32> to vector<64x1xi32>
        %118 = vector.broadcast %c6_i32 : i32 to vector<64x128xi32>
        %119 = arith.cmpi eq, %68, %118 : vector<64x128xi32>
        %c0_i32_40 = arith.constant 0 : i32
        %120 = vector.broadcast %c0_i32_40 : i32 to vector<64x1xi32>
        %121 = arith.cmpi sgt, %117, %120 : vector<64x1xi32>
        %122 = vector.broadcast %121 : vector<64x1xi1> to vector<64x128xi1>
        %123 = arith.andi %119, %122 : vector<64x128xi1>
        %c1_i32_41 = arith.constant 1 : i32
        %124 = vector.broadcast %c1_i32_41 : i32 to vector<64x1xi32>
        %125 = arith.subi %117, %124 : vector<64x1xi32>
        %c0_42 = arith.constant 0 : index
        %c0_43 = arith.constant 0 : index
        %126 = vector.load %arg11[%c0_42, %c0_43] : memref<64x128xi32, #tpu.memory_space<vmem>>, vector<64x128xi32>
        %127 = vector.shape_cast %125 : vector<64x1xi32> to vector<64x1xi32>
        %128 = vector.broadcast %127 : vector<64x1xi32> to vector<64x128xi32>
        %129 = arith.select %123, %128, %126 : vector<64x128xi1>, vector<64x128xi32>
        %c0_44 = arith.constant 0 : index
        %c0_45 = arith.constant 0 : index
        %130 = vector.load %arg11[%c0_44, %c0_45] : memref<64x128xi32, #tpu.memory_space<vmem>>, vector<64x128xi32>
        tpu.vector_store %arg11[%c0_44, %c0_45], %129 {strides = array<i32>} : memref<64x128xi32, #tpu.memory_space<vmem>>, vector<64x128xi32>,
      } else {
      }
      %c7_i32 = arith.constant 7 : i32
      %104 = arith.cmpi sge, %c7_i32, %60 : i32
      %105 = arith.cmpi slt, %c7_i32, %67 : i32
      %106 = arith.andi %104, %105 : i1
      %107 = arith.extui %106 : i1 to i32
      %c0_i32_35 = arith.constant 0 : i32
      %108 = arith.cmpi ne, %107, %c0_i32_35 : i32
      scf.if %108 {
        %111 = vector.broadcast %c7_i32 : i32 to vector<64x128xi32>
        %112 = arith.cmpi eq, %45, %111 : vector<64x128xi32>
        %113 = arith.andi %34, %112 : vector<64x128xi1>
        %c0_i32_38 = arith.constant 0 : i32
        %114 = vector.broadcast %c0_i32_38 : i32 to vector<64x128xi32>
        %115 = arith.select %113, %54, %114 : vector<64x128xi1>, vector<64x128xi32>
        %cst_39 = arith.constant dense<0> : vector<64xi32>
        %116 = vector.multi_reduction <add>, %115, %cst_39 [1] : vector<64x128xi32> to vector<64xi32>
        %117 = vector.shape_cast %116 : vector<64xi32> to vector<64x1xi32>
        %118 = vector.broadcast %c7_i32 : i32 to vector<64x128xi32>
        %119 = arith.cmpi eq, %68, %118 : vector<64x128xi32>
        %c0_i32_40 = arith.constant 0 : i32
        %120 = vector.broadcast %c0_i32_40 : i32 to vector<64x1xi32>
        %121 = arith.cmpi sgt, %117, %120 : vector<64x1xi32>
        %122 = vector.broadcast %121 : vector<64x1xi1> to vector<64x128xi1>
        %123 = arith.andi %119, %122 : vector<64x128xi1>
        %c1_i32_41 = arith.constant 1 : i32
        %124 = vector.broadcast %c1_i32_41 : i32 to vector<64x1xi32>
        %125 = arith.subi %117, %124 : vector<64x1xi32>
        %c0_42 = arith.constant 0 : index
        %c0_43 = arith.constant 0 : index
        %126 = vector.load %arg11[%c0_42, %c0_43] : memref<64x128xi32, #tpu.memory_space<vmem>>, vector<64x128xi32>
        %127 = vector.shape_cast %125 : vector<64x1xi32> to vector<64x1xi32>
        %128 = vector.broadcast %127 : vector<64x1xi32> to vector<64x128xi32>
        %129 = arith.select %123, %128, %126 : vector<64x128xi1>, vector<64x128xi32>
        %c0_44 = arith.constant 0 : index
        %c0_45 = arith.constant 0 : index
        %130 = vector.load %arg11[%c0_44, %c0_45] : memref<64x128xi32, #tpu.memory_space<vmem>>, vector<64x128xi32>
        tpu.vector_store %arg11[%c0_44, %c0_45], %129 {strides = array<i32>} : memref<64x128xi32, #tpu.memory_space<vmem>>, vector<64x128xi32>,
      } else {
      }
      %c8_i32 = arith.constant 8 : i32
      %109 = arith.addi %42, %46 : vector<64x1xi32>
      %c0_36 = arith.constant 0 : index
      %c0_37 = arith.constant 0 : index
      %110 = vector.load %arg12[%c0_36, %c0_37] : memref<64x1xi32, #tpu.memory_space<vmem>>, vector<64x1xi32>
      tpu.vector_store %arg12[%c0_36, %c0_37], %109 {strides = array<i32>} : memref<64x1xi32, #tpu.memory_space<vmem>>, vector<64x1xi32>,
    } else {
    }
    return
  }
  func.func @transform_0(%arg0: i32, %arg1: i32, %arg2: memref<1xi32, #tpu.memory_space<smem>>, %arg3: memref<1xi32, #tpu.memory_space<smem>>) -> (i32, i32) {
    %c0_i32 = arith.constant 0 : i32
    %c0_i32_0 = arith.constant 0 : i32
    return %arg0, %c0_i32 : i32, i32
  }
  func.func @transform_1(%arg0: i32, %arg1: i32, %arg2: memref<1xi32, #tpu.memory_space<smem>>, %arg3: memref<1xi32, #tpu.memory_space<smem>>) -> (i32, i32) {
    %c0_i32 = arith.constant 0 : i32
    %c0_i32_0 = arith.constant 0 : i32
    return %arg0, %c0_i32 : i32, i32
  }
  func.func @transform_2(%arg0: i32, %arg1: i32, %arg2: memref<1xi32, #tpu.memory_space<smem>>, %arg3: memref<1xi32, #tpu.memory_space<smem>>) -> (i32, i32) {
    %c0_i32 = arith.constant 0 : i32
    %c0_i32_0 = arith.constant 0 : i32
    return %arg0, %c0_i32 : i32, i32
  }
  func.func @transform_3(%arg0: i32, %arg1: i32, %arg2: memref<1xi32, #tpu.memory_space<smem>>, %arg3: memref<1xi32, #tpu.memory_space<smem>>) -> (i32, i32) {
    %c0_i32 = arith.constant 0 : i32
    %c0_i32_0 = arith.constant 0 : i32
    %c0_i32_1 = arith.constant 0 : i32
    return %c0_i32, %c0_i32_0 : i32, i32
  }
  func.func @transform_4(%arg0: i32, %arg1: i32, %arg2: memref<1xi32, #tpu.memory_space<smem>>, %arg3: memref<1xi32, #tpu.memory_space<smem>>) -> (i32, i32) {
    %0 = arith.index_cast %arg0 : i32 to index
    %1 = memref.load %arg3[%0] : memref<1xi32, #tpu.memory_space<smem>>
    %c1_i32 = arith.constant 1 : i32
    %2 = arith.subi %1, %c1_i32 : i32
    %c0_i32 = arith.constant 0 : i32
    %3 = arith.maxsi %2, %c0_i32 : i32
    %4 = arith.minsi %arg1, %3 : i32
    %5 = arith.index_cast %arg0 : i32 to index
    %6 = memref.load %arg2[%5] : memref<1xi32, #tpu.memory_space<smem>>
    %7 = arith.addi %6, %4 : i32
    %c0_i32_0 = arith.constant 0 : i32
    %8 = arith.minsi %7, %c0_i32_0 : i32
    %c0_i32_1 = arith.constant 0 : i32
    %c0_i32_2 = arith.constant 0 : i32
    return %c0_i32_1, %8 : i32, i32
  }
  func.func @transform_5(%arg0: i32, %arg1: i32, %arg2: memref<1xi32, #tpu.memory_space<smem>>, %arg3: memref<1xi32, #tpu.memory_space<smem>>) -> (i32, i32) {
    %0 = arith.index_cast %arg0 : i32 to index
    %1 = memref.load %arg3[%0] : memref<1xi32, #tpu.memory_space<smem>>
    %c1_i32 = arith.constant 1 : i32
    %2 = arith.subi %1, %c1_i32 : i32
    %c0_i32 = arith.constant 0 : i32
    %3 = arith.maxsi %2, %c0_i32 : i32
    %4 = arith.minsi %arg1, %3 : i32
    %5 = arith.index_cast %arg0 : i32 to index
    %6 = memref.load %arg2[%5] : memref<1xi32, #tpu.memory_space<smem>>
    %7 = arith.addi %6, %4 : i32
    %c0_i32_0 = arith.constant 0 : i32
    %8 = arith.minsi %7, %c0_i32_0 : i32
    %c0_i32_1 = arith.constant 0 : i32
    %c0_i32_2 = arith.constant 0 : i32
    return %c0_i32_1, %8 : i32, i32
  }
  func.func @transform_6(%arg0: i32, %arg1: i32, %arg2: memref<1xi32, #tpu.memory_space<smem>>, %arg3: memref<1xi32, #tpu.memory_space<smem>>) -> (i32, i32) {
    %0 = arith.index_cast %arg0 : i32 to index
    %1 = memref.load %arg3[%0] : memref<1xi32, #tpu.memory_space<smem>>
    %c1_i32 = arith.constant 1 : i32
    %2 = arith.subi %1, %c1_i32 : i32
    %c0_i32 = arith.constant 0 : i32
    %3 = arith.maxsi %2, %c0_i32 : i32
    %4 = arith.minsi %arg1, %3 : i32
    %5 = arith.index_cast %arg0 : i32 to index
    %6 = memref.load %arg2[%5] : memref<1xi32, #tpu.memory_space<smem>>
    %7 = arith.addi %6, %4 : i32
    %c0_i32_0 = arith.constant 0 : i32
    %8 = arith.minsi %7, %c0_i32_0 : i32
    %c0_i32_1 = arith.constant 0 : i32
    %c0_i32_2 = arith.constant 0 : i32
    return %c0_i32_1, %8 : i32, i32
  }
  func.func @transform_7(%arg0: i32, %arg1: i32, %arg2: memref<1xi32, #tpu.memory_space<smem>>, %arg3: memref<1xi32, #tpu.memory_space<smem>>) -> (i32, i32) {
    %c0_i32 = arith.constant 0 : i32
    %c0_i32_0 = arith.constant 0 : i32
    return %arg0, %c0_i32 : i32, i32
  }
}

</mosaic_0001>

<bundles_post_ra>
// kernel: tpu_custom_call.1
= control target key start
LH: loop header
LB: loop body
LE: loop exit
PB: predicated region body
PF: predicated region fallthrough
CT: control target
= control target key end

     0   :  { %s3592_s0 = inlined_call_operand.<no memory space> [shape: s32[1], index: 0, kind: input, shape index: {}]   ;;  %s3593_s1 = inlined_call_operand.<no memory space> [shape: s32[1], index: 1, kind: input, shape index: {}]   ;;  %s3594_s2 = inlined_call_operand.vmem [shape: f32[64,8], index: 2, kind: input, shape index: {}]   ;;  %s3595_s3 = inlined_call_operand.vmem [shape: f32[64,1], index: 3, kind: input, shape index: {}]   ;;  %s3596_s4 = inlined_call_operand.vmem [shape: s32[64,1], index: 4, kind: input, shape index: {}]   ;;  %s3597_s5 = inlined_call_operand.vmem [shape: bf16[128,128], index: 5, kind: input, shape index: {}]   ;;  %s3598_s6 = inlined_call_operand.vmem [shape: f32[8,128], index: 6, kind: input, shape index: {}]   ;;  %s3599_s7 = inlined_call_operand.vmem [shape: f32[1,128], index: 7, kind: input, shape index: {}]   ;;  %s3600_s8 = inlined_call_operand.vmem [shape: s32[1,128], index: 8, kind: input, shape index: {}]   ;;  %s3601_s9 = inlined_call_operand.hbm [shape: s32[64,128], index: 9, kind: output, shape index: {}]  }
   0x1   :  { %14 = sst [smem:[#allocation4]] %s3592_s0 }
   0x2   :  { %16 = vsyncpa [#allocation7], 0  ;;  %s2354_s13 = sadd.s32 4294967295, %s3593_s1  ;;  %s147_s14 = sld [smem:[#allocation4]]  ;;  %vm3602_vm0 = vcmask 7168   ;;  %v2620_v0 = vmov 0  }
   0x3   :  { %p143_p0 = scmp.gt.s32.totalorder %s2354_s13, 0  ;;  %216 = vst.msk [vmem:[#allocation2] sm:$0xff] %vm3602_vm0, %v2620_v0  ;;  %v2621_v2 = vmov 80   ;;  %p2370_p2 = scmp.gt.s32.totalorder %s3593_s1, 0 }
   0x4   :  { %217 = vst.msk [vmem:[#allocation2 + $0x8] sm:$0xff] %vm3602_vm0, %v2620_v0 }
   0x5   :  { %s3647_s13 = smov (!%p143_p0, %s2354_s13), 0  ;;  %218 = vst.msk [vmem:[#allocation2 + $0x10] sm:$0xff] %vm3602_vm0, %v2620_v0 }
   0x6   :  { %s3649_s13 = smov (%p143_p0, %s3647_s13), 0  ;;  %219 = vst.msk [vmem:[#allocation2 + $0x18] sm:$0xff] %vm3602_vm0, %v2620_v0 }
   0x7   :  { %220 = vst.msk [vmem:[#allocation2 + $0x20] sm:$0xff] %vm3602_vm0, %v2620_v0 }
   0x8   :  { %s148_s0 = sadd.s32 %s147_s14, %s3649_s13  ;;  %221 = vst.msk [vmem:[#allocation2 + $0x28] sm:$0xff] %vm3602_vm0, %v2620_v0 }
   0x9   :  { %p149_p1 = scmp.lt.s32.totalorder %s148_s0, 0  ;;  %222 = vst.msk [vmem:[#allocation2 + $0x30] sm:$0xff] %vm3602_vm0, %v2620_v0 }
   0xa   :  { %223 = vst.msk [vmem:[#allocation2 + $0x38] sm:$0xff] %vm3602_vm0, %v2620_v0  ;;  %v234_v1 = vld [vmem:[#allocation2] sm:$0xff] }
   0xb   :  { %s3651_s0 = smov (!%p149_p1, %s148_s0), 0  ;;  %224 = vst [vmem:[#allocation6] sm:$0xff] %v2621_v2  ;;  %v235_v3 = vld [vmem:[#allocation2 + $0x8] sm:$0xff]  ;;  %v242_v4 = vcvt.s32.f32 %v234_v1 }
   0xc   :  { %225 = vst [vmem:[#allocation6 + $0x8] sm:$0xff] %v2621_v2  ;;  %v236_v5 = vld [vmem:[#allocation2 + $0x10] sm:$0xff]  ;;  %v243_v6 = vcvt.s32.f32 %v235_v3  ;;  %s3653_s0 = smov (!%p149_p1, %s3651_s0), 0 }
   0xd   :  { %226 = vst [vmem:[#allocation6 + $0x10] sm:$0xff] %v2621_v2  ;;  %v237_v7 = vld [vmem:[#allocation2 + $0x18] sm:$0xff]  ;;  %v244_v8 = vcvt.s32.f32 %v236_v5  ;;  %s2359_s15 = sshll.u32 %s3653_s0, 3  ;;  %s177_s18 = scalar_lea.vmem %s3599_s7, %s3653_s0  ;;  %v251_v13 = vsel %vm3602_vm0, %v242_v4, inf }
   0xe   :  { %227 = vst [vmem:[#allocation6 + $0x18] sm:$0xff] %v2621_v2  ;;  %v238_v9 = vld [vmem:[#allocation2 + $0x20] sm:$0xff]  ;;  %v245_v10 = vcvt.s32.f32 %v237_v7  ;;  %s2703_s21 = scalar_lea.vmem %s3598_s6, %s2359_s15  ;;  %s200_s24 = scalar_lea.vmem %s3600_s8, %s3653_s0  ;;  %v252_v16 = vsel %vm3602_vm0, %v243_v6, inf }
   0xf   :  { %228 = vst [vmem:[#allocation6 + $0x20] sm:$0xff] %v2621_v2  ;;  %v239_v11 = vld [vmem:[#allocation2 + $0x28] sm:$0xff]  ;;  %v246_v12 = vcvt.s32.f32 %v238_v9  ;;  %v253_v19 = vsel %vm3602_vm0, %v244_v8, inf }
  0x10   :  { %229 = vst [vmem:[#allocation6 + $0x28] sm:$0xff] %v2621_v2  ;;  %v240_v14 = vld [vmem:[#allocation2 + $0x30] sm:$0xff]  ;;  %v247_v15 = vcvt.s32.f32 %v239_v11  ;;  %v254_v22 = vsel %vm3602_vm0, %v245_v10, inf }
  0x11   :  { %230 = vst [vmem:[#allocation6 + $0x30] sm:$0xff] %v2621_v2  ;;  %v241_v17 = vld [vmem:[#allocation2 + $0x38] sm:$0xff]  ;;  %v248_v18 = vcvt.s32.f32 %v240_v14  ;;  %v255_v20 = vsel %vm3602_vm0, %v246_v12, inf }
  0x12   :  { %231 = vst [vmem:[#allocation6 + $0x38] sm:$0xff] %v2621_v2  ;;  %v249_v21 = vcvt.s32.f32 %v241_v17  ;;  %v256_v23 = vmin.f32 %v251_v13, %v255_v20  ;;  %v257_v24 = vsel %vm3602_vm0, %v247_v15, inf }
  0x13   :  { %v258_v25 = vmin.f32 %v252_v16, %v257_v24  ;;  %v259_v26 = vsel %vm3602_vm0, %v248_v18, inf }
  0x14   :  { %v260_v27 = vmin.f32 %v253_v19, %v259_v26  ;;  %v261_v28 = vsel %vm3602_vm0, %v249_v21, inf }
  0x15   :  { %v262_v29 = vmin.f32 %v254_v22, %v261_v28  ;;  %v263_v30 = vmin.f32 %v256_v23, %v258_v25 }
  0x17   :  { %v264_v31 = vmin.f32 %v260_v27, %v262_v29 }
  0x19   :  { %v265_v32 = vmin.f32 %v263_v30, %v264_v31 }
  0x1b   :  { %266 = vmin.xlane.f32.xlu0 %v265_v32 }
  0x8e   :  { %v267_v33 = vpop.xlane.xlu0 %266 }
  0x8f   :  { %v268_v34 = vrot.slane %v267_v33, 4 }
  0x91   :  { %v269_v35 = vmin.f32 %v267_v33, %v268_v34 }
  0x93   :  { %v270_v36 = vrot.slane %v269_v35, 2 }
  0x95   :  { %v271_v37 = vmin.f32 %v269_v35, %v270_v36 }
  0x97   :  { %v272_v38 = vrot.slane %v271_v37, 1 }
  0x99   :  { %v273_v39 = vmin.f32 %v271_v37, %v272_v38 }
  0x9b   :  { %2525 = vpush %v273_v39 }
  0xcc   :  { %s2526_s26 = spop %2525 }
  0xcd   :  { %p275_p3 = scmp.lt.f32.partialorder %s2526_s26, 8.0 }
  0xcf   :  { %p276_p4 = pnand %p2370_p2, %p275_p3 }
  0xd0   :  { %s2624_s7 = smov (!%p276_p4), 1   ;;  %s660_s8 = sld [smem:[#allocation4]] (!%p276_p4) }
  0xd1   :  { %279 = sbr.rel (%p276_p4) target bundleno = 2437 (0x985), region = 37 }
  0xd6   :  { %v288_v40 = vld [vmem:[%s2703_s21] sm:$0xff]  ;;  %vm289_vm1 = vcmask 64512   ;;  %v2622_v43 = vmov 0   ;;  %v357_v45 = vld [vmem:[%s3595_s3 + $0x10] sm:$0xff]  ;;  %v444_v46 = vld [vmem:[%s3596_s4 + $0x28] sm:$0xff]  ;;  %s2427_s0 = sshll.u32 %s660_s8, 7 }
  0xd7   :  { %v443_v41 = vld [vmem:[%s3596_s4 + $0x20] sm:$0xff]  ;;  %2590 = vset.pattern.permute.xlu1 %v2622_v43  ;;  %2589 = vset.pattern.permute.xlu0 %v2622_v43  ;;  %v360_v47 = vld [vmem:[%s3595_s3 + $0x28] sm:$0xff]  ;;  %v358_v49 = vld [vmem:[%s3595_s3 + $0x18] sm:$0xff] }
  0xd8   :  { %v359_v42 = vld [vmem:[%s3595_s3 + $0x20] sm:$0xff]  ;;  %329 = vmatpush.msra.mxu0 %v288_v40  ;;  %461 = vperm.xlu1 %2590, %v443_v41   ;;  %v281_v48 = vld [vmem:[%s3594_s2 + $0x8] sm:$0xff]  ;;  %v362_v50 = vld [vmem:[%s3595_s3 + $0x38] sm:$0xff] }
  0xd9   :  { %v280_v44 = vld [vmem:[%s3594_s2] sm:$0xff]  ;;  %386 = vperm.xlu0 %2589, %v359_v42   ;;  %2591 = vset.pattern.permute.xlu2 %v2622_v43  ;;  %v361_v51 = vld [vmem:[%s3595_s3 + $0x30] sm:$0xff]  ;;  %v442_v55 = vld [vmem:[%s3596_s4 + $0x18] sm:$0xff] }
  0xda   :  { %2371 = vmatmul.msk.f32.vlgmr.msra.gmra.mxu0 %vm289_vm1, %v280_v44  ;;  %376 = vperm.xlu2 %2591, %v357_v45   ;;  %v282_v52 = vld [vmem:[%s3594_s2 + $0x10] sm:$0xff]  ;;  %v283_v56 = vld [vmem:[%s3594_s2 + $0x18] sm:$0xff]  ;;  %v356_v58 = vld [vmem:[%s3595_s3 + $0x8] sm:$0xff] }
  0xdb   :  { %v441_v53 = vld [vmem:[%s3596_s4 + $0x10] sm:$0xff]  ;;  %v446_v57 = vld [vmem:[%s3596_s4 + $0x38] sm:$0xff]  ;;  %v355_v59 = vld [vmem:[%s3595_s3] sm:$0xff] }
  0xdc   :  { %v445_v54 = vld [vmem:[%s3596_s4 + $0x30] sm:$0xff]  ;;  %v284_v60 = vld [vmem:[%s3594_s2 + $0x20] sm:$0xff]  ;;  %v440_v62 = vld [vmem:[%s3596_s4 + $0x8] sm:$0xff] }
  0xdd   :  { %v439_v61 = vld [vmem:[%s3596_s4] sm:$0xff]  ;;  %v285_v63 = vld [vmem:[%s3594_s2 + $0x28] sm:$0xff]  ;;  %v286_v0 = vld [vmem:[%s3594_s2 + $0x30] sm:$0xff] }
  0xde   :  { %v287_v1 = vld [vmem:[%s3594_s2 + $0x38] sm:$0xff]  ;;  %v2507_v3 = vld [vmem:[%s3597_s5 + $0x30] sm:$0xff]  ;;  %v2506_v4 = vld [vmem:[%s3597_s5 + $0x28] sm:$0xff] }
  0xdf   :  { %v2508_v2 = vld [vmem:[%s3597_s5 + $0x38] sm:$0xff]  ;;  %v2505_v5 = vld [vmem:[%s3597_s5 + $0x20] sm:$0xff]  ;;  %v2503_v8 = vld [vmem:[%s3597_s5 + $0x10] sm:$0xff] }
  0xe0   :  { %464 = vperm.xlu1 %2590, %v444_v46   ;;  %2509 = vmatpush.bf16.msra.mxu2 %v2508_v2  ;;  %v2504_v6 = vld [vmem:[%s3597_s5 + $0x18] sm:$0xff]  ;;  %v2502_v11 = vld [vmem:[%s3597_s5 + $0x8] sm:$0xff]  ;;  %v2501_v13 = vld [vmem:[%s3597_s5] sm:$0xff] }
  0xe1   :  { %391 = vperm.xlu0 %2589, %v360_v47   ;;  %573 = vmatpush.bf16.msra.mxu1 %v2508_v2  ;;  %v2592_v23 = vld [vmem:[%s177_s18] ss:$0 sm:$0xff]  ;;  %s663_s18 = sadd.s32 1, %s2427_s0 }
  0xe2   :  { %2372 = vmatmul.msk.f32.gmra.mxu0 %vm289_vm1, %v281_v48  ;;  %381 = vperm.xlu2 %2591, %v358_v49   ;;  %v2593_v37 = vld [vmem:[%s200_s24] ss:$0 sm:$0xff] }
  0xe3   :  { %2510 = vmatpush.bf16.msra.mxu3 %v2508_v2 }
  0xe4   :  { %2511 = vmatpush.bf16.msra.mxu2 %v2507_v3 }
  0xe5   :  { %574 = vmatpush.bf16.msra.mxu1 %v2507_v3 }
  0xe7   :  { %2512 = vmatpush.bf16.msra.mxu3 %v2507_v3 }
  0xe8   :  { %401 = vperm.xlu1 %2590, %v362_v50   ;;  %2513 = vmatpush.bf16.msra.mxu2 %v2506_v4  ;;  %v2623_v50 = vmov 1.0|1.0  }
  0xe9   :  { %396 = vperm.xlu0 %2589, %v361_v51   ;;  %575 = vmatpush.bf16.msra.mxu1 %v2506_v4 }
  0xea   :  { %2373 = vmatmul.msk.f32.gmra.mxu0 %vm289_vm1, %v282_v52  ;;  %455 = vperm.xlu2 %2591, %v441_v53  }
  0xeb   :  { %2514 = vmatpush.bf16.msra.mxu3 %v2506_v4  ;;  %v3621_v4 = vmov 0 }
  0xec   :  { %2515 = vmatpush.bf16.msra.mxu2 %v2505_v5 }
  0xed   :  { %576 = vmatpush.bf16.msra.mxu1 %v2505_v5 }
  0xef   :  { %2516 = vmatpush.bf16.msra.mxu3 %v2505_v5 }
  0xf0   :  { %467 = vperm.xlu1 %2590, %v445_v54   ;;  %2517 = vmatpush.bf16.msra.mxu2 %v2504_v6 }
  0xf1   :  { %458 = vperm.xlu0 %2589, %v442_v55   ;;  %577 = vmatpush.bf16.msra.mxu1 %v2504_v6 }
  0xf2   :  { %2374 = vmatmul.msk.f32.gmra.mxu0 %vm289_vm1, %v283_v56  ;;  %470 = vperm.xlu2 %2591, %v446_v57  }
  0xf3   :  { %2518 = vmatpush.bf16.msra.mxu3 %v2504_v6 }
  0xf4   :  { %2519 = vmatpush.bf16.msra.mxu2 %v2503_v8 }
  0xf5   :  { %578 = vmatpush.bf16.msra.mxu1 %v2503_v8 }
  0xf7   :  { %2520 = vmatpush.bf16.msra.mxu3 %v2503_v8 }
  0xf8   :  { %371 = vperm.xlu1 %2590, %v356_v58   ;;  %2521 = vmatpush.bf16.msra.mxu2 %v2502_v11 }
  0xf9   :  { %366 = vperm.xlu0 %2589, %v355_v59   ;;  %579 = vmatpush.bf16.msra.mxu1 %v2502_v11 }
  0xfa   :  { %2375 = vmatmul.msk.f32.gmra.mxu0 %vm289_vm1, %v284_v60  ;;  %449 = vperm.xlu2 %2591, %v439_v61  }
  0xfb   :  { %2522 = vmatpush.bf16.msra.mxu3 %v2502_v11 }
  0xfc   :  { %2523 = vmatpush.bf16.msra.mxu2 %v2501_v13 }
  0xfd   :  { %580 = vmatpush.bf16.msra.mxu1 %v2501_v13 }
  0xff   :  { %2524 = vmatpush.bf16.msra.mxu3 %v2501_v13 }
 0x101   :  { %452 = vperm.xlu0 %2589, %v440_v62  }
 0x102   :  { %2376 = vmatmul.msk.f32.gmra.mxu0 %vm289_vm1, %v285_v63 }
 0x10a   :  { %2377 = vmatmul.msk.f32.gmra.mxu0 %vm289_vm1, %v286_v0 }
 0x112   :  { %2378 = vmatmul.msk.f32.gmra.mxu0 %vm289_vm1, %v287_v1 }
 0x134   :  { %v377_v7 = vpop.permute.xlu2 %376 }
 0x135   :  { %v409_v26 = vadd.f32 %v2592_v23, %v377_v7 }
 0x13c   :  { %v382_v12 = vpop.permute.xlu2 %381 }
 0x13d   :  { %v410_v38 = vadd.f32 %v2592_v23, %v382_v12 }
 0x144   :  { %v456_v18 = vpop.permute.xlu2 %455 }
 0x145   :  { %vm475_vm4 = vcmp.eq.s32.totalorder %v456_v18, %v2593_v37  ;;  %v2940_v18 = vld [vmem:[#allocation2 + $0x28] sm:$0xff] }
 0x14a   :  { %v2821_v9 = vpop.permute.xlu1 %461 }
 0x14b   :  { %v387_v10 = vpop.permute.xlu0 %386 }
 0x14c   :  { %v2840_v24 = vpop.permute.xlu2 %470  ;;  %v411_v52 = vadd.f32 %v2592_v23, %v387_v10 }
 0x152   :  { %v2829_v14 = vpop.permute.xlu1 %464 }
 0x153   :  { %v392_v15 = vpop.permute.xlu0 %391 }
 0x154   :  { %v450_v39 = vpop.permute.xlu2 %449  ;;  %v412_v55 = vadd.f32 %v2592_v23, %v392_v15  ;;  %v2934_v15 = vld [vmem:[#allocation2 + $0x10] sm:$0xff] }
 0x155   :  { %vm473_vm5 = vcmp.eq.s32.totalorder %v450_v39, %v2593_v37 }
 0x157   :  { %v331_v16 = vpop.f32.mrf.mxu0 }
 0x158   :  { %v415_v31 = vmul.f32 2.0, %v331_v16  ;;  %v2936_v16 = vld [vmem:[#allocation2 + $0x18] sm:$0xff] }
 0x15a   :  { %v2831_v17 = vpop.permute.xlu1 %401 }
 0x15b   :  { %v397_v19 = vpop.permute.xlu0 %396  ;;  %v414_v1 = vadd.f32 %v2592_v23, %v2831_v17  ;;  %v2938_v17 = vld [vmem:[#allocation2 + $0x20] sm:$0xff] }
 0x15c   :  { %v413_v62 = vadd.f32 %v2592_v23, %v397_v19  ;;  %v2942_v19 = vld [vmem:[#allocation2 + $0x30] sm:$0xff] }
 0x15f   :  { %v334_v20 = vpop.f32.mrf.mxu0 }
 0x160   :  { %v416_v34 = vmul.f32 2.0, %v334_v20  ;;  %v2944_v20 = vld [vmem:[#allocation2 + $0x38] sm:$0xff] }
 0x162   :  { %v2833_v21 = vpop.permute.xlu1 %467 }
 0x163   :  { %v459_v22 = vpop.permute.xlu0 %458 }
 0x164   :  { %vm476_vm7 = vcmp.eq.s32.totalorder %v459_v22, %v2593_v37 }
 0x167   :  { %v337_v25 = vpop.f32.mrf.mxu0 }
 0x168   :  { %v417_v27 = vmul.f32 2.0, %v337_v25  ;;  %v669_v25 = vcvt.s32.f32 %v2936_v16 }
 0x16a   :  { %v372_v28 = vpop.permute.xlu1 %371  ;;  %v425_v29 = vsub.f32 %v409_v26, %v417_v27  ;;  %v670_v26 = vcvt.s32.f32 %v2938_v17  ;;  %v671_v27 = vcvt.s32.f32 %v2940_v18 }
 0x16b   :  { %v367_v30 = vpop.permute.xlu0 %366  ;;  %v408_v32 = vadd.f32 %v2592_v23, %v372_v28  ;;  %v672_v28 = vcvt.s32.f32 %v2942_v19 }
 0x16c   :  { %v407_v33 = vadd.f32 %v2592_v23, %v367_v30  ;;  %vm433_vm2 = vcmp.lt.f32.partialorder %v425_v29, 0.09  ;;  %v673_v29 = vcvt.s32.f32 %v2944_v20 }
 0x16d   :  { %v424_v41 = vsub.f32 %v408_v32, %v416_v34  ;;  %vm2847_vm6 = vmand %vm433_vm2, %vm475_vm4  ;;  %vm477_vm2 = vcmp.eq.s32.totalorder %v2821_v9, %v2593_v37  ;;  %v678_v34 = vsel %vm3602_vm0, %v670_v26, inf }
 0x16e   :  { %v423_v35 = vsub.f32 %v407_v33, %v415_v31  ;;  %v677_v33 = vsel %vm3602_vm0, %v669_v25, inf }
 0x16f   :  { %v340_v36 = vpop.f32.mrf.mxu0  ;;  %vm432_vm10 = vcmp.lt.f32.partialorder %v424_v41, 0.09 }
 0x170   :  { %v418_v40 = vmul.f32 2.0, %v340_v36  ;;  %vm431_vm3 = vcmp.lt.f32.partialorder %v423_v35, 0.09  ;;  %v680_v35 = vsel %vm3602_vm0, %v671_v27, inf  ;;  %v682_v36 = vsel %vm3602_vm0, %v672_v28, inf }
 0x171   :  { %vm2851_vm9 = vmand %vm431_vm3, %vm473_vm5  ;;  %vm478_vm3 = vcmp.eq.s32.totalorder %v2829_v14, %v2593_v37  ;;  %v2932_v14 = vld [vmem:[#allocation2 + $0x8] sm:$0xff] }
 0x172   :  { %v426_v42 = vsub.f32 %v410_v38, %v418_v40  ;;  %v667_v23 = vcvt.s32.f32 %v2932_v14 }
 0x173   :  { %v453_v45 = vpop.permute.xlu0 %452 }
 0x174   :  { %vm434_vm8 = vcmp.lt.f32.partialorder %v426_v42, 0.09  ;;  %vm474_vm11 = vcmp.eq.s32.totalorder %v453_v45, %v2593_v37  ;;  %v675_v31 = vsel %vm3602_vm0, %v667_v23, inf }
 0x175   :  { %vm2855_vm12 = vmand %vm434_vm8, %vm476_vm7  ;;  %v681_v39 = vmin.f32 %v675_v31, %v680_v35 }
 0x176   :  { %vm2859_vm13 = vmand %vm432_vm10, %vm474_vm11  ;;  %vm479_vm11 = vcmp.eq.s32.totalorder %v2833_v21, %v2593_v37  ;;  %v2946_v21 = vld [vmem:[#allocation2] sm:$0xff] }
 0x177   :  { %v343_v49 = vpop.f32.mrf.mxu0  ;;  %vm2421_vm14 = vmpackc.low %vm2855_vm12, %vm2847_vm6  ;;  %v666_v22 = vcvt.s32.f32 %v2946_v21 }
 0x178   :  { %2422 = vmatmul.msk.bf16.vlgmr.msra.gmra.mxu2 %vm2421_vm14, %v2623_v50  ;;  %vm2419_vm15 = vmpackc.low %vm2859_vm13, %vm2851_vm9  ;;  %v419_v51 = vmul.f32 2.0, %v343_v49  ;;  %vm480_vm14 = vcmp.eq.s32.totalorder %v2840_v24, %v2593_v37  ;;  %v668_v24 = vcvt.s32.f32 %v2934_v15  ;;  %v684_v37 = vsel %vm3602_vm0, %v673_v29, inf }
 0x179   :  { %2420 = vmatmul.msk.bf16.vlgmr.msra.gmra.mxu1 %vm2419_vm15, %v2623_v50  ;;  %v674_v30 = vsel %vm3602_vm0, %v666_v22, inf  ;;  %v685_v41 = vmin.f32 %v677_v33, %v684_v37 }
 0x17a   :  { %v427_v53 = vsub.f32 %v411_v52, %v419_v51  ;;  %v676_v32 = vsel %vm3602_vm0, %v668_v24, inf  ;;  %v679_v38 = vmin.f32 %v674_v30, %v678_v34 }
 0x17b   :  { %v683_v40 = vmin.f32 %v676_v32, %v682_v36 }
 0x17c   :  { %vm435_vm1 = vcmp.lt.f32.partialorder %v427_v53, 0.09  ;;  %v686_v42 = vmin.f32 %v679_v38, %v681_v39 }
 0x17d   :  { %vm2873_vm5 = vmand %vm435_vm1, %vm477_vm2  ;;  %v687_v45 = vmin.f32 %v683_v40, %v685_v41 }
 0x17f   :  { %v346_v54 = vpop.f32.mrf.mxu0  ;;  %v688_v49 = vmin.f32 %v686_v42, %v687_v45 }
 0x180   :  { %v420_v56 = vmul.f32 2.0, %v346_v54 }
 0x182   :  { %v428_v57 = vsub.f32 %v412_v55, %v420_v56 }
 0x184   :  { %vm436_vm4 = vcmp.lt.f32.partialorder %v428_v57, 0.09 }
 0x185   :  { %vm2877_vm7 = vmand %vm436_vm4, %vm478_vm3 }
 0x186   :  { %vm2423_vm8 = vmpackc.low %vm2877_vm7, %vm2873_vm5 }
 0x187   :  { %v349_v60 = vpop.f32.mrf.mxu0  ;;  %2424 = vmatmul.msk.bf16.vlgmr.msra.gmra.mxu3 %vm2423_vm8, %v2623_v50 }
 0x188   :  { %v421_v61 = vmul.f32 2.0, %v349_v60 }
 0x18a   :  { %v429_v63 = vsub.f32 %v413_v62, %v421_v61 }
 0x18c   :  { %vm437_vm10 = vcmp.lt.f32.partialorder %v429_v63, 0.09 }
 0x18d   :  { %vm2888_vm1 = vmand %vm437_vm10, %vm479_vm11 }
 0x18e   :  { %v3622_v4 = vsel %vm2888_vm1, 4294967295, %v3621_v4 }
 0x18f   :  { %v352_v0 = vpop.f32.mrf.mxu0 }
 0x190   :  { %v422_v2 = vmul.f32 2.0, %v352_v0 }
 0x192   :  { %v430_v3 = vsub.f32 %v414_v1, %v422_v2 }
 0x194   :  { %vm438_vm15 = vcmp.lt.f32.partialorder %v430_v3, 0.09  ;;  %v489_v3 = vsel %vm2851_vm9, 1, %v2622_v43 }
 0x195   :  { %vm2892_vm2 = vmand %vm438_vm15, %vm480_vm14 }
 0x196   :  { %vm2425_vm3 = vmpackc.low %vm2892_vm2, %vm2888_vm1 }
 0x197   :  { %2426 = vmatmul.msk.bf16.gmra.mxu3 %vm2425_vm3, %v2623_v50 }
 0x1f6   :  { %v2900_v6 = vpop.f32.mrf.mxu1 }
 0x1f7   :  { %707 = vrot.lane.b32.xlu1 %v2900_v6, %s2624_s7  ;;  %v2528_v53 = vceil.f32 %v2900_v6  ;;  %v2529_v54 = vfloor.f32 %v2900_v6  ;;  %vm2527_vm4 = vcmp.lt.s32.totalorder %v2900_v6, 0 }
 0x1f9   :  { %v2974_v57 = vsel %vm2527_vm4, %v2528_v53, %v2529_v54 }
 0x1fa   :  { %v2531_v61 = vcvt.f32.s32 %v2974_v57 }
 0x1fb   :  { %v2904_v7 = vpop.f32.mrf.mxu2 }
 0x1fc   :  { %711 = vrot.lane.b32.xlu0 %v2904_v7, %s2624_s7  ;;  %v2538_v39 = vceil.f32 %v2904_v7  ;;  %v2539_v40 = vfloor.f32 %v2904_v7  ;;  %vm2537_vm10 = vcmp.lt.s32.totalorder %v2904_v7, 0 }
 0x1fe   :  { %v2908_v8 = vpop.f32.mrf.mxu1  ;;  %v3008_v54 = vsel %vm2537_vm10, %v2538_v39, %v2539_v40 }
 0x1ff   :  { %709 = vrot.lane.b32.xlu2 %v2908_v8, %s2624_s7  ;;  %v2533_v62 = vceil.f32 %v2908_v8  ;;  %v2534_v63 = vfloor.f32 %v2908_v8  ;;  %vm2532_vm8 = vcmp.lt.s32.totalorder %v2908_v8, 0 }
 0x201   :  { %v2987_v32 = vsel %vm2532_vm8, %v2533_v62, %v2534_v63 }
 0x202   :  { %v3607_v38 = vcvt.f32.s32 %v2987_v32 }
 0x203   :  { %v2912_v9 = vpop.f32.mrf.mxu2 }
 0x204   :  { %713 = vrot.lane.b32.xlu1 %v2912_v9, %s2624_s7  ;;  %v2543_v62 = vceil.f32 %v2912_v9  ;;  %v2544_v63 = vfloor.f32 %v2912_v9  ;;  %vm2542_vm11 = vcmp.lt.s32.totalorder %v2912_v9, 0 }
 0x20a   :  { %v2916_v10 = vpop.f32.mrf.mxu3 }
 0x20b   :  { %715 = vrot.lane.b32.xlu2 %v2916_v10, %s2624_s7  ;;  %vm2547_vm14 = vcmp.lt.s32.totalorder %v2916_v10, 0 }
 0x212   :  { %v2920_v11 = vpop.f32.mrf.mxu3 }
 0x213   :  { %717 = vrot.lane.b32.xlu0 %v2920_v11, %s2624_s7  ;;  %vm2552_vm15 = vcmp.lt.s32.totalorder %v2920_v11, 0 }
 0x21a   :  { %v2924_v12 = vpop.f32.mrf.mxu3 }
 0x21b   :  { %719 = vrot.lane.b32.xlu1 %v2924_v12, %s2624_s7  ;;  %vm2557_vm3 = vcmp.lt.s32.totalorder %v2924_v12, 0 }
 0x222   :  { %v2928_v13 = vpop.f32.mrf.mxu3 }
 0x223   :  { %721 = vrot.lane.b32.xlu2 %v2928_v13, %s2624_s7  ;;  %vm2562_vm4 = vcmp.lt.s32.totalorder %v2928_v13, 0 }
 0x22b   :  { %619 = vperm.xlu2 %2591, %v2946_v21  }
 0x233   :  { %622 = vperm.xlu2 %2591, %v2932_v14  }
 0x23b   :  { %625 = vperm.xlu2 %2591, %v2934_v15  }
 0x23d   :  { %689 = vmin.xlane.f32.xlu0 %v688_v49 }
 0x243   :  { %628 = vperm.xlu2 %2591, %v2936_v16  }
 0x24b   :  { %631 = vperm.xlu2 %2591, %v2938_v17  }
 0x251   :  { %637 = vperm.xlu0 %2589, %v2942_v19  }
 0x253   :  { %634 = vperm.xlu2 %2591, %v2940_v18  }
 0x259   :  { %v710_v50 = vpop.permute.xlu2 %709 }
 0x25a   :  { %v732_v31 = vadd.f32 %v710_v50, %v667_v23 }
 0x265   :  { %v716_v51 = vpop.permute.xlu2 %715 }
 0x266   :  { %v735_v35 = vadd.f32 %v716_v51, %v670_v26  ;;  %v490_v26 = vsel %vm2859_vm13, 1, %v2622_v43 }
 0x269   :  { %v708_v52 = vpop.permute.xlu1 %707 }
 0x26a   :  { %v731_v33 = vadd.f32 %v708_v52, %v666_v22 }
 0x26c   :  { %v739_v22 = vsel %vm3602_vm0, %v731_v33, -inf }
 0x26e   :  { %v712_v55 = vpop.permute.xlu0 %711 }
 0x26f   :  { %v733_v36 = vadd.f32 %v712_v55, %v668_v24 }
 0x271   :  { %v741_v49 = vsel %vm3602_vm0, %v733_v36, -inf }
 0x276   :  { %v714_v60 = vpop.permute.xlu1 %713 }
 0x277   :  { %v734_v37 = vadd.f32 %v714_v60, %v669_v25  ;;  %v2541_v60 = vcvt.f32.s32 %v3008_v54 }
 0x279   :  { %v742_v50 = vsel %vm3602_vm0, %v734_v37, -inf  ;;  %v492_v37 = vsel %vm2855_vm12, 1, %v2622_v43 }
 0x27d   :  { %v722_v56 = vpop.permute.xlu2 %721 }
 0x27e   :  { %v738_v34 = vadd.f32 %v722_v56, %v673_v29  ;;  %v743_v29 = vsel %vm3602_vm0, %v735_v35, -inf  ;;  %v2549_v35 = vfloor.f32 %v2916_v10 }
 0x27f   :  { %v744_v52 = vmax.f32 %v739_v22, %v743_v29 }
 0x280   :  { %v749_v23 = vsel %vm3602_vm0, %v738_v34, -inf  ;;  %v2548_v34 = vceil.f32 %v2916_v10  ;;  %v493_v10 = vsel %vm2873_vm5, 1, %v2622_v43 }
 0x282   :  { %v3034_v39 = vsel %vm2547_vm14, %v2548_v34, %v2549_v35  ;;  %v664_v35 = vstv %s663_s18 }
 0x283   :  { %v2551_v40 = vcvt.f32.s32 %v3034_v39 }
 0x285   :  { %v718_v0 = vpop.permute.xlu0 %717  ;;  %v620_v1 = vpop.permute.xlu2 %619 }
 0x286   :  { %v642_v2 = vadd.s32 %v2531_v61, %v620_v1  ;;  %v736_v6 = vadd.f32 %v718_v0, %v671_v27  ;;  %v740_v27 = vsel %vm3602_vm0, %v732_v31, -inf  ;;  %v3021_v31 = vsel %vm2542_vm11, %v2543_v62, %v2544_v63 }
 0x287   :  { %v3608_v33 = vcvt.f32.s32 %v3021_v31 }
 0x288   :  { %v2985_v30 = vsub.s32 %v642_v2, %v489_v3  ;;  %v745_v8 = vsel %vm3602_vm0, %v736_v6, -inf  ;;  %v491_v3 = vsel %vm2847_vm6, 1, %v2622_v43 }
 0x289   :  { %v746_v45 = vmax.f32 %v740_v27, %v745_v8  ;;  %v2553_v27 = vceil.f32 %v2920_v11 }
 0x28b   :  { %v751_v55 = vmax.f32 %v744_v52, %v746_v45  ;;  %v494_v45 = vsel %vm2877_vm7, 1, %v2622_v43 }
 0x28d   :  { %v720_v41 = vpop.permute.xlu1 %719  ;;  %v623_v42 = vpop.permute.xlu2 %622 }
 0x28e   :  { %v737_v24 = vadd.f32 %v720_v41, %v672_v28  ;;  %v643_v25 = vadd.s32 %v3607_v38, %v623_v42  ;;  %v750_v28 = vmax.f32 %v742_v50, %v749_v23  ;;  %v2554_v41 = vfloor.f32 %v2920_v11 }
 0x28f   :  { %v2558_v50 = vceil.f32 %v2924_v12 }
 0x290   :  { %v747_v7 = vsel %vm3602_vm0, %v737_v24, -inf  ;;  %v3006_v51 = vsub.s32 %v643_v25, %v490_v26  ;;  %v3047_v24 = vsel %vm2552_vm15, %v2553_v27, %v2554_v41 }
 0x291   :  { %v748_v53 = vmax.f32 %v741_v49, %v747_v7  ;;  %v3606_v25 = vcvt.f32.s32 %v3047_v24  ;;  %v2559_v7 = vfloor.f32 %v2924_v12 }
 0x293   :  { %v752_v56 = vmax.f32 %v748_v53, %v750_v28  ;;  %v3061_v52 = vsel %vm2557_vm3, %v2558_v50, %v2559_v7 }
 0x294   :  { %v3604_v28 = vcvt.f32.s32 %v3061_v52 }
 0x295   :  { %v626_v0 = vpop.permute.xlu2 %625  ;;  %v753_v1 = vmax.f32 %v751_v55, %v752_v56  ;;  %v495_v56 = vsel %vm2888_vm1, 1, %v2622_v43 }
 0x296   :  { %v644_v2 = vadd.s32 %v2541_v60, %v626_v0 }
 0x297   :  { %754 = vmax.xlane.f32.xlu1 %v753_v1 }
 0x298   :  { %v3019_v6 = vsub.s32 %v644_v2, %v491_v3  ;;  %v658_v3 = vlaneseq }
 0x29d   :  { %v629_v36 = vpop.permute.xlu2 %628 }
 0x29e   :  { %v645_v9 = vadd.s32 %v3608_v33, %v629_v36  ;;  %v3071_v36 = vand.u32 127, %v658_v3 }
 0x2a0   :  { %v3032_v8 = vsub.s32 %v645_v9, %v492_v37  ;;  %v3074_v9 = vadd.s32 %v664_v35, %v3071_v36 }
 0x2a5   :  { %v632_v42 = vpop.permute.xlu2 %631 }
 0x2a6   :  { %v646_v22 = vadd.s32 %v2551_v40, %v632_v42 }
 0x2a8   :  { %v3045_v23 = vsub.s32 %v646_v22, %v493_v10 }
 0x2ad   :  { %v635_v26 = vpop.permute.xlu2 %634 }
 0x2ae   :  { %v647_v29 = vadd.s32 %v3606_v25, %v635_v26 }
 0x2b0   :  { %v3055_v49 = vsub.s32 %v647_v29, %v494_v45  ;;  %640 = vperm.xlu1 %2590, %v2944_v20   ;;  %v690_v11 = vpop.xlane.xlu0 %689  ;;  %v2563_v29 = vceil.f32 %v2928_v13  ;;  %v2564_v45 = vfloor.f32 %v2928_v13 }
 0x2b1   :  { %v691_v63 = vrot.slane %v690_v11, 4 }
 0x2b3   :  { %v692_v0 = vmin.f32 %v690_v11, %v691_v63  ;;  %v3079_v11 = vsel %vm2562_vm4, %v2563_v29, %v2564_v45 }
 0x2b4   :  { %v3605_v50 = vcvt.f32.s32 %v3079_v11 }
 0x2b5   :  { %v693_v1 = vrot.slane %v692_v0, 2 }
 0x2b7   :  { %v694_v12 = vmin.f32 %v692_v0, %v693_v1 }
 0x2b9   :  { %v695_v2 = vrot.slane %v694_v12, 1 }
 0x2bb   :  { %v696_v34 = vmin.f32 %v694_v12, %v695_v2 }
 0x2bd   :  { %2567 = vpush %v696_v34 }
 0x2c3   :  { %v638_v53 = vpop.permute.xlu0 %637 }
 0x2c4   :  { %v648_v55 = vadd.s32 %v3604_v28, %v638_v53 }
 0x2c6   :  { %v3069_v62 = vsub.s32 %v648_v55, %v495_v56  ;;  %v496_v55 = vsel %vm2892_vm2, 1, %v2622_v43 }
 0x2ee   :  { %s2568_s24 = spop %2567 }
 0x2ef   :  { %p2569_p5 = scmp.lt.s32.totalorder %s2568_s24, 0  ;;  %s2570_s28 = sceil.f32 %s2568_s24 }
 0x2f0   :  { %s2571_s3 = sfloor.f32 %s2568_s24 }
 0x2f1   :  { %s3655_s28 = smov (!%p2569_p5, %s2570_s28), %s2571_s3 }
 0x2f2   :  { %s3089_s1 = scvt.f32.s32 %s3655_s28 }
 0x2f4   :  { %p764_p7 = scmp.le.s32.totalorder %s3089_s1, 0 }
 0x30a   :  { %v755_v37 = vpop.xlane.xlu1 %754 }
 0x30b   :  { %v756_v27 = vrot.slane %v755_v37, 4 }
 0x30d   :  { %v757_v41 = vmax.f32 %v755_v37, %v756_v27 }
 0x30f   :  { %v758_v42 = vrot.slane %v757_v41, 2 }
 0x311   :  { %v759_v22 = vmax.f32 %v757_v41, %v758_v42 }
 0x313   :  { %v760_v10 = vrot.slane %v759_v22, 1 }
 0x315   :  { %v761_v26 = vmax.f32 %v759_v22, %v760_v10 }
 0x317   :  { %2574 = vpush %v761_v26 }
 0x322   :  { %v641_v7 = vpop.permute.xlu1 %640 }
 0x323   :  { %v649_v53 = vadd.s32 %v3605_v50, %v641_v7 }
 0x325   :  { %v3087_v56 = vsub.s32 %v649_v53, %v496_v55 }
 0x348   :  { %s2575_s29 = spop %2574 }
 0x349   :  { %p2576_p6 = scmp.lt.s32.totalorder %s2575_s29, 0  ;;  %s2577_s30 = sceil.f32 %s2575_s29 }
 0x34a   :  { %s2578_s4 = sfloor.f32 %s2575_s29 }
 0x34b   :  { %s3657_s30 = smov (!%p2576_p6, %s2577_s30), %s2578_s4 }
 0x34c   :  { %s3091_s10 = scvt.f32.s32 %s3657_s30 }
 0x34e   :  { %p765_p8 = scmp.gt.s32.totalorder %s3091_s10, 0 }
 0x350   :  { %p766_p9 = pnand %p765_p8, %p764_p7 }
 0x352   :  { %769 = sbr.rel (%p766_p9) target bundleno = 1028 (0x404), region = 41 }
 0x357   :  { %vm774_vm8 = vcmp.eq.s32.totalorder %v3045_v23, 0  ;;  %vm772_vm10 = vcmp.eq.s32.totalorder %v3019_v6, 0  ;;  %vm770_vm11 = vcmp.eq.s32.totalorder %v2985_v30, 0  ;;  %vm775_vm15 = vcmp.eq.s32.totalorder %v3055_v49, 0  ;;  %v934_v25 = vld [vmem:[#allocation6 + $0x18] sm:$0xff] }
 0x358   :  { %vm782_vm14 = vmand %vm2873_vm5, %vm774_vm8  ;;  %vm773_vm4 = vcmp.eq.s32.totalorder %v3032_v8, 0  ;;  %vm771_vm1 = vcmp.eq.s32.totalorder %v3006_v51, 0 }
 0x359   :  { %v790_v43 = vsel %vm782_vm14, %v3074_v9, 0  ;;  %vm780_vm3 = vmand %vm2847_vm6, %vm772_vm10  ;;  %vm776_vm14 = vcmp.eq.s32.totalorder %v3069_v62, 0 }
 0x35a   :  { %v843_v13 = vshrl.u32 %v790_v43, 16  ;;  %v788_v63 = vsel %vm780_vm3, %v3074_v9, 0  ;;  %vm778_vm0 = vmand %vm2851_vm9, %vm770_vm11  ;;  %vm3625_vm3 = vnez %v3622_v4 }
 0x35b   :  { %v819_v0 = vshrl.u32 %v788_v63, 16  ;;  %v786_v1 = vsel %vm778_vm0, %v3074_v9, 0  ;;  %vm783_vm8 = vmand %vm2877_vm7, %vm775_vm15  ;;  %vm777_vm0 = vcmp.eq.s32.totalorder %v3087_v56, 0 }
 0x35c   :  { %v845_v12 = vcvt.s32.f32 %v843_v13  ;;  %v795_v2 = vshrl.u32 %v786_v1, 16  ;;  %v791_v3 = vsel %vm783_vm8, %v3074_v9, 0  ;;  %vm781_vm10 = vmand %vm2855_vm12, %vm773_vm4  ;;  %v794_v53 = vand.u32 65535, %v786_v1 }
 0x35d   :  { %v821_v34 = vcvt.s32.f32 %v819_v0  ;;  %v789_v35 = vsel %vm781_vm10, %v3074_v9, 0  ;;  %vm779_vm11 = vmand %vm2859_vm13, %vm771_vm1  ;;  %v855_v27 = vshrl.u32 %v791_v3, 16  ;;  %v854_v1 = vand.u32 65535, %v791_v3 }
 0x35e   :  { %848 = vadd.xlane.f32.xlu2 %v845_v12  ;;  %v797_v37 = vcvt.s32.f32 %v795_v2  ;;  %v787_v41 = vsel %vm779_vm11, %v3074_v9, 0  ;;  %v831_v42 = vshrl.u32 %v789_v35, 16  ;;  %vm785_vm15 = vmand %vm2892_vm2, %vm777_vm0  ;;  %v796_v0 = vcvt.s32.f32 %v794_v53 }
 0x35f   :  { %824 = vadd.xlane.f32.xlu1 %v821_v34  ;;  %v807_v22 = vshrl.u32 %v787_v41, 16  ;;  %v857_v10 = vcvt.s32.f32 %v855_v27  ;;  %vm784_vm1 = vmand %vm3625_vm3, %vm776_vm14  ;;  %v793_v45 = vsel %vm785_vm15, %v3074_v9, 0  ;;  %v830_v34 = vand.u32 65535, %v789_v35 }
 0x360   :  { %800 = vadd.xlane.f32.xlu0 %v797_v37  ;;  %v833_v26 = vcvt.s32.f32 %v831_v42  ;;  %v792_v7 = vsel %vm784_vm1, %v3074_v9, 0  ;;  %v879_v55 = vshrl.u32 %v793_v45, 16  ;;  %v818_v37 = vand.u32 65535, %v788_v63 }
 0x361   :  { %v809_v29 = vcvt.s32.f32 %v807_v22  ;;  %v867_v13 = vshrl.u32 %v792_v7, 16  ;;  %v806_v27 = vand.u32 65535, %v787_v41  ;;  %v832_v42 = vcvt.s32.f32 %v830_v34 }
 0x362   :  { %v881_v12 = vcvt.s32.f32 %v879_v55  ;;  %v820_v22 = vcvt.s32.f32 %v818_v37  ;;  %v866_v50 = vand.u32 65535, %v792_v7  ;;  %v878_v35 = vand.u32 65535, %v793_v45  ;;  %v931_v45 = vld [vmem:[#allocation6] sm:$0xff] }
 0x363   :  { %v869_v2 = vcvt.s32.f32 %v867_v13  ;;  %v808_v28 = vcvt.s32.f32 %v806_v27  ;;  %vm890_vm4 = vcmp.eq.s32.totalorder %v3071_v36, 0 }
 0x364   :  { %v880_v55 = vcvt.s32.f32 %v878_v35 }
 0x366   :  { %860 = vadd.xlane.f32.xlu2 %v857_v10  ;;  %v842_v10 = vand.u32 65535, %v790_v43 }
 0x367   :  { %836 = vadd.xlane.f32.xlu1 %v833_v26  ;;  %v868_v26 = vcvt.s32.f32 %v866_v50 }
 0x368   :  { %812 = vadd.xlane.f32.xlu0 %v809_v29  ;;  %v856_v29 = vcvt.s32.f32 %v854_v1  ;;  %v844_v53 = vcvt.s32.f32 %v842_v10 }
 0x36e   :  { %798 = vadd.xlane.f32.xlu2 %v796_v0 }
 0x36f   :  { %884 = vadd.xlane.f32.xlu1 %v881_v12 }
 0x370   :  { %872 = vadd.xlane.f32.xlu0 %v869_v2 }
 0x376   :  { %834 = vadd.xlane.f32.xlu2 %v832_v42 }
 0x377   :  { %822 = vadd.xlane.f32.xlu1 %v820_v22 }
 0x378   :  { %810 = vadd.xlane.f32.xlu0 %v808_v28 }
 0x37e   :  { %870 = vadd.xlane.f32.xlu2 %v868_v26 }
 0x37f   :  { %858 = vadd.xlane.f32.xlu1 %v856_v29 }
 0x380   :  { %846 = vadd.xlane.f32.xlu0 %v844_v53 }
 0x388   :  { %882 = vadd.xlane.f32.xlu0 %v880_v55 }
 0x3d1   :  { %v3127_v63 = vpop.xlane.xlu2 %848 }
 0x3d2   :  { %v825_v41 = vpop.xlane.xlu1 %824 }
 0x3d3   :  { %v801_v13 = vpop.xlane.xlu0 %800  ;;  %v827_v22 = vcvt.f32.s32 %v825_v41  ;;  %v933_v41 = vld [vmem:[#allocation6 + $0x10] sm:$0xff] }
 0x3d4   :  { %v803_v2 = vcvt.f32.s32 %v801_v13 }
 0x3d5   :  { %v828_v55 = vshll.u32 %v827_v22, 16 }
 0x3d6   :  { %v804_v28 = vshll.u32 %v803_v2, 16 }
 0x3d9   :  { %v861_v0 = vpop.xlane.xlu2 %860 }
 0x3da   :  { %v837_v12 = vpop.xlane.xlu1 %836 }
 0x3db   :  { %v813_v7 = vpop.xlane.xlu0 %812  ;;  %v839_v27 = vcvt.f32.s32 %v837_v12 }
 0x3dc   :  { %v815_v1 = vcvt.f32.s32 %v813_v7  ;;  %v863_v7 = vcvt.f32.s32 %v861_v0 }
 0x3dd   :  { %v840_v29 = vshll.u32 %v839_v27, 16  ;;  %v851_v27 = vcvt.f32.s32 %v3127_v63 }
 0x3e1   :  { %v799_v3 = vpop.xlane.xlu2 %798 }
 0x3e2   :  { %v3129_v43 = vpop.xlane.xlu1 %884  ;;  %v802_v50 = vcvt.f32.s32 %v799_v3  ;;  %v816_v3 = vshll.u32 %v815_v1, 16 }
 0x3e3   :  { %v873_v34 = vpop.xlane.xlu0 %872 }
 0x3e4   :  { %v805_v37 = vadd.s32 %v804_v28, %v802_v50 }
 0x3e6   :  { %vm891_vm8 = vcmp.gt.s32.totalorder %v805_v37, 0  ;;  %v2428_v42 = vadd.s32 4294967295, %v805_v37  ;;  %v875_v37 = vcvt.f32.s32 %v873_v34 }
 0x3e7   :  { %vm915_vm10 = vmand %vm890_vm4, %vm891_vm8 }
 0x3e8   :  { %v939_v10 = vsel %vm915_vm10, %v2428_v42, %v931_v45  ;;  %v932_v42 = vld [vmem:[#allocation6 + $0x8] sm:$0xff] }
 0x3e9   :  { %947 = vst [vmem:[#allocation6] sm:$0xff] %v939_v10  ;;  %v835_v26 = vpop.xlane.xlu2 %834  ;;  %v876_v10 = vshll.u32 %v875_v37, 16  ;;  %v935_v37 = vld [vmem:[#allocation6 + $0x20] sm:$0xff] }
 0x3ea   :  { %v823_v53 = vpop.xlane.xlu1 %822  ;;  %v838_v35 = vcvt.f32.s32 %v835_v26 }
 0x3eb   :  { %v826_v13 = vcvt.f32.s32 %v823_v53  ;;  %v811_v2 = vpop.xlane.xlu0 %810 }
 0x3ec   :  { %v814_v28 = vcvt.f32.s32 %v811_v2  ;;  %v841_v50 = vadd.s32 %v840_v29, %v838_v35  ;;  %v864_v35 = vshll.u32 %v863_v7, 16 }
 0x3ed   :  { %v829_v12 = vadd.s32 %v828_v55, %v826_v13  ;;  %v852_v13 = vshll.u32 %v851_v27, 16 }
 0x3ee   :  { %v817_v38 = vadd.s32 %v816_v3, %v814_v28  ;;  %vm894_vm11 = vcmp.gt.s32.totalorder %v841_v50, 0  ;;  %v2431_v33 = vadd.s32 4294967295, %v841_v50 }
 0x3ef   :  { %vm893_vm0 = vcmp.gt.s32.totalorder %v829_v12, 0  ;;  %v2430_v45 = vadd.s32 4294967295, %v829_v12  ;;  %vm918_vm14 = vmand %vm890_vm4, %vm894_vm11 }
 0x3f0   :  { %vm917_vm15 = vmand %vm890_vm4, %vm893_vm0  ;;  %vm892_vm3 = vcmp.gt.s32.totalorder %v817_v38, 0  ;;  %v2429_v22 = vadd.s32 4294967295, %v817_v38  ;;  %v942_v1 = vsel %vm918_vm14, %v2431_v33, %v934_v25  ;;  %v937_v33 = vld [vmem:[#allocation6 + $0x30] sm:$0xff]  ;;  %v936_v25 = vld [vmem:[#allocation6 + $0x28] sm:$0xff] }
 0x3f1   :  { %v941_v34 = vsel %vm917_vm15, %v2430_v45, %v933_v41  ;;  %vm916_vm1 = vmand %vm890_vm4, %vm892_vm3  ;;  %950 = vst [vmem:[#allocation6 + $0x18] sm:$0xff] %v942_v1  ;;  %v871_v0 = vpop.xlane.xlu2 %870  ;;  %v887_v41 = vcvt.f32.s32 %v3129_v43 }
 0x3f2   :  { %949 = vst [vmem:[#allocation6 + $0x10] sm:$0xff] %v941_v34  ;;  %v940_v26 = vsel %vm916_vm1, %v2429_v22, %v932_v42  ;;  %v859_v29 = vpop.xlane.xlu1 %858  ;;  %v874_v53 = vcvt.f32.s32 %v871_v0 }
 0x3f3   :  { %948 = vst [vmem:[#allocation6 + $0x8] sm:$0xff] %v940_v26  ;;  %v862_v63 = vcvt.f32.s32 %v859_v29  ;;  %v847_v55 = vpop.xlane.xlu0 %846  ;;  %v888_v1 = vshll.u32 %v887_v41, 16 }
 0x3f4   :  { %v850_v2 = vcvt.f32.s32 %v847_v55  ;;  %v877_v3 = vadd.s32 %v876_v10, %v874_v53  ;;  %v938_v10 = vld [vmem:[#allocation6 + $0x38] sm:$0xff] }
 0x3f5   :  { %v865_v38 = vadd.s32 %v864_v35, %v862_v63 }
 0x3f6   :  { %v853_v28 = vadd.s32 %v852_v13, %v850_v2  ;;  %vm897_vm8 = vcmp.gt.s32.totalorder %v877_v3, 0  ;;  %v2434_v50 = vadd.s32 4294967295, %v877_v3 }
 0x3f7   :  { %vm896_vm10 = vcmp.gt.s32.totalorder %v865_v38, 0  ;;  %v2433_v12 = vadd.s32 4294967295, %v865_v38  ;;  %vm921_vm11 = vmand %vm890_vm4, %vm897_vm8 }
 0x3f8   :  { %vm920_vm0 = vmand %vm890_vm4, %vm896_vm10  ;;  %vm895_vm14 = vcmp.gt.s32.totalorder %v853_v28, 0  ;;  %v2432_v7 = vadd.s32 4294967295, %v853_v28  ;;  %v945_v45 = vsel %vm921_vm11, %v2434_v50, %v937_v33 }
 0x3f9   :  { %v944_v42 = vsel %vm920_vm0, %v2433_v12, %v936_v25  ;;  %vm919_vm15 = vmand %vm890_vm4, %vm895_vm14  ;;  %953 = vst [vmem:[#allocation6 + $0x30] sm:$0xff] %v945_v45 }
 0x3fa   :  { %952 = vst [vmem:[#allocation6 + $0x28] sm:$0xff] %v944_v42  ;;  %v943_v27 = vsel %vm919_vm15, %v2432_v7, %v935_v37 }
 0x3fb   :  { %951 = vst [vmem:[#allocation6 + $0x20] sm:$0xff] %v943_v27  ;;  %v883_v22 = vpop.xlane.xlu0 %882 }
 0x3fc   :  { %v886_v34 = vcvt.f32.s32 %v883_v22 }
 0x3fe   :  { %v889_v0 = vadd.s32 %v888_v1, %v886_v34 }
 0x400   :  { %vm898_vm3 = vcmp.gt.s32.totalorder %v889_v0, 0  ;;  %v2435_v43 = vadd.s32 4294967295, %v889_v0 }
 0x401   :  { %vm922_vm1 = vmand %vm890_vm4, %vm898_vm3 }
 0x402   :  { %v946_v26 = vsel %vm922_vm1, %v2435_v43, %v938_v10 }
 0x403   :  { %954 = vst [vmem:[#allocation6 + $0x38] sm:$0xff] %v946_v26 }
 0x404 PF:  { %p955_p10 = scmp.le.s32.totalorder %s3089_s1, 1  ;;  %p956_p11 = scmp.gt.s32.totalorder %s3091_s10, 1 }
 0x406   :  { %p957_p12 = pnand %p956_p11, %p955_p10 }
 0x408   :  { %960 = sbr.rel (%p957_p12) target bundleno = 1210 (0x4ba), region = 45 }
 0x40d   :  { %vm965_vm8 = vcmp.eq.s32.totalorder %v3045_v23, 1  ;;  %vm963_vm10 = vcmp.eq.s32.totalorder %v3019_v6, 1  ;;  %vm961_vm11 = vcmp.eq.s32.totalorder %v2985_v30, 1  ;;  %vm966_vm4 = vcmp.eq.s32.totalorder %v3055_v49, 1 }
 0x40e   :  { %vm973_vm0 = vmand %vm2873_vm5, %vm965_vm8  ;;  %vm964_vm15 = vcmp.eq.s32.totalorder %v3032_v8, 1  ;;  %vm962_vm1 = vcmp.eq.s32.totalorder %v3006_v51, 1 }
 0x40f   :  { %v981_v29 = vsel %vm973_vm0, %v3074_v9, 0  ;;  %vm971_vm14 = vmand %vm2847_vm6, %vm963_vm10  ;;  %vm968_vm0 = vcmp.eq.s32.totalorder %v3087_v56, 1 }
 0x410   :  { %v1034_v53 = vshrl.u32 %v981_v29, 16  ;;  %v979_v35 = vsel %vm971_vm14, %v3074_v9, 0  ;;  %vm969_vm3 = vmand %vm2851_vm9, %vm961_vm11 }
 0x411   :  { %v1010_v63 = vshrl.u32 %v979_v35, 16  ;;  %v977_v55 = vsel %vm969_vm3, %v3074_v9, 0  ;;  %vm974_vm8 = vmand %vm2877_vm7, %vm966_vm4  ;;  %vm967_vm4 = vcmp.eq.s32.totalorder %v3069_v62, 1 }
 0x412   :  { %v1036_v13 = vcvt.s32.f32 %v1034_v53  ;;  %v986_v2 = vshrl.u32 %v977_v55, 16  ;;  %v982_v3 = vsel %vm974_vm8, %v3074_v9, 0  ;;  %vm972_vm10 = vmand %vm2855_vm12, %vm964_vm15  ;;  %vm3626_vm15 = vnez %v3622_v4 }
 0x413   :  { %v1012_v38 = vcvt.s32.f32 %v1010_v63  ;;  %v980_v33 = vsel %vm972_vm10, %v3074_v9, 0  ;;  %vm970_vm11 = vmand %vm2859_vm13, %vm962_vm1  ;;  %v1046_v28 = vshrl.u32 %v982_v3, 16  ;;  %v985_v22 = vand.u32 65535, %v977_v55 }
 0x414   :  { %1039 = vadd.xlane.f32.xlu2 %v1036_v13  ;;  %v988_v25 = vcvt.s32.f32 %v986_v2  ;;  %v978_v50 = vsel %vm970_vm11, %v3074_v9, 0  ;;  %v1022_v12 = vshrl.u32 %v980_v33, 16  ;;  %vm976_vm14 = vmand %vm2892_vm2, %vm968_vm0  ;;  %v1021_v26 = vand.u32 65535, %v980_v33 }
 0x415   :  { %1015 = vadd.xlane.f32.xlu1 %v1012_v38  ;;  %v998_v37 = vshrl.u32 %v978_v50, 16  ;;  %v1048_v41 = vcvt.s32.f32 %v1046_v28  ;;  %vm975_vm3 = vmand %vm3626_vm15, %vm967_vm4  ;;  %v984_v42 = vsel %vm976_vm14, %v3074_v9, 0  ;;  %v987_v0 = vcvt.s32.f32 %v985_v22 }
 0x416   :  { %991 = vadd.xlane.f32.xlu0 %v988_v25  ;;  %v1024_v7 = vcvt.s32.f32 %v1022_v12  ;;  %v983_v27 = vsel %vm975_vm3, %v3074_v9, 0  ;;  %v1070_v1 = vshrl.u32 %v984_v42, 16  ;;  %v1009_v53 = vand.u32 65535, %v979_v35 }
 0x417   :  { %v1000_v45 = vcvt.s32.f32 %v998_v37  ;;  %v1058_v34 = vshrl.u32 %v983_v27, 16  ;;  %v997_v63 = vand.u32 65535, %v978_v50  ;;  %v1023_v13 = vcvt.s32.f32 %v1021_v26 }
 0x418   :  { %v1072_v10 = vcvt.s32.f32 %v1070_v1  ;;  %v1011_v2 = vcvt.s32.f32 %v1009_v53  ;;  %v1057_v25 = vand.u32 65535, %v983_v27  ;;  %v1045_v55 = vand.u32 65535, %v982_v3 }
 0x419   :  { %v1060_v43 = vcvt.s32.f32 %v1058_v34  ;;  %v999_v38 = vcvt.s32.f32 %v997_v63  ;;  %v1033_v28 = vand.u32 65535, %v981_v29  ;;  %v1069_v33 = vand.u32 65535, %v984_v42  ;;  %v1122_v42 = vld [vmem:[#allocation6] sm:$0xff] }
 0x41a   :  { %v1059_v12 = vcvt.s32.f32 %v1057_v25  ;;  %v1047_v37 = vcvt.s32.f32 %v1045_v55  ;;  %vm1081_vm1 = vcmp.eq.s32.totalorder %v3071_v36, 1 }
 0x41c   :  { %1051 = vadd.xlane.f32.xlu2 %v1048_v41  ;;  %v1035_v41 = vcvt.s32.f32 %v1033_v28 }
 0x41d   :  { %1027 = vadd.xlane.f32.xlu1 %v1024_v7  ;;  %v1071_v7 = vcvt.s32.f32 %v1069_v33 }
 0x41e   :  { %1003 = vadd.xlane.f32.xlu0 %v1000_v45 }
 0x424   :  { %989 = vadd.xlane.f32.xlu2 %v987_v0 }
 0x425   :  { %1075 = vadd.xlane.f32.xlu1 %v1072_v10 }
 0x426   :  { %1063 = vadd.xlane.f32.xlu0 %v1060_v43 }
 0x42c   :  { %1025 = vadd.xlane.f32.xlu2 %v1023_v13 }
 0x42d   :  { %1013 = vadd.xlane.f32.xlu1 %v1011_v2 }
 0x42e   :  { %1001 = vadd.xlane.f32.xlu0 %v999_v38 }
 0x434   :  { %1061 = vadd.xlane.f32.xlu2 %v1059_v12 }
 0x435   :  { %1049 = vadd.xlane.f32.xlu1 %v1047_v37 }
 0x436   :  { %1037 = vadd.xlane.f32.xlu0 %v1035_v41 }
 0x43e   :  { %1073 = vadd.xlane.f32.xlu0 %v1071_v7 }
 0x487   :  { %v3184_v35 = vpop.xlane.xlu2 %1039 }
 0x488   :  { %v1016_v50 = vpop.xlane.xlu1 %1015 }
 0x489   :  { %v992_v45 = vpop.xlane.xlu0 %991  ;;  %v1018_v13 = vcvt.f32.s32 %v1016_v50  ;;  %v1124_v50 = vld [vmem:[#allocation6 + $0x10] sm:$0xff] }
 0x48a   :  { %v994_v34 = vcvt.f32.s32 %v992_v45 }
 0x48b   :  { %v1019_v37 = vshll.u32 %v1018_v13, 16 }
 0x48c   :  { %v995_v0 = vshll.u32 %v994_v34, 16 }
 0x48f   :  { %v1052_v22 = vpop.xlane.xlu2 %1051 }
 0x490   :  { %v1028_v1 = vpop.xlane.xlu1 %1027 }
 0x491   :  { %v1004_v27 = vpop.xlane.xlu0 %1003  ;;  %v1030_v53 = vcvt.f32.s32 %v1028_v1 }
 0x492   :  { %v1006_v2 = vcvt.f32.s32 %v1004_v27  ;;  %v1054_v27 = vcvt.f32.s32 %v1052_v22 }
 0x493   :  { %v1031_v55 = vshll.u32 %v1030_v53, 16  ;;  %v1042_v53 = vcvt.f32.s32 %v3184_v35 }
 0x494   :  { %v1007_v7 = vshll.u32 %v1006_v2, 16 }
 0x497   :  { %v990_v3 = vpop.xlane.xlu2 %989 }
 0x498   :  { %v3186_v29 = vpop.xlane.xlu1 %1075  ;;  %v993_v10 = vcvt.f32.s32 %v990_v3  ;;  %v1125_v3 = vld [vmem:[#allocation6 + $0x18] sm:$0xff] }
 0x499   :  { %v1064_v43 = vpop.xlane.xlu0 %1063 }
 0x49a   :  { %v996_v26 = vadd.s32 %v995_v0, %v993_v10  ;;  %v1066_v0 = vcvt.f32.s32 %v1064_v43 }
 0x49c   :  { %vm1082_vm8 = vcmp.gt.s32.totalorder %v996_v26, 0  ;;  %v2436_v63 = vadd.s32 4294967295, %v996_v26 }
 0x49d   :  { %vm1106_vm10 = vmand %vm1081_vm1, %vm1082_vm8 }
 0x49e   :  { %v1130_v38 = vsel %vm1106_vm10, %v2436_v63, %v1122_v42  ;;  %v1123_v63 = vld [vmem:[#allocation6 + $0x8] sm:$0xff] }
 0x49f   :  { %1138 = vst [vmem:[#allocation6] sm:$0xff] %v1130_v38  ;;  %v1026_v25 = vpop.xlane.xlu2 %1025  ;;  %v1067_v38 = vshll.u32 %v1066_v0, 16  ;;  %v1126_v0 = vld [vmem:[#allocation6 + $0x20] sm:$0xff] }
 0x4a0   :  { %v1014_v28 = vpop.xlane.xlu1 %1013  ;;  %v1029_v12 = vcvt.f32.s32 %v1026_v25 }
 0x4a1   :  { %v1017_v41 = vcvt.f32.s32 %v1014_v28  ;;  %v1002_v33 = vpop.xlane.xlu0 %1001 }
 0x4a2   :  { %v1005_v45 = vcvt.f32.s32 %v1002_v33  ;;  %v1032_v34 = vadd.s32 %v1031_v55, %v1029_v12  ;;  %v1055_v12 = vshll.u32 %v1054_v27, 16 }
 0x4a3   :  { %v1020_v1 = vadd.s32 %v1019_v37, %v1017_v41  ;;  %v1043_v41 = vshll.u32 %v1042_v53, 16 }
 0x4a4   :  { %v1008_v10 = vadd.s32 %v1007_v7, %v1005_v45  ;;  %vm1085_vm11 = vcmp.gt.s32.totalorder %v1032_v34, 0  ;;  %v2439_v26 = vadd.s32 4294967295, %v1032_v34  ;;  %v1128_v34 = vld [vmem:[#allocation6 + $0x30] sm:$0xff] }
 0x4a5   :  { %vm1084_vm0 = vcmp.gt.s32.totalorder %v1020_v1, 0  ;;  %v2438_v42 = vadd.s32 4294967295, %v1020_v1  ;;  %vm1109_vm4 = vmand %vm1081_vm1, %vm1085_vm11  ;;  %v1127_v1 = vld [vmem:[#allocation6 + $0x28] sm:$0xff] }
 0x4a6   :  { %vm1108_vm14 = vmand %vm1081_vm1, %vm1084_vm0  ;;  %vm1083_vm15 = vcmp.gt.s32.totalorder %v1008_v10, 0  ;;  %v2437_v13 = vadd.s32 4294967295, %v1008_v10  ;;  %v1133_v2 = vsel %vm1109_vm4, %v2439_v26, %v1125_v3  ;;  %v1078_v26 = vcvt.f32.s32 %v3186_v29 }
 0x4a7   :  { %v1132_v43 = vsel %vm1108_vm14, %v2438_v42, %v1124_v50  ;;  %vm1107_vm3 = vmand %vm1081_vm1, %vm1083_vm15  ;;  %1141 = vst [vmem:[#allocation6 + $0x18] sm:$0xff] %v1133_v2  ;;  %v1062_v22 = vpop.xlane.xlu2 %1061 }
 0x4a8   :  { %1140 = vst [vmem:[#allocation6 + $0x10] sm:$0xff] %v1132_v43  ;;  %v1131_v25 = vsel %vm1107_vm3, %v2437_v13, %v1123_v63  ;;  %v1050_v55 = vpop.xlane.xlu1 %1049  ;;  %v1065_v28 = vcvt.f32.s32 %v1062_v22  ;;  %v1079_v2 = vshll.u32 %v1078_v26, 16 }
 0x4a9   :  { %1139 = vst [vmem:[#allocation6 + $0x8] sm:$0xff] %v1131_v25  ;;  %v1053_v35 = vcvt.f32.s32 %v1050_v55  ;;  %v1038_v37 = vpop.xlane.xlu0 %1037 }
 0x4aa   :  { %v1041_v33 = vcvt.f32.s32 %v1038_v37  ;;  %v1068_v7 = vadd.s32 %v1067_v38, %v1065_v28  ;;  %v1129_v38 = vld [vmem:[#allocation6 + $0x38] sm:$0xff] }
 0x4ab   :  { %v1056_v45 = vadd.s32 %v1055_v12, %v1053_v35 }
 0x4ac   :  { %v1044_v3 = vadd.s32 %v1043_v41, %v1041_v33  ;;  %vm1088_vm8 = vcmp.gt.s32.totalorder %v1068_v7, 0  ;;  %v2442_v50 = vadd.s32 4294967295, %v1068_v7 }
 0x4ad   :  { %vm1087_vm10 = vcmp.gt.s32.totalorder %v1056_v45, 0  ;;  %v2441_v10 = vadd.s32 4294967295, %v1056_v45  ;;  %vm1112_vm11 = vmand %vm1081_vm1, %vm1088_vm8 }
 0x4ae   :  { %vm1111_vm0 = vmand %vm1081_vm1, %vm1087_vm10  ;;  %vm1086_vm4 = vcmp.gt.s32.totalorder %v1044_v3, 0  ;;  %v2440_v27 = vadd.s32 4294967295, %v1044_v3  ;;  %v1136_v42 = vsel %vm1112_vm11, %v2442_v50, %v1128_v34 }
 0x4af   :  { %v1135_v63 = vsel %vm1111_vm0, %v2441_v10, %v1127_v1  ;;  %vm1110_vm14 = vmand %vm1081_vm1, %vm1086_vm4  ;;  %1144 = vst [vmem:[#allocation6 + $0x30] sm:$0xff] %v1136_v42 }
 0x4b0   :  { %1143 = vst [vmem:[#allocation6 + $0x28] sm:$0xff] %v1135_v63  ;;  %v1134_v53 = vsel %vm1110_vm14, %v2440_v27, %v1126_v0 }
 0x4b1   :  { %1142 = vst [vmem:[#allocation6 + $0x20] sm:$0xff] %v1134_v53  ;;  %v1074_v13 = vpop.xlane.xlu0 %1073 }
 0x4b2   :  { %v1077_v43 = vcvt.f32.s32 %v1074_v13 }
 0x4b4   :  { %v1080_v22 = vadd.s32 %v1079_v2, %v1077_v43 }
 0x4b6   :  { %vm1089_vm15 = vcmp.gt.s32.totalorder %v1080_v22, 0  ;;  %v2443_v29 = vadd.s32 4294967295, %v1080_v22 }
 0x4b7   :  { %vm1113_vm3 = vmand %vm1081_vm1, %vm1089_vm15 }
 0x4b8   :  { %v1137_v25 = vsel %vm1113_vm3, %v2443_v29, %v1129_v38 }
 0x4b9   :  { %1145 = vst [vmem:[#allocation6 + $0x38] sm:$0xff] %v1137_v25 }
 0x4ba PF:  { %p1146_p13 = scmp.le.s32.totalorder %s3089_s1, 2  ;;  %p1147_p0 = scmp.gt.s32.totalorder %s3091_s10, 2 }
 0x4bc   :  { %p1148_p1 = pnand %p1147_p0, %p1146_p13 }
 0x4be   :  { %1151 = sbr.rel (%p1148_p1) target bundleno = 1392 (0x570), region = 49 }
 0x4c3   :  { %vm1156_vm8 = vcmp.eq.s32.totalorder %v3045_v23, 2  ;;  %vm1154_vm10 = vcmp.eq.s32.totalorder %v3019_v6, 2  ;;  %vm1152_vm11 = vcmp.eq.s32.totalorder %v2985_v30, 2  ;;  %vm1157_vm1 = vcmp.eq.s32.totalorder %v3055_v49, 2 }
 0x4c4   :  { %vm1164_vm0 = vmand %vm2873_vm5, %vm1156_vm8  ;;  %vm1155_vm14 = vcmp.eq.s32.totalorder %v3032_v8, 2  ;;  %vm1153_vm3 = vcmp.eq.s32.totalorder %v3006_v51, 2 }
 0x4c5   :  { %v1172_v55 = vsel %vm1164_vm0, %v3074_v9, 0  ;;  %vm1162_vm4 = vmand %vm2847_vm6, %vm1154_vm10  ;;  %vm1159_vm0 = vcmp.eq.s32.totalorder %v3087_v56, 2 }
 0x4c6   :  { %v1225_v28 = vshrl.u32 %v1172_v55, 16  ;;  %v1170_v12 = vsel %vm1162_vm4, %v3074_v9, 0  ;;  %vm1160_vm15 = vmand %vm2851_vm9, %vm1152_vm11 }
 0x4c7   :  { %v1201_v35 = vshrl.u32 %v1170_v12, 16  ;;  %v1168_v37 = vsel %vm1160_vm15, %v3074_v9, 0  ;;  %vm1165_vm8 = vmand %vm2877_vm7, %vm1157_vm1  ;;  %vm1158_vm1 = vcmp.eq.s32.totalorder %v3069_v62, 2 }
 0x4c8   :  { %v1227_v41 = vcvt.s32.f32 %v1225_v28  ;;  %v1177_v33 = vshrl.u32 %v1168_v37, 16  ;;  %v1173_v7 = vsel %vm1165_vm8, %v3074_v9, 0  ;;  %vm1163_vm10 = vmand %vm2855_vm12, %vm1155_vm14  ;;  %vm3627_vm14 = vnez %v3622_v4 }
 0x4c9   :  { %v1203_v45 = vcvt.s32.f32 %v1201_v35  ;;  %v1171_v34 = vsel %vm1163_vm10, %v3074_v9, 0  ;;  %vm1161_vm11 = vmand %vm2859_vm13, %vm1153_vm3  ;;  %v1237_v3 = vshrl.u32 %v1173_v7, 16  ;;  %v1176_v13 = vand.u32 65535, %v1168_v37 }
 0x4ca   :  { %1230 = vadd.xlane.f32.xlu2 %v1227_v41  ;;  %v1179_v1 = vcvt.s32.f32 %v1177_v33  ;;  %v1169_v50 = vsel %vm1161_vm11, %v3074_v9, 0  ;;  %v1213_v10 = vshrl.u32 %v1171_v34, 16  ;;  %vm1167_vm4 = vmand %vm2892_vm2, %vm1159_vm0  ;;  %v1212_v25 = vand.u32 65535, %v1171_v34 }
 0x4cb   :  { %1206 = vadd.xlane.f32.xlu1 %v1203_v45  ;;  %v1189_v0 = vshrl.u32 %v1169_v50, 16  ;;  %v1239_v26 = vcvt.s32.f32 %v1237_v3  ;;  %vm1166_vm15 = vmand %vm3627_vm14, %vm1158_vm1  ;;  %v1175_v63 = vsel %vm1167_vm4, %v3074_v9, 0  ;;  %v1178_v22 = vcvt.s32.f32 %v1176_v13 }
 0x4cc   :  { %1182 = vadd.xlane.f32.xlu0 %v1179_v1  ;;  %v1215_v27 = vcvt.s32.f32 %v1213_v10  ;;  %v1174_v53 = vsel %vm1166_vm15, %v3074_v9, 0  ;;  %v1261_v2 = vshrl.u32 %v1175_v63, 16  ;;  %v1200_v28 = vand.u32 65535, %v1170_v12 }
 0x4cd   :  { %v1191_v42 = vcvt.s32.f32 %v1189_v0  ;;  %v1249_v43 = vshrl.u32 %v1174_v53, 16  ;;  %v1188_v35 = vand.u32 65535, %v1169_v50  ;;  %v1214_v41 = vcvt.s32.f32 %v1212_v25 }
 0x4ce   :  { %v1263_v38 = vcvt.s32.f32 %v1261_v2  ;;  %v1202_v33 = vcvt.s32.f32 %v1200_v28  ;;  %v1248_v1 = vand.u32 65535, %v1174_v53  ;;  %v1236_v37 = vand.u32 65535, %v1173_v7 }
 0x4cf   :  { %v1251_v29 = vcvt.s32.f32 %v1249_v43  ;;  %v1190_v45 = vcvt.s32.f32 %v1188_v35  ;;  %v1224_v3 = vand.u32 65535, %v1172_v55  ;;  %v1260_v34 = vand.u32 65535, %v1175_v63  ;;  %v1313_v63 = vld [vmem:[#allocation6] sm:$0xff] }
 0x4d0   :  { %v1250_v10 = vcvt.s32.f32 %v1248_v1  ;;  %v1238_v0 = vcvt.s32.f32 %v1236_v37  ;;  %vm1272_vm3 = vcmp.eq.s32.totalorder %v3071_v36, 2 }
 0x4d2   :  { %1242 = vadd.xlane.f32.xlu2 %v1239_v26  ;;  %v1226_v26 = vcvt.s32.f32 %v1224_v3 }
 0x4d3   :  { %1218 = vadd.xlane.f32.xlu1 %v1215_v27  ;;  %v1262_v27 = vcvt.s32.f32 %v1260_v34 }
 0x4d4   :  { %1194 = vadd.xlane.f32.xlu0 %v1191_v42 }
 0x4da   :  { %1180 = vadd.xlane.f32.xlu2 %v1178_v22 }
 0x4db   :  { %1266 = vadd.xlane.f32.xlu1 %v1263_v38 }
 0x4dc   :  { %1254 = vadd.xlane.f32.xlu0 %v1251_v29 }
 0x4e2   :  { %1216 = vadd.xlane.f32.xlu2 %v1214_v41 }
 0x4e3   :  { %1204 = vadd.xlane.f32.xlu1 %v1202_v33 }
 0x4e4   :  { %1192 = vadd.xlane.f32.xlu0 %v1190_v45 }
 0x4ea   :  { %1252 = vadd.xlane.f32.xlu2 %v1250_v10 }
 0x4eb   :  { %1240 = vadd.xlane.f32.xlu1 %v1238_v0 }
 0x4ec   :  { %1228 = vadd.xlane.f32.xlu0 %v1226_v26 }
 0x4f4   :  { %1264 = vadd.xlane.f32.xlu0 %v1262_v27 }
 0x53d   :  { %v3241_v12 = vpop.xlane.xlu2 %1230 }
 0x53e   :  { %v1207_v50 = vpop.xlane.xlu1 %1206 }
 0x53f   :  { %v1183_v42 = vpop.xlane.xlu0 %1182  ;;  %v1209_v41 = vcvt.f32.s32 %v1207_v50  ;;  %v1315_v50 = vld [vmem:[#allocation6 + $0x10] sm:$0xff] }
 0x540   :  { %v1185_v43 = vcvt.f32.s32 %v1183_v42 }
 0x541   :  { %v1210_v0 = vshll.u32 %v1209_v41, 16 }
 0x542   :  { %v1186_v22 = vshll.u32 %v1185_v43, 16 }
 0x545   :  { %v1243_v13 = vpop.xlane.xlu2 %1242 }
 0x546   :  { %v1219_v2 = vpop.xlane.xlu1 %1218 }
 0x547   :  { %v1195_v53 = vpop.xlane.xlu0 %1194  ;;  %v1221_v28 = vcvt.f32.s32 %v1219_v2 }
 0x548   :  { %v1197_v33 = vcvt.f32.s32 %v1195_v53  ;;  %v1245_v53 = vcvt.f32.s32 %v1243_v13 }
 0x549   :  { %v1222_v37 = vshll.u32 %v1221_v28, 16  ;;  %v1233_v28 = vcvt.f32.s32 %v3241_v12 }
 0x54a   :  { %v1198_v27 = vshll.u32 %v1197_v33, 16 }
 0x54d   :  { %v1181_v7 = vpop.xlane.xlu2 %1180 }
 0x54e   :  { %v3243_v55 = vpop.xlane.xlu1 %1266  ;;  %v1184_v38 = vcvt.f32.s32 %v1181_v7  ;;  %v1316_v7 = vld [vmem:[#allocation6 + $0x18] sm:$0xff] }
 0x54f   :  { %v1255_v29 = vpop.xlane.xlu0 %1254 }
 0x550   :  { %v1187_v25 = vadd.s32 %v1186_v22, %v1184_v38  ;;  %v1257_v22 = vcvt.f32.s32 %v1255_v29 }
 0x552   :  { %vm1273_vm8 = vcmp.gt.s32.totalorder %v1187_v25, 0  ;;  %v2444_v35 = vadd.s32 4294967295, %v1187_v25 }
 0x553   :  { %vm1297_vm10 = vmand %vm1272_vm3, %vm1273_vm8 }
 0x554   :  { %v1321_v45 = vsel %vm1297_vm10, %v2444_v35, %v1313_v63  ;;  %v1314_v35 = vld [vmem:[#allocation6 + $0x8] sm:$0xff] }
 0x555   :  { %1329 = vst [vmem:[#allocation6] sm:$0xff] %v1321_v45  ;;  %v1217_v1 = vpop.xlane.xlu2 %1216  ;;  %v1258_v45 = vshll.u32 %v1257_v22, 16  ;;  %v1317_v22 = vld [vmem:[#allocation6 + $0x20] sm:$0xff] }
 0x556   :  { %v1205_v3 = vpop.xlane.xlu1 %1204  ;;  %v1220_v10 = vcvt.f32.s32 %v1217_v1 }
 0x557   :  { %v1208_v26 = vcvt.f32.s32 %v1205_v3  ;;  %v1193_v34 = vpop.xlane.xlu0 %1192 }
 0x558   :  { %v1196_v42 = vcvt.f32.s32 %v1193_v34  ;;  %v1223_v43 = vadd.s32 %v1222_v37, %v1220_v10  ;;  %v1246_v10 = vshll.u32 %v1245_v53, 16 }
 0x559   :  { %v1211_v2 = vadd.s32 %v1210_v0, %v1208_v26  ;;  %v1234_v26 = vshll.u32 %v1233_v28, 16 }
 0x55a   :  { %v1199_v38 = vadd.s32 %v1198_v27, %v1196_v42  ;;  %vm1276_vm11 = vcmp.gt.s32.totalorder %v1223_v43, 0  ;;  %v2447_v25 = vadd.s32 4294967295, %v1223_v43  ;;  %v1319_v43 = vld [vmem:[#allocation6 + $0x30] sm:$0xff] }
 0x55b   :  { %vm1275_vm0 = vcmp.gt.s32.totalorder %v1211_v2, 0  ;;  %v2446_v63 = vadd.s32 4294967295, %v1211_v2  ;;  %vm1300_vm1 = vmand %vm1272_vm3, %vm1276_vm11  ;;  %v1318_v2 = vld [vmem:[#allocation6 + $0x28] sm:$0xff] }
 0x55c   :  { %vm1299_vm4 = vmand %vm1272_vm3, %vm1275_vm0  ;;  %vm1274_vm14 = vcmp.gt.s32.totalorder %v1199_v38, 0  ;;  %v2445_v41 = vadd.s32 4294967295, %v1199_v38  ;;  %v1324_v33 = vsel %vm1300_vm1, %v2447_v25, %v1316_v7  ;;  %v1269_v25 = vcvt.f32.s32 %v3243_v55 }
 0x55d   :  { %v1323_v29 = vsel %vm1299_vm4, %v2446_v63, %v1315_v50  ;;  %vm1298_vm15 = vmand %vm1272_vm3, %vm1274_vm14  ;;  %1332 = vst [vmem:[#allocation6 + $0x18] sm:$0xff] %v1324_v33  ;;  %v1253_v13 = vpop.xlane.xlu2 %1252 }
 0x55e   :  { %1331 = vst [vmem:[#allocation6 + $0x10] sm:$0xff] %v1323_v29  ;;  %v1322_v1 = vsel %vm1298_vm15, %v2445_v41, %v1314_v35  ;;  %v1241_v37 = vpop.xlane.xlu1 %1240  ;;  %v1256_v3 = vcvt.f32.s32 %v1253_v13  ;;  %v1270_v33 = vshll.u32 %v1269_v25, 16 }
 0x55f   :  { %1330 = vst [vmem:[#allocation6 + $0x8] sm:$0xff] %v1322_v1  ;;  %v1244_v12 = vcvt.f32.s32 %v1241_v37  ;;  %v1229_v0 = vpop.xlane.xlu0 %1228 }
 0x560   :  { %v1232_v34 = vcvt.f32.s32 %v1229_v0  ;;  %v1259_v27 = vadd.s32 %v1258_v45, %v1256_v3  ;;  %v1320_v45 = vld [vmem:[#allocation6 + $0x38] sm:$0xff] }
 0x561   :  { %v1247_v42 = vadd.s32 %v1246_v10, %v1244_v12 }
 0x562   :  { %v1235_v7 = vadd.s32 %v1234_v26, %v1232_v34  ;;  %vm1279_vm8 = vcmp.gt.s32.totalorder %v1259_v27, 0  ;;  %v2450_v50 = vadd.s32 4294967295, %v1259_v27 }
 0x563   :  { %vm1278_vm10 = vcmp.gt.s32.totalorder %v1247_v42, 0  ;;  %v2449_v38 = vadd.s32 4294967295, %v1247_v42  ;;  %vm1303_vm11 = vmand %vm1272_vm3, %vm1279_vm8 }
 0x564   :  { %vm1302_vm0 = vmand %vm1272_vm3, %vm1278_vm10  ;;  %vm1277_vm1 = vcmp.gt.s32.totalorder %v1235_v7, 0  ;;  %v2448_v53 = vadd.s32 4294967295, %v1235_v7  ;;  %v1327_v63 = vsel %vm1303_vm11, %v2450_v50, %v1319_v43 }
 0x565   :  { %v1326_v35 = vsel %vm1302_vm0, %v2449_v38, %v1318_v2  ;;  %vm1301_vm4 = vmand %vm1272_vm3, %vm1277_vm1  ;;  %1335 = vst [vmem:[#allocation6 + $0x30] sm:$0xff] %v1327_v63 }
 0x566   :  { %1334 = vst [vmem:[#allocation6 + $0x28] sm:$0xff] %v1326_v35  ;;  %v1325_v28 = vsel %vm1301_vm4, %v2448_v53, %v1317_v22 }
 0x567   :  { %1333 = vst [vmem:[#allocation6 + $0x20] sm:$0xff] %v1325_v28  ;;  %v1265_v41 = vpop.xlane.xlu0 %1264 }
 0x568   :  { %v1268_v29 = vcvt.f32.s32 %v1265_v41 }
 0x56a   :  { %v1271_v13 = vadd.s32 %v1270_v33, %v1268_v29 }
 0x56c   :  { %vm1280_vm14 = vcmp.gt.s32.totalorder %v1271_v13, 0  ;;  %v2451_v55 = vadd.s32 4294967295, %v1271_v13 }
 0x56d   :  { %vm1304_vm15 = vmand %vm1272_vm3, %vm1280_vm14 }
 0x56e   :  { %v1328_v1 = vsel %vm1304_vm15, %v2451_v55, %v1320_v45 }
 0x56f   :  { %1336 = vst [vmem:[#allocation6 + $0x38] sm:$0xff] %v1328_v1 }
 0x570 PF:  { %p1337_p2 = scmp.le.s32.totalorder %s3089_s1, 3  ;;  %p1338_p3 = scmp.gt.s32.totalorder %s3091_s10, 3 }
 0x572   :  { %p1339_p4 = pnand %p1338_p3, %p1337_p2 }
 0x574   :  { %1342 = sbr.rel (%p1339_p4) target bundleno = 1574 (0x626), region = 53 }
 0x579   :  { %vm1347_vm8 = vcmp.eq.s32.totalorder %v3045_v23, 3  ;;  %vm1345_vm10 = vcmp.eq.s32.totalorder %v3019_v6, 3  ;;  %vm1343_vm11 = vcmp.eq.s32.totalorder %v2985_v30, 3  ;;  %vm1348_vm3 = vcmp.eq.s32.totalorder %v3055_v49, 3 }
 0x57a   :  { %vm1355_vm0 = vmand %vm2873_vm5, %vm1347_vm8  ;;  %vm1346_vm4 = vcmp.eq.s32.totalorder %v3032_v8, 3  ;;  %vm1344_vm15 = vcmp.eq.s32.totalorder %v3006_v51, 3 }
 0x57b   :  { %v1363_v37 = vsel %vm1355_vm0, %v3074_v9, 0  ;;  %vm1353_vm1 = vmand %vm2847_vm6, %vm1345_vm10  ;;  %vm1350_vm0 = vcmp.eq.s32.totalorder %v3087_v56, 3 }
 0x57c   :  { %v1416_v3 = vshrl.u32 %v1363_v37, 16  ;;  %v1361_v10 = vsel %vm1353_vm1, %v3074_v9, 0  ;;  %vm1351_vm14 = vmand %vm2851_vm9, %vm1343_vm11 }
 0x57d   :  { %v1392_v12 = vshrl.u32 %v1361_v10, 16  ;;  %v1359_v0 = vsel %vm1351_vm14, %v3074_v9, 0  ;;  %vm1356_vm8 = vmand %vm2877_vm7, %vm1348_vm3  ;;  %vm1349_vm3 = vcmp.eq.s32.totalorder %v3069_v62, 3 }
 0x57e   :  { %v1418_v26 = vcvt.s32.f32 %v1416_v3  ;;  %v1368_v34 = vshrl.u32 %v1359_v0, 16  ;;  %v1364_v27 = vsel %vm1356_vm8, %v3074_v9, 0  ;;  %vm1354_vm10 = vmand %vm2855_vm12, %vm1346_vm4  ;;  %vm3628_vm4 = vnez %v3622_v4 }
 0x57f   :  { %v1394_v42 = vcvt.s32.f32 %v1392_v12  ;;  %v1362_v43 = vsel %vm1354_vm10, %v3074_v9, 0  ;;  %vm1352_vm11 = vmand %vm2859_vm13, %vm1344_vm15  ;;  %v1428_v7 = vshrl.u32 %v1364_v27, 16  ;;  %v1367_v41 = vand.u32 65535, %v1359_v0 }
 0x580   :  { %1421 = vadd.xlane.f32.xlu2 %v1418_v26  ;;  %v1370_v2 = vcvt.s32.f32 %v1368_v34  ;;  %v1360_v50 = vsel %vm1352_vm11, %v3074_v9, 0  ;;  %v1404_v38 = vshrl.u32 %v1362_v43, 16  ;;  %vm1358_vm1 = vmand %vm2892_vm2, %vm1350_vm0  ;;  %v1403_v1 = vand.u32 65535, %v1362_v43 }
 0x581   :  { %1397 = vadd.xlane.f32.xlu1 %v1394_v42  ;;  %v1380_v22 = vshrl.u32 %v1360_v50, 16  ;;  %v1430_v25 = vcvt.s32.f32 %v1428_v7  ;;  %vm1357_vm14 = vmand %vm3628_vm4, %vm1349_vm3  ;;  %v1366_v35 = vsel %vm1358_vm1, %v3074_v9, 0  ;;  %v1369_v13 = vcvt.s32.f32 %v1367_v41 }
 0x582   :  { %1373 = vadd.xlane.f32.xlu0 %v1370_v2  ;;  %v1406_v53 = vcvt.s32.f32 %v1404_v38  ;;  %v1365_v28 = vsel %vm1357_vm14, %v3074_v9, 0  ;;  %v1452_v33 = vshrl.u32 %v1366_v35, 16  ;;  %v1391_v3 = vand.u32 65535, %v1361_v10 }
 0x583   :  { %v1382_v63 = vcvt.s32.f32 %v1380_v22  ;;  %v1440_v29 = vshrl.u32 %v1365_v28, 16  ;;  %v1379_v12 = vand.u32 65535, %v1360_v50  ;;  %v1405_v26 = vcvt.s32.f32 %v1403_v1 }
 0x584   :  { %v1454_v45 = vcvt.s32.f32 %v1452_v33  ;;  %v1393_v34 = vcvt.s32.f32 %v1391_v3  ;;  %v1439_v2 = vand.u32 65535, %v1365_v28  ;;  %v1427_v0 = vand.u32 65535, %v1364_v27 }
 0x585   :  { %v1442_v55 = vcvt.s32.f32 %v1440_v29  ;;  %v1381_v42 = vcvt.s32.f32 %v1379_v12  ;;  %v1415_v7 = vand.u32 65535, %v1363_v37  ;;  %v1451_v43 = vand.u32 65535, %v1366_v35  ;;  %v1504_v35 = vld [vmem:[#allocation6] sm:$0xff] }
 0x586   :  { %v1441_v38 = vcvt.s32.f32 %v1439_v2  ;;  %v1429_v22 = vcvt.s32.f32 %v1427_v0  ;;  %vm1463_vm15 = vcmp.eq.s32.totalorder %v3071_v36, 3 }
 0x588   :  { %1433 = vadd.xlane.f32.xlu2 %v1430_v25  ;;  %v1417_v25 = vcvt.s32.f32 %v1415_v7 }
 0x589   :  { %1409 = vadd.xlane.f32.xlu1 %v1406_v53  ;;  %v1453_v53 = vcvt.s32.f32 %v1451_v43 }
 0x58a   :  { %1385 = vadd.xlane.f32.xlu0 %v1382_v63 }
 0x590   :  { %1371 = vadd.xlane.f32.xlu2 %v1369_v13 }
 0x591   :  { %1457 = vadd.xlane.f32.xlu1 %v1454_v45 }
 0x592   :  { %1445 = vadd.xlane.f32.xlu0 %v1442_v55 }
 0x598   :  { %1407 = vadd.xlane.f32.xlu2 %v1405_v26 }
 0x599   :  { %1395 = vadd.xlane.f32.xlu1 %v1393_v34 }
 0x59a   :  { %1383 = vadd.xlane.f32.xlu0 %v1381_v42 }
 0x5a0   :  { %1443 = vadd.xlane.f32.xlu2 %v1441_v38 }
 0x5a1   :  { %1431 = vadd.xlane.f32.xlu1 %v1429_v22 }
 0x5a2   :  { %1419 = vadd.xlane.f32.xlu0 %v1417_v25 }
 0x5aa   :  { %1455 = vadd.xlane.f32.xlu0 %v1453_v53 }
 0x5f3   :  { %v3298_v10 = vpop.xlane.xlu2 %1421 }
 0x5f4   :  { %v1398_v50 = vpop.xlane.xlu1 %1397 }
 0x5f5   :  { %v1374_v63 = vpop.xlane.xlu0 %1373  ;;  %v1400_v26 = vcvt.f32.s32 %v1398_v50  ;;  %v1506_v50 = vld [vmem:[#allocation6 + $0x10] sm:$0xff] }
 0x5f6   :  { %v1376_v29 = vcvt.f32.s32 %v1374_v63 }
 0x5f7   :  { %v1401_v22 = vshll.u32 %v1400_v26, 16 }
 0x5f8   :  { %v1377_v13 = vshll.u32 %v1376_v29, 16 }
 0x5fb   :  { %v1434_v41 = vpop.xlane.xlu2 %1433 }
 0x5fc   :  { %v1410_v33 = vpop.xlane.xlu1 %1409 }
 0x5fd   :  { %v1386_v28 = vpop.xlane.xlu0 %1385  ;;  %v1412_v3 = vcvt.f32.s32 %v1410_v33 }
 0x5fe   :  { %v1388_v34 = vcvt.f32.s32 %v1386_v28  ;;  %v1436_v28 = vcvt.f32.s32 %v1434_v41 }
 0x5ff   :  { %v1413_v0 = vshll.u32 %v1412_v3, 16  ;;  %v1424_v3 = vcvt.f32.s32 %v3298_v10 }
 0x600   :  { %v1389_v53 = vshll.u32 %v1388_v34, 16 }
 0x603   :  { %v1372_v27 = vpop.xlane.xlu2 %1371 }
 0x604   :  { %v3300_v37 = vpop.xlane.xlu1 %1457  ;;  %v1375_v45 = vcvt.f32.s32 %v1372_v27  ;;  %v1507_v27 = vld [vmem:[#allocation6 + $0x18] sm:$0xff] }
 0x605   :  { %v1446_v55 = vpop.xlane.xlu0 %1445 }
 0x606   :  { %v1378_v1 = vadd.s32 %v1377_v13, %v1375_v45  ;;  %v1448_v13 = vcvt.f32.s32 %v1446_v55 }
 0x608   :  { %vm1464_vm8 = vcmp.gt.s32.totalorder %v1378_v1, 0  ;;  %v2452_v12 = vadd.s32 4294967295, %v1378_v1 }
 0x609   :  { %vm1488_vm10 = vmand %vm1463_vm15, %vm1464_vm8 }
 0x60a   :  { %v1512_v42 = vsel %vm1488_vm10, %v2452_v12, %v1504_v35  ;;  %v1505_v12 = vld [vmem:[#allocation6 + $0x8] sm:$0xff] }
 0x60b   :  { %1520 = vst [vmem:[#allocation6] sm:$0xff] %v1512_v42  ;;  %v1408_v2 = vpop.xlane.xlu2 %1407  ;;  %v1449_v42 = vshll.u32 %v1448_v13, 16  ;;  %v1508_v13 = vld [vmem:[#allocation6 + $0x20] sm:$0xff] }
 0x60c   :  { %v1396_v7 = vpop.xlane.xlu1 %1395  ;;  %v1411_v38 = vcvt.f32.s32 %v1408_v2 }
 0x60d   :  { %v1399_v25 = vcvt.f32.s32 %v1396_v7  ;;  %v1384_v43 = vpop.xlane.xlu0 %1383 }
 0x60e   :  { %v1387_v63 = vcvt.f32.s32 %v1384_v43  ;;  %v1414_v29 = vadd.s32 %v1413_v0, %v1411_v38  ;;  %v1437_v38 = vshll.u32 %v1436_v28, 16 }
 0x60f   :  { %v1402_v33 = vadd.s32 %v1401_v22, %v1399_v25  ;;  %v1425_v25 = vshll.u32 %v1424_v3, 16 }
 0x610   :  { %v1390_v45 = vadd.s32 %v1389_v53, %v1387_v63  ;;  %vm1467_vm11 = vcmp.gt.s32.totalorder %v1414_v29, 0  ;;  %v2455_v1 = vadd.s32 4294967295, %v1414_v29  ;;  %v1510_v29 = vld [vmem:[#allocation6 + $0x30] sm:$0xff] }
 0x611   :  { %vm1466_vm0 = vcmp.gt.s32.totalorder %v1402_v33, 0  ;;  %v2454_v35 = vadd.s32 4294967295, %v1402_v33  ;;  %vm1491_vm3 = vmand %vm1463_vm15, %vm1467_vm11  ;;  %v1509_v33 = vld [vmem:[#allocation6 + $0x28] sm:$0xff] }
 0x612   :  { %vm1490_vm1 = vmand %vm1463_vm15, %vm1466_vm0  ;;  %vm1465_vm4 = vcmp.gt.s32.totalorder %v1390_v45, 0  ;;  %v2453_v26 = vadd.s32 4294967295, %v1390_v45  ;;  %v1515_v34 = vsel %vm1491_vm3, %v2455_v1, %v1507_v27  ;;  %v1460_v1 = vcvt.f32.s32 %v3300_v37 }
 0x613   :  { %v1514_v55 = vsel %vm1490_vm1, %v2454_v35, %v1506_v50  ;;  %vm1489_vm14 = vmand %vm1463_vm15, %vm1465_vm4  ;;  %1523 = vst [vmem:[#allocation6 + $0x18] sm:$0xff] %v1515_v34  ;;  %v1444_v41 = vpop.xlane.xlu2 %1443 }
 0x614   :  { %1522 = vst [vmem:[#allocation6 + $0x10] sm:$0xff] %v1514_v55  ;;  %v1513_v2 = vsel %vm1489_vm14, %v2453_v26, %v1505_v12  ;;  %v1432_v0 = vpop.xlane.xlu1 %1431  ;;  %v1447_v7 = vcvt.f32.s32 %v1444_v41  ;;  %v1461_v34 = vshll.u32 %v1460_v1, 16 }
 0x615   :  { %1521 = vst [vmem:[#allocation6 + $0x8] sm:$0xff] %v1513_v2  ;;  %v1435_v10 = vcvt.f32.s32 %v1432_v0  ;;  %v1420_v22 = vpop.xlane.xlu0 %1419 }
 0x616   :  { %v1423_v43 = vcvt.f32.s32 %v1420_v22  ;;  %v1450_v53 = vadd.s32 %v1449_v42, %v1447_v7  ;;  %v1511_v42 = vld [vmem:[#allocation6 + $0x38] sm:$0xff] }
 0x617   :  { %v1438_v63 = vadd.s32 %v1437_v38, %v1435_v10 }
 0x618   :  { %v1426_v27 = vadd.s32 %v1425_v25, %v1423_v43  ;;  %vm1470_vm8 = vcmp.gt.s32.totalorder %v1450_v53, 0  ;;  %v2458_v50 = vadd.s32 4294967295, %v1450_v53 }
 0x619   :  { %vm1469_vm10 = vcmp.gt.s32.totalorder %v1438_v63, 0  ;;  %v2457_v45 = vadd.s32 4294967295, %v1438_v63  ;;  %vm1494_vm11 = vmand %vm1463_vm15, %vm1470_vm8 }
 0x61a   :  { %vm1493_vm0 = vmand %vm1463_vm15, %vm1469_vm10  ;;  %vm1468_vm3 = vcmp.gt.s32.totalorder %v1426_v27, 0  ;;  %v2456_v28 = vadd.s32 4294967295, %v1426_v27  ;;  %v1518_v35 = vsel %vm1494_vm11, %v2458_v50, %v1510_v29 }
 0x61b   :  { %v1517_v12 = vsel %vm1493_vm0, %v2457_v45, %v1509_v33  ;;  %vm1492_vm1 = vmand %vm1463_vm15, %vm1468_vm3  ;;  %1526 = vst [vmem:[#allocation6 + $0x30] sm:$0xff] %v1518_v35 }
 0x61c   :  { %1525 = vst [vmem:[#allocation6 + $0x28] sm:$0xff] %v1517_v12  ;;  %v1516_v3 = vsel %vm1492_vm1, %v2456_v28, %v1508_v13 }
 0x61d   :  { %1524 = vst [vmem:[#allocation6 + $0x20] sm:$0xff] %v1516_v3  ;;  %v1456_v26 = vpop.xlane.xlu0 %1455 }
 0x61e   :  { %v1459_v55 = vcvt.f32.s32 %v1456_v26 }
 0x620   :  { %v1462_v41 = vadd.s32 %v1461_v34, %v1459_v55 }
 0x622   :  { %vm1471_vm4 = vcmp.gt.s32.totalorder %v1462_v41, 0  ;;  %v2459_v37 = vadd.s32 4294967295, %v1462_v41 }
 0x623   :  { %vm1495_vm14 = vmand %vm1463_vm15, %vm1471_vm4 }
 0x624   :  { %v1519_v2 = vsel %vm1495_vm14, %v2459_v37, %v1511_v42 }
 0x625   :  { %1527 = vst [vmem:[#allocation6 + $0x38] sm:$0xff] %v1519_v2 }
 0x626 PF:  { %p1528_p5 = scmp.le.s32.totalorder %s3089_s1, 4  ;;  %p1529_p6 = scmp.gt.s32.totalorder %s3091_s10, 4 }
 0x628   :  { %p1530_p7 = pnand %p1529_p6, %p1528_p5 }
 0x62a   :  { %1533 = sbr.rel (%p1530_p7) target bundleno = 1756 (0x6dc), region = 57 }
 0x62f   :  { %vm1538_vm8 = vcmp.eq.s32.totalorder %v3045_v23, 4  ;;  %vm1536_vm10 = vcmp.eq.s32.totalorder %v3019_v6, 4  ;;  %vm1534_vm11 = vcmp.eq.s32.totalorder %v2985_v30, 4  ;;  %vm1539_vm15 = vcmp.eq.s32.totalorder %v3055_v49, 4 }
 0x630   :  { %vm1546_vm0 = vmand %vm2873_vm5, %vm1538_vm8  ;;  %vm1537_vm1 = vcmp.eq.s32.totalorder %v3032_v8, 4  ;;  %vm1535_vm14 = vcmp.eq.s32.totalorder %v3006_v51, 4 }
 0x631   :  { %v1554_v0 = vsel %vm1546_vm0, %v3074_v9, 0  ;;  %vm1544_vm3 = vmand %vm2847_vm6, %vm1536_vm10  ;;  %vm1541_vm0 = vcmp.eq.s32.totalorder %v3087_v56, 4 }
 0x632   :  { %v1607_v7 = vshrl.u32 %v1554_v0, 16  ;;  %v1552_v38 = vsel %vm1544_vm3, %v3074_v9, 0  ;;  %vm1542_vm4 = vmand %vm2851_vm9, %vm1534_vm11 }
 0x633   :  { %v1583_v10 = vshrl.u32 %v1552_v38, 16  ;;  %v1550_v22 = vsel %vm1542_vm4, %v3074_v9, 0  ;;  %vm1547_vm8 = vmand %vm2877_vm7, %vm1539_vm15  ;;  %vm1540_vm15 = vcmp.eq.s32.totalorder %v3069_v62, 4 }
 0x634   :  { %v1609_v25 = vcvt.s32.f32 %v1607_v7  ;;  %v1559_v43 = vshrl.u32 %v1550_v22, 16  ;;  %v1555_v53 = vsel %vm1547_vm8, %v3074_v9, 0  ;;  %vm1545_vm10 = vmand %vm2855_vm12, %vm1537_vm1  ;;  %vm3629_vm1 = vnez %v3622_v4 }
 0x635   :  { %v1585_v63 = vcvt.s32.f32 %v1583_v10  ;;  %v1553_v29 = vsel %vm1545_vm10, %v3074_v9, 0  ;;  %vm1543_vm11 = vmand %vm2859_vm13, %vm1535_vm14  ;;  %v1619_v27 = vshrl.u32 %v1555_v53, 16  ;;  %v1558_v26 = vand.u32 65535, %v1550_v22 }
 0x636   :  { %1612 = vadd.xlane.f32.xlu2 %v1609_v25  ;;  %v1561_v33 = vcvt.s32.f32 %v1559_v43  ;;  %v1551_v50 = vsel %vm1543_vm11, %v3074_v9, 0  ;;  %v1595_v45 = vshrl.u32 %v1553_v29, 16  ;;  %vm1549_vm3 = vmand %vm2892_vm2, %vm1541_vm0  ;;  %v1594_v2 = vand.u32 65535, %v1553_v29 }
 0x637   :  { %1588 = vadd.xlane.f32.xlu1 %v1585_v63  ;;  %v1571_v13 = vshrl.u32 %v1551_v50, 16  ;;  %v1621_v1 = vcvt.s32.f32 %v1619_v27  ;;  %vm1548_vm4 = vmand %vm3629_vm1, %vm1540_vm15  ;;  %v1557_v12 = vsel %vm1549_vm3, %v3074_v9, 0  ;;  %v1560_v41 = vcvt.s32.f32 %v1558_v26 }
 0x638   :  { %1564 = vadd.xlane.f32.xlu0 %v1561_v33  ;;  %v1597_v28 = vcvt.s32.f32 %v1595_v45  ;;  %v1556_v3 = vsel %vm1548_vm4, %v3074_v9, 0  ;;  %v1643_v34 = vshrl.u32 %v1557_v12, 16  ;;  %v1582_v7 = vand.u32 65535, %v1552_v38 }
 0x639   :  { %v1573_v35 = vcvt.s32.f32 %v1571_v13  ;;  %v1631_v55 = vshrl.u32 %v1556_v3, 16  ;;  %v1570_v10 = vand.u32 65535, %v1551_v50  ;;  %v1596_v25 = vcvt.s32.f32 %v1594_v2 }
 0x63a   :  { %v1645_v42 = vcvt.s32.f32 %v1643_v34  ;;  %v1584_v43 = vcvt.s32.f32 %v1582_v7  ;;  %v1630_v33 = vand.u32 65535, %v1556_v3  ;;  %v1618_v22 = vand.u32 65535, %v1555_v53 }
 0x63b   :  { %v1633_v37 = vcvt.s32.f32 %v1631_v55  ;;  %v1572_v63 = vcvt.s32.f32 %v1570_v10  ;;  %v1606_v27 = vand.u32 65535, %v1554_v0  ;;  %v1642_v29 = vand.u32 65535, %v1557_v12  ;;  %v1695_v12 = vld [vmem:[#allocation6] sm:$0xff] }
 0x63c   :  { %v1632_v45 = vcvt.s32.f32 %v1630_v33  ;;  %v1620_v13 = vcvt.s32.f32 %v1618_v22  ;;  %vm1654_vm14 = vcmp.eq.s32.totalorder %v3071_v36, 4 }
 0x63e   :  { %1624 = vadd.xlane.f32.xlu2 %v1621_v1  ;;  %v1608_v1 = vcvt.s32.f32 %v1606_v27 }
 0x63f   :  { %1600 = vadd.xlane.f32.xlu1 %v1597_v28  ;;  %v1644_v28 = vcvt.s32.f32 %v1642_v29 }
 0x640   :  { %1576 = vadd.xlane.f32.xlu0 %v1573_v35 }
 0x646   :  { %1562 = vadd.xlane.f32.xlu2 %v1560_v41 }
 0x647   :  { %1648 = vadd.xlane.f32.xlu1 %v1645_v42 }
 0x648   :  { %1636 = vadd.xlane.f32.xlu0 %v1633_v37 }
 0x64e   :  { %1598 = vadd.xlane.f32.xlu2 %v1596_v25 }
 0x64f   :  { %1586 = vadd.xlane.f32.xlu1 %v1584_v43 }
 0x650   :  { %1574 = vadd.xlane.f32.xlu0 %v1572_v63 }
 0x656   :  { %1634 = vadd.xlane.f32.xlu2 %v1632_v45 }
 0x657   :  { %1622 = vadd.xlane.f32.xlu1 %v1620_v13 }
 0x658   :  { %1610 = vadd.xlane.f32.xlu0 %v1608_v1 }
 0x660   :  { %1646 = vadd.xlane.f32.xlu0 %v1644_v28 }
 0x6a9   :  { %v3355_v38 = vpop.xlane.xlu2 %1612 }
 0x6aa   :  { %v1589_v50 = vpop.xlane.xlu1 %1588 }
 0x6ab   :  { %v1565_v35 = vpop.xlane.xlu0 %1564  ;;  %v1591_v25 = vcvt.f32.s32 %v1589_v50  ;;  %v1697_v50 = vld [vmem:[#allocation6 + $0x10] sm:$0xff] }
 0x6ac   :  { %v1567_v55 = vcvt.f32.s32 %v1565_v35 }
 0x6ad   :  { %v1592_v13 = vshll.u32 %v1591_v25, 16 }
 0x6ae   :  { %v1568_v41 = vshll.u32 %v1567_v55, 16 }
 0x6b1   :  { %v1625_v26 = vpop.xlane.xlu2 %1624 }
 0x6b2   :  { %v1601_v34 = vpop.xlane.xlu1 %1600 }
 0x6b3   :  { %v1577_v3 = vpop.xlane.xlu0 %1576  ;;  %v1603_v7 = vcvt.f32.s32 %v1601_v34 }
 0x6b4   :  { %v1579_v43 = vcvt.f32.s32 %v1577_v3  ;;  %v1627_v3 = vcvt.f32.s32 %v1625_v26 }
 0x6b5   :  { %v1604_v22 = vshll.u32 %v1603_v7, 16  ;;  %v1615_v7 = vcvt.f32.s32 %v3355_v38 }
 0x6b6   :  { %v1580_v28 = vshll.u32 %v1579_v43, 16 }
 0x6b9   :  { %v1563_v53 = vpop.xlane.xlu2 %1562 }
 0x6ba   :  { %v3357_v0 = vpop.xlane.xlu1 %1648  ;;  %v1566_v42 = vcvt.f32.s32 %v1563_v53  ;;  %v1698_v53 = vld [vmem:[#allocation6 + $0x18] sm:$0xff] }
 0x6bb   :  { %v1637_v37 = vpop.xlane.xlu0 %1636 }
 0x6bc   :  { %v1569_v2 = vadd.s32 %v1568_v41, %v1566_v42  ;;  %v1639_v41 = vcvt.f32.s32 %v1637_v37 }
 0x6be   :  { %vm1655_vm8 = vcmp.gt.s32.totalorder %v1569_v2, 0  ;;  %v2460_v10 = vadd.s32 4294967295, %v1569_v2 }
 0x6bf   :  { %vm1679_vm10 = vmand %vm1654_vm14, %vm1655_vm8 }
 0x6c0   :  { %v1703_v63 = vsel %vm1679_vm10, %v2460_v10, %v1695_v12  ;;  %v1696_v10 = vld [vmem:[#allocation6 + $0x8] sm:$0xff] }
 0x6c1   :  { %1711 = vst [vmem:[#allocation6] sm:$0xff] %v1703_v63  ;;  %v1599_v33 = vpop.xlane.xlu2 %1598  ;;  %v1640_v63 = vshll.u32 %v1639_v41, 16  ;;  %v1699_v41 = vld [vmem:[#allocation6 + $0x20] sm:$0xff] }
 0x6c2   :  { %v1587_v27 = vpop.xlane.xlu1 %1586  ;;  %v1602_v45 = vcvt.f32.s32 %v1599_v33 }
 0x6c3   :  { %v1590_v1 = vcvt.f32.s32 %v1587_v27  ;;  %v1575_v29 = vpop.xlane.xlu0 %1574 }
 0x6c4   :  { %v1578_v35 = vcvt.f32.s32 %v1575_v29  ;;  %v1605_v55 = vadd.s32 %v1604_v22, %v1602_v45  ;;  %v1628_v45 = vshll.u32 %v1627_v3, 16 }
 0x6c5   :  { %v1593_v34 = vadd.s32 %v1592_v13, %v1590_v1  ;;  %v1616_v1 = vshll.u32 %v1615_v7, 16 }
 0x6c6   :  { %v1581_v42 = vadd.s32 %v1580_v28, %v1578_v35  ;;  %vm1658_vm11 = vcmp.gt.s32.totalorder %v1605_v55, 0  ;;  %v2463_v2 = vadd.s32 4294967295, %v1605_v55  ;;  %v1701_v55 = vld [vmem:[#allocation6 + $0x30] sm:$0xff] }
 0x6c7   :  { %vm1657_vm0 = vcmp.gt.s32.totalorder %v1593_v34, 0  ;;  %v2462_v12 = vadd.s32 4294967295, %v1593_v34  ;;  %vm1682_vm15 = vmand %vm1654_vm14, %vm1658_vm11  ;;  %v1700_v34 = vld [vmem:[#allocation6 + $0x28] sm:$0xff] }
 0x6c8   :  { %vm1681_vm3 = vmand %vm1654_vm14, %vm1657_vm0  ;;  %vm1656_vm1 = vcmp.gt.s32.totalorder %v1581_v42, 0  ;;  %v2461_v25 = vadd.s32 4294967295, %v1581_v42  ;;  %v1706_v43 = vsel %vm1682_vm15, %v2463_v2, %v1698_v53  ;;  %v1651_v2 = vcvt.f32.s32 %v3357_v0 }
 0x6c9   :  { %v1705_v37 = vsel %vm1681_vm3, %v2462_v12, %v1697_v50  ;;  %vm1680_vm4 = vmand %vm1654_vm14, %vm1656_vm1  ;;  %1714 = vst [vmem:[#allocation6 + $0x18] sm:$0xff] %v1706_v43  ;;  %v1635_v26 = vpop.xlane.xlu2 %1634 }
 0x6ca   :  { %1713 = vst [vmem:[#allocation6 + $0x10] sm:$0xff] %v1705_v37  ;;  %v1704_v33 = vsel %vm1680_vm4, %v2461_v25, %v1696_v10  ;;  %v1623_v22 = vpop.xlane.xlu1 %1622  ;;  %v1638_v27 = vcvt.f32.s32 %v1635_v26  ;;  %v1652_v43 = vshll.u32 %v1651_v2, 16 }
 0x6cb   :  { %1712 = vst [vmem:[#allocation6 + $0x8] sm:$0xff] %v1704_v33  ;;  %v1626_v38 = vcvt.f32.s32 %v1623_v22  ;;  %v1611_v13 = vpop.xlane.xlu0 %1610 }
 0x6cc   :  { %v1614_v29 = vcvt.f32.s32 %v1611_v13  ;;  %v1641_v28 = vadd.s32 %v1640_v63, %v1638_v27  ;;  %v1702_v63 = vld [vmem:[#allocation6 + $0x38] sm:$0xff] }
 0x6cd   :  { %v1629_v35 = vadd.s32 %v1628_v45, %v1626_v38 }
 0x6ce   :  { %v1617_v53 = vadd.s32 %v1616_v1, %v1614_v29  ;;  %vm1661_vm8 = vcmp.gt.s32.totalorder %v1641_v28, 0  ;;  %v2466_v50 = vadd.s32 4294967295, %v1641_v28 }
 0x6cf   :  { %vm1660_vm10 = vcmp.gt.s32.totalorder %v1629_v35, 0  ;;  %v2465_v42 = vadd.s32 4294967295, %v1629_v35  ;;  %vm1685_vm11 = vmand %vm1654_vm14, %vm1661_vm8 }
 0x6d0   :  { %vm1684_vm0 = vmand %vm1654_vm14, %vm1660_vm10  ;;  %vm1659_vm15 = vcmp.gt.s32.totalorder %v1617_v53, 0  ;;  %v2464_v3 = vadd.s32 4294967295, %v1617_v53  ;;  %v1709_v12 = vsel %vm1685_vm11, %v2466_v50, %v1701_v55 }
 0x6d1   :  { %v1708_v10 = vsel %vm1684_vm0, %v2465_v42, %v1700_v34  ;;  %vm1683_vm3 = vmand %vm1654_vm14, %vm1659_vm15  ;;  %1717 = vst [vmem:[#allocation6 + $0x30] sm:$0xff] %v1709_v12 }
 0x6d2   :  { %1716 = vst [vmem:[#allocation6 + $0x28] sm:$0xff] %v1708_v10  ;;  %v1707_v7 = vsel %vm1683_vm3, %v2464_v3, %v1699_v41 }
 0x6d3   :  { %1715 = vst [vmem:[#allocation6 + $0x20] sm:$0xff] %v1707_v7  ;;  %v1647_v25 = vpop.xlane.xlu0 %1646 }
 0x6d4   :  { %v1650_v37 = vcvt.f32.s32 %v1647_v25 }
 0x6d6   :  { %v1653_v26 = vadd.s32 %v1652_v43, %v1650_v37 }
 0x6d8   :  { %vm1662_vm1 = vcmp.gt.s32.totalorder %v1653_v26, 0  ;;  %v2467_v0 = vadd.s32 4294967295, %v1653_v26 }
 0x6d9   :  { %vm1686_vm4 = vmand %vm1654_vm14, %vm1662_vm1 }
 0x6da   :  { %v1710_v33 = vsel %vm1686_vm4, %v2467_v0, %v1702_v63 }
 0x6db   :  { %1718 = vst [vmem:[#allocation6 + $0x38] sm:$0xff] %v1710_v33 }
 0x6dc PF:  { %p1719_p8 = scmp.le.s32.totalorder %s3089_s1, 5  ;;  %p1720_p9 = scmp.gt.s32.totalorder %s3091_s10, 5 }
 0x6de   :  { %p1721_p10 = pnand %p1720_p9, %p1719_p8 }
 0x6e0   :  { %1724 = sbr.rel (%p1721_p10) target bundleno = 1938 (0x792), region = 61 }
 0x6e5   :  { %vm1729_vm8 = vcmp.eq.s32.totalorder %v3045_v23, 5  ;;  %vm1727_vm10 = vcmp.eq.s32.totalorder %v3019_v6, 5  ;;  %vm1725_vm11 = vcmp.eq.s32.totalorder %v2985_v30, 5  ;;  %vm1730_vm14 = vcmp.eq.s32.totalorder %v3055_v49, 5 }
 0x6e6   :  { %vm1737_vm0 = vmand %vm2873_vm5, %vm1729_vm8  ;;  %vm1728_vm3 = vcmp.eq.s32.totalorder %v3032_v8, 5  ;;  %vm1726_vm4 = vcmp.eq.s32.totalorder %v3006_v51, 5 }
 0x6e7   :  { %v1745_v22 = vsel %vm1737_vm0, %v3074_v9, 0  ;;  %vm1735_vm15 = vmand %vm2847_vm6, %vm1727_vm10  ;;  %vm1732_vm0 = vcmp.eq.s32.totalorder %v3087_v56, 5 }
 0x6e8   :  { %v1798_v27 = vshrl.u32 %v1745_v22, 16  ;;  %v1743_v45 = vsel %vm1735_vm15, %v3074_v9, 0  ;;  %vm1733_vm1 = vmand %vm2851_vm9, %vm1725_vm11 }
 0x6e9   :  { %v1774_v38 = vshrl.u32 %v1743_v45, 16  ;;  %v1741_v13 = vsel %vm1733_vm1, %v3074_v9, 0  ;;  %vm1738_vm8 = vmand %vm2877_vm7, %vm1730_vm14  ;;  %vm1731_vm14 = vcmp.eq.s32.totalorder %v3069_v62, 5 }
 0x6ea   :  { %v1800_v1 = vcvt.s32.f32 %v1798_v27  ;;  %v1750_v29 = vshrl.u32 %v1741_v13, 16  ;;  %v1746_v28 = vsel %vm1738_vm8, %v3074_v9, 0  ;;  %vm1736_vm10 = vmand %vm2855_vm12, %vm1728_vm3  ;;  %vm3630_vm3 = vnez %v3622_v4 }
 0x6eb   :  { %v1776_v35 = vcvt.s32.f32 %v1774_v38  ;;  %v1744_v55 = vsel %vm1736_vm10, %v3074_v9, 0  ;;  %vm1734_vm11 = vmand %vm2859_vm13, %vm1726_vm4  ;;  %v1810_v53 = vshrl.u32 %v1746_v28, 16  ;;  %v1749_v25 = vand.u32 65535, %v1741_v13 }
 0x6ec   :  { %1803 = vadd.xlane.f32.xlu2 %v1800_v1  ;;  %v1752_v34 = vcvt.s32.f32 %v1750_v29  ;;  %v1742_v50 = vsel %vm1734_vm11, %v3074_v9, 0  ;;  %v1786_v42 = vshrl.u32 %v1744_v55, 16  ;;  %vm1740_vm15 = vmand %vm2892_vm2, %vm1732_vm0  ;;  %v1785_v33 = vand.u32 65535, %v1744_v55 }
 0x6ed   :  { %1779 = vadd.xlane.f32.xlu1 %v1776_v35  ;;  %v1762_v41 = vshrl.u32 %v1742_v50, 16  ;;  %v1812_v2 = vcvt.s32.f32 %v1810_v53  ;;  %vm1739_vm1 = vmand %vm3630_vm3, %vm1731_vm14  ;;  %v1748_v10 = vsel %vm1740_vm15, %v3074_v9, 0  ;;  %v1751_v26 = vcvt.s32.f32 %v1749_v25 }
 0x6ee   :  { %1755 = vadd.xlane.f32.xlu0 %v1752_v34  ;;  %v1788_v3 = vcvt.s32.f32 %v1786_v42  ;;  %v1747_v7 = vsel %vm1739_vm1, %v3074_v9, 0  ;;  %v1834_v43 = vshrl.u32 %v1748_v10, 16  ;;  %v1773_v27 = vand.u32 65535, %v1743_v45 }
 0x6ef   :  { %v1764_v12 = vcvt.s32.f32 %v1762_v41  ;;  %v1822_v37 = vshrl.u32 %v1747_v7, 16  ;;  %v1761_v38 = vand.u32 65535, %v1742_v50  ;;  %v1787_v1 = vcvt.s32.f32 %v1785_v33 }
 0x6f0   :  { %v1836_v63 = vcvt.s32.f32 %v1834_v43  ;;  %v1775_v29 = vcvt.s32.f32 %v1773_v27  ;;  %v1821_v34 = vand.u32 65535, %v1747_v7  ;;  %v1809_v13 = vand.u32 65535, %v1746_v28 }
 0x6f1   :  { %v1824_v0 = vcvt.s32.f32 %v1822_v37  ;;  %v1763_v35 = vcvt.s32.f32 %v1761_v38  ;;  %v1797_v53 = vand.u32 65535, %v1745_v22  ;;  %v1833_v55 = vand.u32 65535, %v1748_v10  ;;  %v1886_v10 = vld [vmem:[#allocation6] sm:$0xff] }
 0x6f2   :  { %v1823_v42 = vcvt.s32.f32 %v1821_v34  ;;  %v1811_v41 = vcvt.s32.f32 %v1809_v13  ;;  %vm1845_vm4 = vcmp.eq.s32.totalorder %v3071_v36, 5 }
 0x6f4   :  { %1815 = vadd.xlane.f32.xlu2 %v1812_v2  ;;  %v1799_v2 = vcvt.s32.f32 %v1797_v53 }
 0x6f5   :  { %1791 = vadd.xlane.f32.xlu1 %v1788_v3  ;;  %v1835_v3 = vcvt.s32.f32 %v1833_v55 }
 0x6f6   :  { %1767 = vadd.xlane.f32.xlu0 %v1764_v12 }
 0x6fc   :  { %1753 = vadd.xlane.f32.xlu2 %v1751_v26 }
 0x6fd   :  { %1839 = vadd.xlane.f32.xlu1 %v1836_v63 }
 0x6fe   :  { %1827 = vadd.xlane.f32.xlu0 %v1824_v0 }
 0x704   :  { %1789 = vadd.xlane.f32.xlu2 %v1787_v1 }
 0x705   :  { %1777 = vadd.xlane.f32.xlu1 %v1775_v29 }
 0x706   :  { %1765 = vadd.xlane.f32.xlu0 %v1763_v35 }
 0x70c   :  { %1825 = vadd.xlane.f32.xlu2 %v1823_v42 }
 0x70d   :  { %1813 = vadd.xlane.f32.xlu1 %v1811_v41 }
 0x70e   :  { %1801 = vadd.xlane.f32.xlu0 %v1799_v2 }
 0x716   :  { %1837 = vadd.xlane.f32.xlu0 %v1835_v3 }
 0x75f   :  { %v3412_v45 = vpop.xlane.xlu2 %1803 }
 0x760   :  { %v1780_v50 = vpop.xlane.xlu1 %1779 }
 0x761   :  { %v1756_v12 = vpop.xlane.xlu0 %1755  ;;  %v1782_v1 = vcvt.f32.s32 %v1780_v50  ;;  %v1888_v50 = vld [vmem:[#allocation6 + $0x10] sm:$0xff] }
 0x762   :  { %v1758_v37 = vcvt.f32.s32 %v1756_v12 }
 0x763   :  { %v1783_v41 = vshll.u32 %v1782_v1, 16 }
 0x764   :  { %v1759_v26 = vshll.u32 %v1758_v37, 16 }
 0x767   :  { %v1816_v25 = vpop.xlane.xlu2 %1815 }
 0x768   :  { %v1792_v43 = vpop.xlane.xlu1 %1791 }
 0x769   :  { %v1768_v7 = vpop.xlane.xlu0 %1767  ;;  %v1794_v27 = vcvt.f32.s32 %v1792_v43 }
 0x76a   :  { %v1770_v29 = vcvt.f32.s32 %v1768_v7  ;;  %v1818_v7 = vcvt.f32.s32 %v1816_v25 }
 0x76b   :  { %v1795_v13 = vshll.u32 %v1794_v27, 16  ;;  %v1806_v27 = vcvt.f32.s32 %v3412_v45 }
 0x76c   :  { %v1771_v3 = vshll.u32 %v1770_v29, 16 }
 0x76f   :  { %v1754_v28 = vpop.xlane.xlu2 %1753 }
 0x770   :  { %v3414_v22 = vpop.xlane.xlu1 %1839  ;;  %v1757_v63 = vcvt.f32.s32 %v1754_v28  ;;  %v1889_v28 = vld [vmem:[#allocation6 + $0x18] sm:$0xff] }
 0x771   :  { %v1828_v0 = vpop.xlane.xlu0 %1827 }
 0x772   :  { %v1760_v33 = vadd.s32 %v1759_v26, %v1757_v63  ;;  %v1830_v26 = vcvt.f32.s32 %v1828_v0 }
 0x774   :  { %vm1846_vm8 = vcmp.gt.s32.totalorder %v1760_v33, 0  ;;  %v2468_v38 = vadd.s32 4294967295, %v1760_v33 }
 0x775   :  { %vm1870_vm10 = vmand %vm1845_vm4, %vm1846_vm8 }
 0x776   :  { %v1894_v35 = vsel %vm1870_vm10, %v2468_v38, %v1886_v10  ;;  %v1887_v38 = vld [vmem:[#allocation6 + $0x8] sm:$0xff] }
 0x777   :  { %1902 = vst [vmem:[#allocation6] sm:$0xff] %v1894_v35  ;;  %v1790_v34 = vpop.xlane.xlu2 %1789  ;;  %v1831_v35 = vshll.u32 %v1830_v26, 16  ;;  %v1890_v26 = vld [vmem:[#allocation6 + $0x20] sm:$0xff] }
 0x778   :  { %v1778_v53 = vpop.xlane.xlu1 %1777  ;;  %v1793_v42 = vcvt.f32.s32 %v1790_v34 }
 0x779   :  { %v1781_v2 = vcvt.f32.s32 %v1778_v53  ;;  %v1766_v55 = vpop.xlane.xlu0 %1765 }
 0x77a   :  { %v1769_v12 = vcvt.f32.s32 %v1766_v55  ;;  %v1796_v37 = vadd.s32 %v1795_v13, %v1793_v42  ;;  %v1819_v42 = vshll.u32 %v1818_v7, 16 }
 0x77b   :  { %v1784_v43 = vadd.s32 %v1783_v41, %v1781_v2  ;;  %v1807_v2 = vshll.u32 %v1806_v27, 16 }
 0x77c   :  { %v1772_v63 = vadd.s32 %v1771_v3, %v1769_v12  ;;  %vm1849_vm11 = vcmp.gt.s32.totalorder %v1796_v37, 0  ;;  %v2471_v33 = vadd.s32 4294967295, %v1796_v37  ;;  %v1892_v37 = vld [vmem:[#allocation6 + $0x30] sm:$0xff] }
 0x77d   :  { %vm1848_vm0 = vcmp.gt.s32.totalorder %v1784_v43, 0  ;;  %v2470_v10 = vadd.s32 4294967295, %v1784_v43  ;;  %vm1873_vm14 = vmand %vm1845_vm4, %vm1849_vm11  ;;  %v1891_v43 = vld [vmem:[#allocation6 + $0x28] sm:$0xff] }
 0x77e   :  { %vm1872_vm15 = vmand %vm1845_vm4, %vm1848_vm0  ;;  %vm1847_vm3 = vcmp.gt.s32.totalorder %v1772_v63, 0  ;;  %v2469_v1 = vadd.s32 4294967295, %v1772_v63  ;;  %v1897_v29 = vsel %vm1873_vm14, %v2471_v33, %v1889_v28  ;;  %v1842_v33 = vcvt.f32.s32 %v3414_v22 }
 0x77f   :  { %v1896_v0 = vsel %vm1872_vm15, %v2470_v10, %v1888_v50  ;;  %vm1871_vm1 = vmand %vm1845_vm4, %vm1847_vm3  ;;  %1905 = vst [vmem:[#allocation6 + $0x18] sm:$0xff] %v1897_v29  ;;  %v1826_v25 = vpop.xlane.xlu2 %1825 }
 0x780   :  { %1904 = vst [vmem:[#allocation6 + $0x10] sm:$0xff] %v1896_v0  ;;  %v1895_v34 = vsel %vm1871_vm1, %v2469_v1, %v1887_v38  ;;  %v1814_v13 = vpop.xlane.xlu1 %1813  ;;  %v1829_v53 = vcvt.f32.s32 %v1826_v25  ;;  %v1843_v29 = vshll.u32 %v1842_v33, 16 }
 0x781   :  { %1903 = vst [vmem:[#allocation6 + $0x8] sm:$0xff] %v1895_v34  ;;  %v1817_v45 = vcvt.f32.s32 %v1814_v13  ;;  %v1802_v41 = vpop.xlane.xlu0 %1801 }
 0x782   :  { %v1805_v55 = vcvt.f32.s32 %v1802_v41  ;;  %v1832_v3 = vadd.s32 %v1831_v35, %v1829_v53  ;;  %v1893_v35 = vld [vmem:[#allocation6 + $0x38] sm:$0xff] }
 0x783   :  { %v1820_v12 = vadd.s32 %v1819_v42, %v1817_v45 }
 0x784   :  { %v1808_v28 = vadd.s32 %v1807_v2, %v1805_v55  ;;  %vm1852_vm8 = vcmp.gt.s32.totalorder %v1832_v3, 0  ;;  %v2474_v50 = vadd.s32 4294967295, %v1832_v3 }
 0x785   :  { %vm1851_vm10 = vcmp.gt.s32.totalorder %v1820_v12, 0  ;;  %v2473_v63 = vadd.s32 4294967295, %v1820_v12  ;;  %vm1876_vm11 = vmand %vm1845_vm4, %vm1852_vm8 }
 0x786   :  { %vm1875_vm0 = vmand %vm1845_vm4, %vm1851_vm10  ;;  %vm1850_vm14 = vcmp.gt.s32.totalorder %v1808_v28, 0  ;;  %v2472_v7 = vadd.s32 4294967295, %v1808_v28  ;;  %v1900_v10 = vsel %vm1876_vm11, %v2474_v50, %v1892_v37 }
 0x787   :  { %v1899_v38 = vsel %vm1875_vm0, %v2473_v63, %v1891_v43  ;;  %vm1874_vm15 = vmand %vm1845_vm4, %vm1850_vm14  ;;  %1908 = vst [vmem:[#allocation6 + $0x30] sm:$0xff] %v1900_v10 }
 0x788   :  { %1907 = vst [vmem:[#allocation6 + $0x28] sm:$0xff] %v1899_v38  ;;  %v1898_v27 = vsel %vm1874_vm15, %v2472_v7, %v1890_v26 }
 0x789   :  { %1906 = vst [vmem:[#allocation6 + $0x20] sm:$0xff] %v1898_v27  ;;  %v1838_v1 = vpop.xlane.xlu0 %1837 }
 0x78a   :  { %v1841_v0 = vcvt.f32.s32 %v1838_v1 }
 0x78c   :  { %v1844_v25 = vadd.s32 %v1843_v29, %v1841_v0 }
 0x78e   :  { %vm1853_vm3 = vcmp.gt.s32.totalorder %v1844_v25, 0  ;;  %v2475_v22 = vadd.s32 4294967295, %v1844_v25 }
 0x78f   :  { %vm1877_vm1 = vmand %vm1845_vm4, %vm1853_vm3 }
 0x790   :  { %v1901_v34 = vsel %vm1877_vm1, %v2475_v22, %v1893_v35 }
 0x791   :  { %1909 = vst [vmem:[#allocation6 + $0x38] sm:$0xff] %v1901_v34 }
 0x792 PF:  { %p1910_p11 = scmp.le.s32.totalorder %s3089_s1, 6  ;;  %p1911_p12 = scmp.gt.s32.totalorder %s3091_s10, 6 }
 0x794   :  { %p1912_p13 = pnand %p1911_p12, %p1910_p11 }
 0x796   :  { %1915 = sbr.rel (%p1912_p13) target bundleno = 2120 (0x848), region = 65 }
 0x79b   :  { %vm1920_vm8 = vcmp.eq.s32.totalorder %v3045_v23, 6  ;;  %vm1918_vm10 = vcmp.eq.s32.totalorder %v3019_v6, 6  ;;  %vm1916_vm11 = vcmp.eq.s32.totalorder %v2985_v30, 6  ;;  %vm1921_vm4 = vcmp.eq.s32.totalorder %v3055_v49, 6 }
 0x79c   :  { %vm1928_vm0 = vmand %vm2873_vm5, %vm1920_vm8  ;;  %vm1919_vm15 = vcmp.eq.s32.totalorder %v3032_v8, 6  ;;  %vm1917_vm1 = vcmp.eq.s32.totalorder %v3006_v51, 6 }
 0x79d   :  { %v1936_v13 = vsel %vm1928_vm0, %v3074_v9, 0  ;;  %vm1926_vm14 = vmand %vm2847_vm6, %vm1918_vm10  ;;  %vm1923_vm0 = vcmp.eq.s32.totalorder %v3087_v56, 6 }
 0x79e   :  { %v1989_v53 = vshrl.u32 %v1936_v13, 16  ;;  %v1934_v42 = vsel %vm1926_vm14, %v3074_v9, 0  ;;  %vm1924_vm3 = vmand %vm2851_vm9, %vm1916_vm11 }
 0x79f   :  { %v1965_v45 = vshrl.u32 %v1934_v42, 16  ;;  %v1932_v41 = vsel %vm1924_vm3, %v3074_v9, 0  ;;  %vm1929_vm8 = vmand %vm2877_vm7, %vm1921_vm4  ;;  %vm1922_vm4 = vcmp.eq.s32.totalorder %v3069_v62, 6 }
 0x7a0   :  { %v1991_v2 = vcvt.s32.f32 %v1989_v53  ;;  %v1941_v55 = vshrl.u32 %v1932_v41, 16  ;;  %v1937_v3 = vsel %vm1929_vm8, %v3074_v9, 0  ;;  %vm1927_vm10 = vmand %vm2855_vm12, %vm1919_vm15  ;;  %vm3631_vm15 = vnez %v3622_v4 }
 0x7a1   :  { %v1967_v12 = vcvt.s32.f32 %v1965_v45  ;;  %v1935_v37 = vsel %vm1927_vm10, %v3074_v9, 0  ;;  %vm1925_vm11 = vmand %vm2859_vm13, %vm1917_vm1  ;;  %v2001_v28 = vshrl.u32 %v1937_v3, 16  ;;  %v1940_v1 = vand.u32 65535, %v1932_v41 }
 0x7a2   :  { %1994 = vadd.xlane.f32.xlu2 %v1991_v2  ;;  %v1943_v43 = vcvt.s32.f32 %v1941_v55  ;;  %v1933_v50 = vsel %vm1925_vm11, %v3074_v9, 0  ;;  %v1977_v63 = vshrl.u32 %v1935_v37, 16  ;;  %vm1931_vm14 = vmand %vm2892_vm2, %vm1923_vm0  ;;  %v1976_v34 = vand.u32 65535, %v1935_v37 }
 0x7a3   :  { %1970 = vadd.xlane.f32.xlu1 %v1967_v12  ;;  %v1953_v26 = vshrl.u32 %v1933_v50, 16  ;;  %v2003_v33 = vcvt.s32.f32 %v2001_v28  ;;  %vm1930_vm3 = vmand %vm3631_vm15, %vm1922_vm4  ;;  %v1939_v38 = vsel %vm1931_vm14, %v3074_v9, 0  ;;  %v1942_v25 = vcvt.s32.f32 %v1940_v1 }
 0x7a4   :  { %1946 = vadd.xlane.f32.xlu0 %v1943_v43  ;;  %v1979_v7 = vcvt.s32.f32 %v1977_v63  ;;  %v1938_v27 = vsel %vm1930_vm3, %v3074_v9, 0  ;;  %v2025_v29 = vshrl.u32 %v1939_v38, 16  ;;  %v1964_v53 = vand.u32 65535, %v1934_v42 }
 0x7a5   :  { %v1955_v10 = vcvt.s32.f32 %v1953_v26  ;;  %v2013_v0 = vshrl.u32 %v1938_v27, 16  ;;  %v1952_v45 = vand.u32 65535, %v1933_v50  ;;  %v1978_v2 = vcvt.s32.f32 %v1976_v34 }
 0x7a6   :  { %v2027_v35 = vcvt.s32.f32 %v2025_v29  ;;  %v1966_v55 = vcvt.s32.f32 %v1964_v53  ;;  %v2012_v43 = vand.u32 65535, %v1938_v27  ;;  %v2000_v41 = vand.u32 65535, %v1937_v3 }
 0x7a7   :  { %v2015_v22 = vcvt.s32.f32 %v2013_v0  ;;  %v1954_v12 = vcvt.s32.f32 %v1952_v45  ;;  %v1988_v28 = vand.u32 65535, %v1936_v13  ;;  %v2024_v37 = vand.u32 65535, %v1939_v38  ;;  %v2077_v38 = vld [vmem:[#allocation6] sm:$0xff] }
 0x7a8   :  { %v2014_v63 = vcvt.s32.f32 %v2012_v43  ;;  %v2002_v26 = vcvt.s32.f32 %v2000_v41  ;;  %vm2036_vm1 = vcmp.eq.s32.totalorder %v3071_v36, 6 }
 0x7aa   :  { %2006 = vadd.xlane.f32.xlu2 %v2003_v33  ;;  %v1990_v33 = vcvt.s32.f32 %v1988_v28 }
 0x7ab   :  { %1982 = vadd.xlane.f32.xlu1 %v1979_v7  ;;  %v2026_v7 = vcvt.s32.f32 %v2024_v37 }
 0x7ac   :  { %1958 = vadd.xlane.f32.xlu0 %v1955_v10 }
 0x7b2   :  { %1944 = vadd.xlane.f32.xlu2 %v1942_v25 }
 0x7b3   :  { %2030 = vadd.xlane.f32.xlu1 %v2027_v35 }
 0x7b4   :  { %2018 = vadd.xlane.f32.xlu0 %v2015_v22 }
 0x7ba   :  { %1980 = vadd.xlane.f32.xlu2 %v1978_v2 }
 0x7bb   :  { %1968 = vadd.xlane.f32.xlu1 %v1966_v55 }
 0x7bc   :  { %1956 = vadd.xlane.f32.xlu0 %v1954_v12 }
 0x7c2   :  { %2016 = vadd.xlane.f32.xlu2 %v2014_v63 }
 0x7c3   :  { %2004 = vadd.xlane.f32.xlu1 %v2002_v26 }
 0x7c4   :  { %1992 = vadd.xlane.f32.xlu0 %v1990_v33 }
 0x7cc   :  { %2028 = vadd.xlane.f32.xlu0 %v2026_v7 }
 0x815   :  { %v3469_v42 = vpop.xlane.xlu2 %1994 }
 0x816   :  { %v1971_v50 = vpop.xlane.xlu1 %1970 }
 0x817   :  { %v1947_v10 = vpop.xlane.xlu0 %1946  ;;  %v1973_v2 = vcvt.f32.s32 %v1971_v50  ;;  %v2079_v50 = vld [vmem:[#allocation6 + $0x10] sm:$0xff] }
 0x818   :  { %v1949_v0 = vcvt.f32.s32 %v1947_v10 }
 0x819   :  { %v1974_v26 = vshll.u32 %v1973_v2, 16 }
 0x81a   :  { %v1950_v25 = vshll.u32 %v1949_v0, 16 }
 0x81d   :  { %v2007_v1 = vpop.xlane.xlu2 %2006 }
 0x81e   :  { %v1983_v29 = vpop.xlane.xlu1 %1982 }
 0x81f   :  { %v1959_v27 = vpop.xlane.xlu0 %1958  ;;  %v1985_v53 = vcvt.f32.s32 %v1983_v29 }
 0x820   :  { %v1961_v55 = vcvt.f32.s32 %v1959_v27  ;;  %v2009_v27 = vcvt.f32.s32 %v2007_v1 }
 0x821   :  { %v1986_v41 = vshll.u32 %v1985_v53, 16  ;;  %v1997_v53 = vcvt.f32.s32 %v3469_v42 }
 0x822   :  { %v1962_v7 = vshll.u32 %v1961_v55, 16 }
 0x825   :  { %v1945_v3 = vpop.xlane.xlu2 %1944 }
 0x826   :  { %v3471_v13 = vpop.xlane.xlu1 %2030  ;;  %v1948_v35 = vcvt.f32.s32 %v1945_v3  ;;  %v2080_v3 = vld [vmem:[#allocation6 + $0x18] sm:$0xff] }
 0x827   :  { %v2019_v22 = vpop.xlane.xlu0 %2018 }
 0x828   :  { %v1951_v34 = vadd.s32 %v1950_v25, %v1948_v35  ;;  %v2021_v25 = vcvt.f32.s32 %v2019_v22 }
 0x82a   :  { %vm2037_vm8 = vcmp.gt.s32.totalorder %v1951_v34, 0  ;;  %v2476_v45 = vadd.s32 4294967295, %v1951_v34 }
 0x82b   :  { %vm2061_vm10 = vmand %vm2036_vm1, %vm2037_vm8 }
 0x82c   :  { %v2085_v12 = vsel %vm2061_vm10, %v2476_v45, %v2077_v38  ;;  %v2078_v45 = vld [vmem:[#allocation6 + $0x8] sm:$0xff] }
 0x82d   :  { %2093 = vst [vmem:[#allocation6] sm:$0xff] %v2085_v12  ;;  %v1981_v43 = vpop.xlane.xlu2 %1980  ;;  %v2022_v12 = vshll.u32 %v2021_v25, 16  ;;  %v2081_v25 = vld [vmem:[#allocation6 + $0x20] sm:$0xff] }
 0x82e   :  { %v1969_v28 = vpop.xlane.xlu1 %1968  ;;  %v1984_v63 = vcvt.f32.s32 %v1981_v43 }
 0x82f   :  { %v1972_v33 = vcvt.f32.s32 %v1969_v28  ;;  %v1957_v37 = vpop.xlane.xlu0 %1956 }
 0x830   :  { %v1960_v10 = vcvt.f32.s32 %v1957_v37  ;;  %v1987_v0 = vadd.s32 %v1986_v41, %v1984_v63  ;;  %v2010_v63 = vshll.u32 %v2009_v27, 16 }
 0x831   :  { %v1975_v29 = vadd.s32 %v1974_v26, %v1972_v33  ;;  %v1998_v33 = vshll.u32 %v1997_v53, 16 }
 0x832   :  { %v1963_v35 = vadd.s32 %v1962_v7, %v1960_v10  ;;  %vm2040_vm11 = vcmp.gt.s32.totalorder %v1987_v0, 0  ;;  %v2479_v34 = vadd.s32 4294967295, %v1987_v0  ;;  %v2083_v0 = vld [vmem:[#allocation6 + $0x30] sm:$0xff] }
 0x833   :  { %vm2039_vm0 = vcmp.gt.s32.totalorder %v1975_v29, 0  ;;  %v2478_v38 = vadd.s32 4294967295, %v1975_v29  ;;  %vm2064_vm4 = vmand %vm2036_vm1, %vm2040_vm11  ;;  %v2082_v29 = vld [vmem:[#allocation6 + $0x28] sm:$0xff] }
 0x834   :  { %vm2063_vm14 = vmand %vm2036_vm1, %vm2039_vm0  ;;  %vm2038_vm15 = vcmp.gt.s32.totalorder %v1963_v35, 0  ;;  %v2477_v2 = vadd.s32 4294967295, %v1963_v35  ;;  %v2088_v55 = vsel %vm2064_vm4, %v2479_v34, %v2080_v3  ;;  %v2033_v34 = vcvt.f32.s32 %v3471_v13 }
 0x835   :  { %v2087_v22 = vsel %vm2063_vm14, %v2478_v38, %v2079_v50  ;;  %vm2062_vm3 = vmand %vm2036_vm1, %vm2038_vm15  ;;  %2096 = vst [vmem:[#allocation6 + $0x18] sm:$0xff] %v2088_v55  ;;  %v2017_v1 = vpop.xlane.xlu2 %2016 }
 0x836   :  { %2095 = vst [vmem:[#allocation6 + $0x10] sm:$0xff] %v2087_v22  ;;  %v2086_v43 = vsel %vm2062_vm3, %v2477_v2, %v2078_v45  ;;  %v2005_v41 = vpop.xlane.xlu1 %2004  ;;  %v2020_v28 = vcvt.f32.s32 %v2017_v1  ;;  %v2034_v55 = vshll.u32 %v2033_v34, 16 }
 0x837   :  { %2094 = vst [vmem:[#allocation6 + $0x8] sm:$0xff] %v2086_v43  ;;  %v2008_v42 = vcvt.f32.s32 %v2005_v41  ;;  %v1993_v26 = vpop.xlane.xlu0 %1992 }
 0x838   :  { %v1996_v37 = vcvt.f32.s32 %v1993_v26  ;;  %v2023_v7 = vadd.s32 %v2022_v12, %v2020_v28  ;;  %v2084_v12 = vld [vmem:[#allocation6 + $0x38] sm:$0xff] }
 0x839   :  { %v2011_v10 = vadd.s32 %v2010_v63, %v2008_v42 }
 0x83a   :  { %v1999_v3 = vadd.s32 %v1998_v33, %v1996_v37  ;;  %vm2043_vm8 = vcmp.gt.s32.totalorder %v2023_v7, 0  ;;  %v2482_v50 = vadd.s32 4294967295, %v2023_v7 }
 0x83b   :  { %vm2042_vm10 = vcmp.gt.s32.totalorder %v2011_v10, 0  ;;  %v2481_v35 = vadd.s32 4294967295, %v2011_v10  ;;  %vm2067_vm11 = vmand %vm2036_vm1, %vm2043_vm8 }
 0x83c   :  { %vm2066_vm0 = vmand %vm2036_vm1, %vm2042_vm10  ;;  %vm2041_vm4 = vcmp.gt.s32.totalorder %v1999_v3, 0  ;;  %v2480_v27 = vadd.s32 4294967295, %v1999_v3  ;;  %v2091_v38 = vsel %vm2067_vm11, %v2482_v50, %v2083_v0 }
 0x83d   :  { %v2090_v45 = vsel %vm2066_vm0, %v2481_v35, %v2082_v29  ;;  %vm2065_vm14 = vmand %vm2036_vm1, %vm2041_vm4  ;;  %2099 = vst [vmem:[#allocation6 + $0x30] sm:$0xff] %v2091_v38 }
 0x83e   :  { %2098 = vst [vmem:[#allocation6 + $0x28] sm:$0xff] %v2090_v45  ;;  %v2089_v53 = vsel %vm2065_vm14, %v2480_v27, %v2081_v25 }
 0x83f   :  { %2097 = vst [vmem:[#allocation6 + $0x20] sm:$0xff] %v2089_v53  ;;  %v2029_v2 = vpop.xlane.xlu0 %2028 }
 0x840   :  { %v2032_v22 = vcvt.f32.s32 %v2029_v2 }
 0x842   :  { %v2035_v1 = vadd.s32 %v2034_v55, %v2032_v22 }
 0x844   :  { %vm2044_vm15 = vcmp.gt.s32.totalorder %v2035_v1, 0  ;;  %v2483_v13 = vadd.s32 4294967295, %v2035_v1 }
 0x845   :  { %vm2068_vm3 = vmand %vm2036_vm1, %vm2044_vm15 }
 0x846   :  { %v2092_v43 = vsel %vm2068_vm3, %v2483_v13, %v2084_v12 }
 0x847   :  { %2100 = vst [vmem:[#allocation6 + $0x38] sm:$0xff] %v2092_v43 }
 0x848 PF:  { %p2101_p0 = scmp.le.s32.totalorder %s3089_s1, 7  ;;  %p2102_p1 = scmp.gt.s32.totalorder %s3091_s10, 7 }
 0x84a   :  { %p2103_p2 = pnand %p2102_p1, %p2101_p0 }
 0x84c   :  { %2106 = sbr.rel (%p2103_p2) target bundleno = 2302 (0x8fe), region = 69 }
 0x851   :  { %vm2111_vm8 = vcmp.eq.s32.totalorder %v3045_v23, 7  ;;  %vm2109_vm10 = vcmp.eq.s32.totalorder %v3019_v6, 7  ;;  %vm2107_vm11 = vcmp.eq.s32.totalorder %v2985_v30, 7  ;;  %vm2112_vm1 = vcmp.eq.s32.totalorder %v3055_v49, 7 }
 0x852   :  { %vm2119_vm0 = vmand %vm2873_vm5, %vm2111_vm8  ;;  %vm2110_vm14 = vcmp.eq.s32.totalorder %v3032_v8, 7  ;;  %vm2108_vm3 = vcmp.eq.s32.totalorder %v3006_v51, 7  ;;  %vm2113_vm8 = vcmp.eq.s32.totalorder %v3069_v62, 7 }
 0x853   :  { %v2127_v41 = vsel %vm2119_vm0, %v3074_v9, 0  ;;  %vm2117_vm4 = vmand %vm2847_vm6, %vm2109_vm10  ;;  %vm3632_vm10 = vnez %v3622_v4 }
 0x854   :  { %v2180_v28 = vshrl.u32 %v2127_v41, 16  ;;  %v2125_v63 = vsel %vm2117_vm4, %v3074_v9, 0  ;;  %vm2115_vm15 = vmand %vm2851_vm9, %vm2107_vm11  ;;  %v2179_v38 = vand.u32 65535, %v2127_v41 }
 0x855   :  { %v2156_v30 = vshrl.u32 %v2125_v63, 16  ;;  %v2123_v58 = vsel %vm2115_vm15, %v3074_v9, 0  ;;  %vm2120_vm5 = vmand %vm2877_vm7, %vm2112_vm1  ;;  %vm2114_vm7 = vcmp.eq.s32.totalorder %v3087_v56, 7  ;;  %v2155_v4 = vand.u32 65535, %v2125_v63 }
 0x856   :  { %v2182_v6 = vcvt.s32.f32 %v2180_v28  ;;  %v2132_v23 = vshrl.u32 %v2123_v58, 16  ;;  %v2128_v44 = vsel %vm2120_vm5, %v3074_v9, 0  ;;  %vm2118_vm6 = vmand %vm2855_vm12, %vm2110_vm14  ;;  %v2131_v56 = vand.u32 65535, %v2123_v58 }
 0x857   :  { %v2158_v8 = vcvt.s32.f32 %v2156_v30  ;;  %v2126_v49 = vsel %vm2118_vm6, %v3074_v9, 0  ;;  %vm2116_vm9 = vmand %vm2859_vm13, %vm2108_vm3  ;;  %v2192_v51 = vshrl.u32 %v2128_v44, 16  ;;  %v2157_v25 = vcvt.s32.f32 %v2155_v4 }
 0x858   :  { %2185 = vadd.xlane.f32.xlu2 %v2182_v6  ;;  %v2134_v46 = vcvt.s32.f32 %v2132_v23  ;;  %v2124_v42 = vsel %vm2116_vm9, %v3074_v9, 0  ;;  %v2168_v59 = vshrl.u32 %v2126_v49, 16  ;;  %vm2122_vm12 = vmand %vm2892_vm2, %vm2114_vm7  ;;  %v2133_v0 = vcvt.s32.f32 %v2131_v56 }
 0x859   :  { %2161 = vadd.xlane.f32.xlu1 %v2158_v8  ;;  %v2144_v47 = vshrl.u32 %v2124_v42, 16  ;;  %v2194_v26 = vcvt.s32.f32 %v2192_v51  ;;  %vm2121_vm13 = vmand %vm3632_vm10, %vm2113_vm8  ;;  %v2130_v37 = vsel %vm2122_vm12, %v3074_v9, 0  ;;  %v2167_v3 = vand.u32 65535, %v2126_v49  ;;  %v2268_v49 = vld [vmem:[#allocation6] sm:$0xff] }
 0x85a   :  { %2137 = vadd.xlane.f32.xlu0 %v2134_v46  ;;  %v2170_v48 = vcvt.s32.f32 %v2168_v59  ;;  %v2129_v7 = vsel %vm2121_vm13, %v3074_v9, 0  ;;  %v2216_v10 = vshrl.u32 %v2130_v37, 16  ;;  %v2143_v50 = vand.u32 65535, %v2124_v42 }
 0x85b   :  { %v2146_v33 = vcvt.s32.f32 %v2144_v47  ;;  %v2204_v62 = vshrl.u32 %v2129_v7, 16  ;;  %v2169_v35 = vcvt.s32.f32 %v2167_v3  ;;  %v2203_v9 = vand.u32 65535, %v2129_v7  ;;  %v2271_v3 = vld [vmem:[#allocation6 + $0x18] sm:$0xff] }
 0x85c   :  { %v2218_v29 = vcvt.s32.f32 %v2216_v10  ;;  %v2145_v34 = vcvt.s32.f32 %v2143_v50  ;;  %v2191_v27 = vand.u32 65535, %v2128_v44  ;;  %v2181_v2 = vcvt.s32.f32 %v2179_v38  ;;  %v2270_v50 = vld [vmem:[#allocation6 + $0x10] sm:$0xff] }
 0x85d   :  { %v2206_v5 = vcvt.s32.f32 %v2204_v62  ;;  %v2205_v45 = vcvt.s32.f32 %v2203_v9  ;;  %v2215_v55 = vand.u32 65535, %v2130_v37  ;;  %vm2227_vm2 = vcmp.eq.s32.totalorder %v3071_v36, 7 }
 0x85e   :  { %v2193_v53 = vcvt.s32.f32 %v2191_v27  ;;  %v2269_v27 = vld [vmem:[#allocation6 + $0x8] sm:$0xff] }
 0x85f   :  { %v2217_v22 = vcvt.s32.f32 %v2215_v55 }
 0x860   :  { %2197 = vadd.xlane.f32.xlu2 %v2194_v26 }
 0x861   :  { %2173 = vadd.xlane.f32.xlu1 %v2170_v48 }
 0x862   :  { %2149 = vadd.xlane.f32.xlu0 %v2146_v33 }
 0x868   :  { %2135 = vadd.xlane.f32.xlu2 %v2133_v0 }
 0x869   :  { %2221 = vadd.xlane.f32.xlu1 %v2218_v29 }
 0x86a   :  { %2209 = vadd.xlane.f32.xlu0 %v2206_v5 }
 0x870   :  { %2171 = vadd.xlane.f32.xlu2 %v2169_v35 }
 0x871   :  { %2159 = vadd.xlane.f32.xlu1 %v2157_v25 }
 0x872   :  { %2147 = vadd.xlane.f32.xlu0 %v2145_v34 }
 0x878   :  { %2207 = vadd.xlane.f32.xlu2 %v2205_v45 }
 0x879   :  { %2195 = vadd.xlane.f32.xlu1 %v2193_v53 }
 0x87a   :  { %2183 = vadd.xlane.f32.xlu0 %v2181_v2 }
 0x882   :  { %2219 = vadd.xlane.f32.xlu0 %v2217_v22 }
 0x8cb   :  { %v3526_v1 = vpop.xlane.xlu2 %2185 }
 0x8cc   :  { %v2162_v12 = vpop.xlane.xlu1 %2161  ;;  %v2188_v38 = vcvt.f32.s32 %v3526_v1 }
 0x8cd   :  { %v2138_v13 = vpop.xlane.xlu0 %2137  ;;  %v2164_v42 = vcvt.f32.s32 %v2162_v12 }
 0x8ce   :  { %v2140_v30 = vcvt.f32.s32 %v2138_v13 }
 0x8cf   :  { %v2165_v7 = vshll.u32 %v2164_v42, 16  ;;  %v2272_v42 = vld [vmem:[#allocation6 + $0x20] sm:$0xff] }
 0x8d0   :  { %v2141_v6 = vshll.u32 %v2140_v30, 16  ;;  %v2189_v30 = vshll.u32 %v2188_v38, 16 }
 0x8d3   :  { %v2198_v43 = vpop.xlane.xlu2 %2197 }
 0x8d4   :  { %v2174_v28 = vpop.xlane.xlu1 %2173  ;;  %v2200_v34 = vcvt.f32.s32 %v2198_v43 }
 0x8d5   :  { %v2150_v63 = vpop.xlane.xlu0 %2149  ;;  %v2176_v46 = vcvt.f32.s32 %v2174_v28 }
 0x8d6   :  { %v2152_v59 = vcvt.f32.s32 %v2150_v63  ;;  %v2201_v28 = vshll.u32 %v2200_v34, 16 }
 0x8d7   :  { %v2177_v48 = vshll.u32 %v2176_v46, 16 }
 0x8d8   :  { %v2153_v62 = vshll.u32 %v2152_v59, 16 }
 0x8db   :  { %v2136_v58 = vpop.xlane.xlu2 %2135 }
 0x8dc   :  { %v3528_v41 = vpop.xlane.xlu1 %2221  ;;  %v2139_v23 = vcvt.f32.s32 %v2136_v58 }
 0x8dd   :  { %v2210_v44 = vpop.xlane.xlu0 %2209  ;;  %v2224_v59 = vcvt.f32.s32 %v3528_v41 }
 0x8de   :  { %v2142_v8 = vadd.s32 %v2141_v6, %v2139_v23  ;;  %v2212_v4 = vcvt.f32.s32 %v2210_v44  ;;  %v2274_v44 = vld [vmem:[#allocation6 + $0x30] sm:$0xff] }
 0x8e0   :  { %vm2228_vm11 = vcmp.gt.s32.totalorder %v2142_v8, 0  ;;  %v2484_v51 = vadd.s32 4294967295, %v2142_v8  ;;  %v2213_v22 = vshll.u32 %v2212_v4, 16  ;;  %v2273_v8 = vld [vmem:[#allocation6 + $0x28] sm:$0xff] }
 0x8e1   :  { %vm2252_vm0 = vmand %vm2227_vm2, %vm2228_vm11 }
 0x8e2   :  { %v2276_v47 = vsel %vm2252_vm0, %v2484_v51, %v2268_v49 }
 0x8e3   :  { %2284 = vst [vmem:[#allocation6] sm:$0xff] %v2276_v47  ;;  %v2172_v26 = vpop.xlane.xlu2 %2171 }
 0x8e4   :  { %v2160_v33 = vpop.xlane.xlu1 %2159  ;;  %v2175_v37 = vcvt.f32.s32 %v2172_v26 }
 0x8e5   :  { %v2163_v56 = vcvt.f32.s32 %v2160_v33  ;;  %v2148_v10 = vpop.xlane.xlu0 %2147 }
 0x8e6   :  { %v2151_v0 = vcvt.f32.s32 %v2148_v10  ;;  %v2178_v29 = vadd.s32 %v2177_v48, %v2175_v37 }
 0x8e7   :  { %v2166_v5 = vadd.s32 %v2165_v7, %v2163_v56  ;;  %v2225_v7 = vshll.u32 %v2224_v59, 16 }
 0x8e8   :  { %v2154_v35 = vadd.s32 %v2153_v62, %v2151_v0  ;;  %vm2231_vm1 = vcmp.gt.s32.totalorder %v2178_v29, 0  ;;  %v2487_v25 = vadd.s32 4294967295, %v2178_v29  ;;  %v2275_v62 = vld [vmem:[#allocation6 + $0x38] sm:$0xff] }
 0x8e9   :  { %vm2230_vm4 = vcmp.gt.s32.totalorder %v2166_v5, 0  ;;  %v2486_v9 = vadd.s32 4294967295, %v2166_v5  ;;  %vm2255_vm14 = vmand %vm2227_vm2, %vm2231_vm1 }
 0x8ea   :  { %vm2254_vm15 = vmand %vm2227_vm2, %vm2230_vm4  ;;  %vm2229_vm3 = vcmp.gt.s32.totalorder %v2154_v35, 0  ;;  %v2485_v45 = vadd.s32 4294967295, %v2154_v35  ;;  %v2279_v53 = vsel %vm2255_vm14, %v2487_v25, %v2271_v3 }
 0x8eb   :  { %v2278_v2 = vsel %vm2254_vm15, %v2486_v9, %v2270_v50  ;;  %vm2253_vm5 = vmand %vm2227_vm2, %vm2229_vm3  ;;  %2287 = vst [vmem:[#allocation6 + $0x18] sm:$0xff] %v2279_v53  ;;  %v2208_v55 = vpop.xlane.xlu2 %2207 }
 0x8ec   :  { %2286 = vst [vmem:[#allocation6 + $0x10] sm:$0xff] %v2278_v2  ;;  %v2277_v12 = vsel %vm2253_vm5, %v2485_v45, %v2269_v27  ;;  %v2196_v13 = vpop.xlane.xlu1 %2195  ;;  %v2211_v43 = vcvt.f32.s32 %v2208_v55 }
 0x8ed   :  { %2285 = vst [vmem:[#allocation6 + $0x8] sm:$0xff] %v2277_v12  ;;  %v2199_v1 = vcvt.f32.s32 %v2196_v13  ;;  %v2184_v63 = vpop.xlane.xlu0 %2183 }
 0x8ee   :  { %v2187_v58 = vcvt.f32.s32 %v2184_v63  ;;  %v2214_v6 = vadd.s32 %v2213_v22, %v2211_v43 }
 0x8ef   :  { %v2202_v23 = vadd.s32 %v2201_v28, %v2199_v1 }
 0x8f0   :  { %v2190_v49 = vadd.s32 %v2189_v30, %v2187_v58  ;;  %vm2234_vm6 = vcmp.gt.s32.totalorder %v2214_v6, 0  ;;  %v2490_v46 = vadd.s32 4294967295, %v2214_v6 }
 0x8f1   :  { %vm2233_vm9 = vcmp.gt.s32.totalorder %v2202_v23, 0  ;;  %v2489_v51 = vadd.s32 4294967295, %v2202_v23  ;;  %vm2258_vm7 = vmand %vm2227_vm2, %vm2234_vm6 }
 0x8f2   :  { %vm2257_vm8 = vmand %vm2227_vm2, %vm2233_vm9  ;;  %vm2232_vm12 = vcmp.gt.s32.totalorder %v2190_v49, 0  ;;  %v2488_v47 = vadd.s32 4294967295, %v2190_v49  ;;  %v2282_v26 = vsel %vm2258_vm7, %v2490_v46, %v2274_v44 }
 0x8f3   :  { %v2281_v48 = vsel %vm2257_vm8, %v2489_v51, %v2273_v8  ;;  %vm2256_vm10 = vmand %vm2227_vm2, %vm2232_vm12  ;;  %2290 = vst [vmem:[#allocation6 + $0x30] sm:$0xff] %v2282_v26 }
 0x8f4   :  { %2289 = vst [vmem:[#allocation6 + $0x28] sm:$0xff] %v2281_v48  ;;  %v2280_v33 = vsel %vm2256_vm10, %v2488_v47, %v2272_v42 }
 0x8f5   :  { %2288 = vst [vmem:[#allocation6 + $0x20] sm:$0xff] %v2280_v33  ;;  %v2220_v37 = vpop.xlane.xlu0 %2219 }
 0x8f6   :  { %v2223_v56 = vcvt.f32.s32 %v2220_v37 }
 0x8f8   :  { %v2226_v10 = vadd.s32 %v2225_v7, %v2223_v56 }
 0x8fa   :  { %vm2235_vm13 = vcmp.gt.s32.totalorder %v2226_v10, 0  ;;  %v2491_v41 = vadd.s32 4294967295, %v2226_v10 }
 0x8fb   :  { %vm2259_vm11 = vmand %vm2227_vm2, %vm2235_vm13 }
 0x8fc   :  { %v2283_v0 = vsel %vm2259_vm11, %v2491_v41, %v2275_v62 }
 0x8fd   :  { %2291 = vst [vmem:[#allocation6 + $0x38] sm:$0xff] %v2283_v0 }
 0x8fe PF:  { %2296 = vrot.lane.b32.xlu1 %v2541_v60, %s2624_s7  ;;  %2292 = vrot.lane.b32.xlu0 %v2531_v61, %s2624_s7  ;;  %v3633_v29 = vcvt.f32.s32 %v3021_v31  ;;  %v3634_v36 = vcvt.f32.s32 %v2987_v32  ;;  %v3635_v54 = vcvt.f32.s32 %v3047_v24  ;;  %v3636_v57 = vcvt.f32.s32 %v3079_v11 }
 0x8ff   :  { %2300 = vrot.lane.b32.xlu2 %v2551_v40, %s2624_s7  ;;  %v3637_v61 = vcvt.f32.s32 %v3061_v52  ;;  %vm3638_vm2 = vcmask 7168  }
 0x900   :  { %vm3639_vm0 = vmmov %vm3638_vm2 }
 0x901   :  { %vm3640_vm1 = vmmov %vm3639_vm0 }
 0x902   :  { %vm3641_vm4 = vmmov %vm3639_vm0 }
 0x903   :  { %vm3642_vm14 = vmmov %vm3639_vm0 }
 0x904   :  { %vm3643_vm15 = vmmov %vm3639_vm0 }
 0x905   :  { %vm3644_vm3 = vmmov %vm3639_vm0 }
 0x906   :  { %2298 = vrot.lane.b32.xlu1 %v3633_v29, %s2624_s7  ;;  %2294 = vrot.lane.b32.xlu0 %v3634_v36, %s2624_s7  ;;  %vm3645_vm5 = vmmov %vm3639_vm0 }
 0x907   :  { %2302 = vrot.lane.b32.xlu2 %v3635_v54, %s2624_s7 }
 0x90e   :  { %2306 = vrot.lane.b32.xlu1 %v3636_v57, %s2624_s7  ;;  %2304 = vrot.lane.b32.xlu0 %v3637_v61, %s2624_s7 }
 0x959   :  { %v2301_v60 = vpop.permute.xlu2 %2300 }
 0x95a   :  { %v2312_v31 = vadd.s32 %v2301_v60, %v2938_v17 }
 0x95c   :  { %2320 = vst.msk [vmem:[#allocation2 + $0x20] sm:$0xff] %vm3638_vm2, %v2312_v31 }
 0x961   :  { %v2303_v39 = vpop.permute.xlu2 %2302 }
 0x962   :  { %v2313_v32 = vadd.s32 %v2303_v39, %v2940_v18 }
 0x964   :  { %2321 = vst.msk [vmem:[#allocation2 + $0x28] sm:$0xff] %vm3639_vm0, %v2313_v32 }
 0x970   :  { %v2297_v40 = vpop.permute.xlu1 %2296  ;;  %v2293_v24 = vpop.permute.xlu0 %2292 }
 0x971   :  { %v2310_v5 = vadd.s32 %v2297_v40, %v2934_v15  ;;  %v2308_v11 = vadd.s32 %v2293_v24, %v2946_v21 }
 0x973   :  { %2318 = vst.msk [vmem:[#allocation2 + $0x10] sm:$0xff] %vm3640_vm1, %v2310_v5 }
 0x974   :  { %2316 = vst.msk [vmem:[#allocation2] sm:$0xff] %vm3641_vm4, %v2308_v11 }
 0x978   :  { %v2299_v52 = vpop.permute.xlu1 %2298  ;;  %v2295_v3 = vpop.permute.xlu0 %2294 }
 0x979   :  { %v2311_v17 = vadd.s32 %v2299_v52, %v2936_v16  ;;  %v2309_v4 = vadd.s32 %v2295_v3, %v2932_v14 }
 0x97b   :  { %2319 = vst.msk [vmem:[#allocation2 + $0x18] sm:$0xff] %vm3642_vm14, %v2311_v17 }
 0x97c   :  { %2317 = vst.msk [vmem:[#allocation2 + $0x8] sm:$0xff] %vm3643_vm15, %v2309_v4 }
 0x980   :  { %v2307_v18 = vpop.permute.xlu1 %2306  ;;  %v2305_v50 = vpop.permute.xlu0 %2304 }
 0x981   :  { %v2315_v15 = vadd.s32 %v2307_v18, %v2944_v20  ;;  %v2314_v21 = vadd.s32 %v2305_v50, %v2942_v19 }
 0x983   :  { %2323 = vst.msk [vmem:[#allocation2 + $0x38] sm:$0xff] %vm3644_vm3, %v2315_v15 }
 0x984   :  { %2322 = vst.msk [vmem:[#allocation2 + $0x30] sm:$0xff] %vm3645_vm5, %v2314_v21 }
 0x985 PF:  { %s2330_s13 = sshll.u32 %s3601_s9, 4  ;;  %s2625_s14 = smov [#allocation6]   ;;  %s2331_s13 = int_to_ptr.hbm [resolvable:$true] %s2330_s13 }
 0x986   :  { %s2328_s2 = sshll.u32 %s2625_s14, 4  ;;  %s2626_s15 = smov 128   ;;  %s2329_s2 = int_to_ptr.vmem [resolvable:$true] %s2328_s2 }
 0x987   :  { %s2627_s16 = smov 8  }
 0x988   :  { %2336 = dma.vmem_to_hbm [thread:$0]  %s2329_s2, 1024, %s2331_s13, [#allocation7], %s2626_s15, %s2626_s15, %s2627_s16  }
 0x989   :  { %2618 = dma.done.wait [#allocation7], 1024  }
 0x98a   :  { %2619 = vsyncadd [#allocation7], 4294966272 }
 0x98b   :  { %2341 = vsyncpa [#allocation7], 1 }

</bundles_post_ra>
